<compile_context>
chip_gen: v7x
topology: tpu7x:2x2x1
jax: 0.10.0
libtpu: 0.0.40
codegen_flags: <defaults>
</compile_context>

<pallas_src>
import jax
import jax.numpy as jnp
from jax.experimental import pallas as pl
from jax.experimental.pallas import tpu as pltpu

# Small, forward-consistent hyper-params (the original module implies SEQ=512,
# EMB=128, HID=256; kept small here but self-consistent: fc in = HID * SEQ).
VOCAB = 64      # vocab_size
EMB = 32        # embedding_dim
HID = 64        # hidden_dim
SEQ = 32        # sequence length
VOUT = 4096     # per-head width (hard-coded in the module)
NHEADS = 3
BN_EPS = 1e-5
BATCH = 2


# ----------------------------------------------------------------------------
# Kernel A: embedding + conv1(k=3,pad=1)+ReLU+BN1 + conv2+ReLU+BN2  (fused)
# ----------------------------------------------------------------------------
def encode_kernel(ids_ref, emb_ref, w1_ref, b1_ref, s1_ref, t1_ref,
                  w2_ref, b2_ref, s2_ref, t2_ref, o_ref):
    """Rows are r = b*SEQ + l (positions on sublanes, channels on lanes).

    ids_ref: (N, 1) i32; emb_ref: (VOCAB, EMB); w*_ref: (3, Cin, Cout);
    b/s/t refs: (1, Cout); o_ref: (N, HID) f32.
    """
    n = o_ref.shape[0]

    # Embedding gather as a one-hot MXU matmul (robust in-kernel gather).
    ids = ids_ref[...]                                              # (N, 1)
    vocab_iota = jax.lax.broadcasted_iota(jnp.int32, (n, VOCAB), 1)
    onehot = jnp.where(ids == vocab_iota, 1.0, 0.0)                 # (N, VOCAB)
    x = jnp.dot(onehot, emb_ref[...], preferred_element_type=jnp.float32)

    # Neighbor-shift matrices along the sequence with zero padding at batch
    # boundaries (avoids unaligned sublane slices; one tiny MXU matmul each).
    ri = jax.lax.broadcasted_iota(jnp.int32, (n, n), 0)
    ci = jax.lax.broadcasted_iota(jnp.int32, (n, n), 1)
    pos = ri % SEQ
    s_prev = jnp.where((ci == ri - 1) & (pos != 0), 1.0, 0.0)        # src l-1
    s_next = jnp.where((ci == ri + 1) & (pos != SEQ - 1), 1.0, 0.0)  # src l+1

    def conv_relu_bn(x, w_ref, b_ref, scale_ref, shift_ref):
        x_prev = jnp.dot(s_prev, x, preferred_element_type=jnp.float32)
        x_next = jnp.dot(s_next, x, preferred_element_type=jnp.float32)
        acc = (jnp.dot(x_prev, w_ref[0], preferred_element_type=jnp.float32)
               + jnp.dot(x, w_ref[1], preferred_element_type=jnp.float32)
               + jnp.dot(x_next, w_ref[2], preferred_element_type=jnp.float32))
        y = jnp.maximum(acc + b_ref[...], 0.0)            # ReLU(conv + bias)
        return y * scale_ref[...] + shift_ref[...]        # folded eval BatchNorm

    y1 = conv_relu_bn(x, w1_ref, b1_ref, s1_ref, t1_ref)
    # dropout -> identity (eval mode)
    o_ref[...] = conv_relu_bn(y1, w2_ref, b2_ref, s2_ref, t2_ref)


def encode(ids, params):
    n = ids.shape[0]
    # Single invocation, full arrays resident in VMEM (everything is tiny).
    return pl.pallas_call(
        encode_kernel,
        out_shape=jax.ShapeDtypeStruct((n, HID), jnp.float32),
    )(ids, params["emb"],
      params["w1"], params["b1"], params["scale1"], params["shift1"],
      params["w2"], params["b2"], params["scale2"], params["shift2"])


# ----------------------------------------------------------------------------
# Kernel B: fc (Linear + ReLU) fused with the three snac heads (+ sigmoid)
# ----------------------------------------------------------------------------
def fc_heads_kernel(x_ref, wfc_ref, bfc_ref, wh_ref, bh_ref, o_ref):
    # x_ref: (B, SEQ*HID) f32; wfc_ref: (SEQ*HID, HID) bf16; bfc_ref: (1, HID)
    # wh_ref: (HID, Vblk) bf16; bh_ref: (1, Vblk); o_ref: (B, Vblk) f32
    x = x_ref[...].astype(jnp.bfloat16)
    h = (jnp.dot(x, wfc_ref[...], preferred_element_type=jnp.float32)
         + bfc_ref[...])
    h = jnp.maximum(h, 0.0).astype(jnp.bfloat16)          # fc + ReLU (dropout=id)
    logits = (jnp.dot(h, wh_ref[...], preferred_element_type=jnp.float32)
              + bh_ref[...])
    o_ref[...] = jax.nn.sigmoid(logits)


def fc_heads(flat, wfc, bfc, wh_all, bh_all):
    b, f = flat.shape
    h = wfc.shape[1]
    v3 = wh_all.shape[1]
    nblk = 2                    # even "parallel" split: both v7x TCs get work
    vblk = v3 // nblk           # 6144 — lane-dense (multiple of 128)
    return pl.pallas_call(
        fc_heads_kernel,
        out_shape=jax.ShapeDtypeStruct((b, v3), jnp.float32),
        grid=(nblk,),
        in_specs=[
            pl.BlockSpec((b, f), lambda j: (0, 0)),
            pl.BlockSpec((f, h), lambda j: (0, 0)),
            pl.BlockSpec((1, h), lambda j: (0, 0)),
            pl.BlockSpec((h, vblk), lambda j: (0, j)),
            pl.BlockSpec((1, vblk), lambda j: (0, j)),
        ],
        out_specs=pl.BlockSpec((b, vblk), lambda j: (0, j)),
        compiler_params=pltpu.CompilerParams(dimension_semantics=("parallel",)),
    )(flat, wfc, bfc, wh_all, bh_all)


# ----------------------------------------------------------------------------
# Parameter init (deterministic, synthetic) and forward wrapper
# ----------------------------------------------------------------------------
def fold_bn(gamma, beta, rmean, rvar):
    scale = gamma / jnp.sqrt(rvar + BN_EPS)
    shift = beta - rmean * scale
    return scale[None, :], shift[None, :]


def init_params(key):
    ks = jax.random.split(key, 17)
    s = 0.05
    p = {}
    p["emb"] = jax.random.normal(ks[0], (VOCAB, EMB), jnp.float32) * s
    p["w1"] = jax.random.normal(ks[1], (3, EMB, HID), jnp.float32) * s
    p["b1"] = jax.random.normal(ks[2], (1, HID), jnp.float32) * s
    p["scale1"], p["shift1"] = fold_bn(
        1.0 + 0.1 * jax.random.normal(ks[3], (HID,), jnp.float32),
        0.1 * jax.random.normal(ks[4], (HID,), jnp.float32),
        0.1 * jax.random.normal(ks[5], (HID,), jnp.float32),
        1.0 + 0.1 * jnp.abs(jax.random.normal(ks[6], (HID,), jnp.float32)))
    p["w2"] = jax.random.normal(ks[7], (3, HID, HID), jnp.float32) * s
    p["b2"] = jax.random.normal(ks[8], (1, HID), jnp.float32) * s
    p["scale2"], p["shift2"] = fold_bn(
        1.0 + 0.1 * jax.random.normal(ks[9], (HID,), jnp.float32),
        0.1 * jax.random.normal(ks[10], (HID,), jnp.float32),
        0.1 * jax.random.normal(ks[11], (HID,), jnp.float32),
        1.0 + 0.1 * jnp.abs(jax.random.normal(ks[12], (HID,), jnp.float32)))
    # fc weight stored (in, out); in-dim ordered TIME-major (l*HID + c) so the
    # conv output flattens with a plain contiguous reshape.  Loading real torch
    # weights would need a one-time row permute from torch's channel-major
    # view(B, -1) ordering (zero runtime cost either way).
    p["wfc"] = (jax.random.normal(ks[13], (SEQ * HID, HID), jnp.float32)
                * s).astype(jnp.bfloat16)
    p["bfc"] = jax.random.normal(ks[14], (1, HID), jnp.float32) * s
    # Three snac heads concatenated along the output dim -> one MXU matmul.
    p["wh_all"] = (jax.random.normal(ks[15], (HID, NHEADS * VOUT), jnp.float32)
                   * s).astype(jnp.bfloat16)
    p["bh_all"] = jax.random.normal(ks[16], (1, NHEADS * VOUT), jnp.float32) * s
    return p


def forward(params, input_ids, attention_mask):
    del attention_mask  # unused by the reference module's forward as well
    b, l = input_ids.shape
    ids = input_ids.reshape(b * l, 1).astype(jnp.int32)
    flat = encode(ids, params)                  # (B*SEQ, HID), channel-last
    flat = flat.reshape(b, l * HID)             # contiguous (time-major): free
    out = fc_heads(flat, params["wfc"], params["bfc"],
                   params["wh_all"], params["bh_all"])   # (B, 3*VOUT)
    return out[:, :VOUT], out[:, VOUT:2 * VOUT], out[:, 2 * VOUT:]


# ----------------------------------------------------------------------------
# Pure-JAX reference (same precision policy) for a sanity check
# ----------------------------------------------------------------------------
def reference(params, input_ids):
    b, l = input_ids.shape
    x = jnp.take(params["emb"], input_ids, axis=0)          # (B, L, EMB)

    def conv_ref(x, w, bias, scale, shift):
        xp = jnp.pad(x, ((0, 0), (1, 1), (0, 0)))
        y = sum(jnp.einsum("blc,co->blo", xp[:, dk:dk + l, :], w[dk],
                           preferred_element_type=jnp.float32)
                for dk in range(3))
        y = jnp.maximum(y + bias, 0.0)
        return y * scale + shift

    x = conv_ref(x, params["w1"], params["b1"], params["scale1"], params["shift1"])
    x = conv_ref(x, params["w2"], params["b2"], params["scale2"], params["shift2"])
    flat = x.reshape(b, l * HID)                             # time-major flatten
    h = jnp.maximum(
        jnp.dot(flat.astype(jnp.bfloat16), params["wfc"],
                preferred_element_type=jnp.float32) + params["bfc"], 0.0)
    logits = jnp.dot(h.astype(jnp.bfloat16), params["wh_all"],
                     preferred_element_type=jnp.float32) + params["bh_all"]
    out = jax.nn.sigmoid(logits)
    return out[:, :VOUT], out[:, VOUT:2 * VOUT], out[:, 2 * VOUT:]


if __name__ == "__main__":
    key = jax.random.PRNGKey(0)
    pkey, ikey = jax.random.split(key)
    params = init_params(pkey)

    input_ids = jax.random.randint(ikey, (BATCH, SEQ), 0, VOCAB, dtype=jnp.int32)
    attention_mask = jnp.ones((BATCH, SEQ), dtype=jnp.int32)

    fwd = jax.jit(forward)
    snac_0, snac_1, snac_2 = fwd(params, input_ids, attention_mask)
    jax.block_until_ready((snac_0, snac_1, snac_2))

    r0, r1, r2 = reference(params, input_ids)
    for got, want in ((snac_0, r0), (snac_1, r1), (snac_2, r2)):
        assert got.shape == (BATCH, VOUT), got.shape
        assert jnp.allclose(got, want, rtol=2e-3, atol=2e-3), "mismatch vs reference"

    print("KERNEL_OK")
</pallas_src>

<mosaic_0001>
module attributes {stable_mosaic.version = 11 : i64} {
  func.func @encode_kernel(%arg0: memref<64x1xi32, #tpu.memory_space<vmem>>, %arg1: memref<64x32xf32, #tpu.memory_space<vmem>>, %arg2: memref<3x32x64xf32, #tpu.memory_space<vmem>>, %arg3: memref<1x64xf32, #tpu.memory_space<vmem>>, %arg4: memref<1x64xf32, #tpu.memory_space<vmem>>, %arg5: memref<1x64xf32, #tpu.memory_space<vmem>>, %arg6: memref<3x64x64xf32, #tpu.memory_space<vmem>>, %arg7: memref<1x64xf32, #tpu.memory_space<vmem>>, %arg8: memref<1x64xf32, #tpu.memory_space<vmem>>, %arg9: memref<1x64xf32, #tpu.memory_space<vmem>>, %arg10: memref<64x64xf32, #tpu.memory_space<vmem>>) attributes {dimension_semantics = [], scalar_prefetch = 0 : i64, scratch_operands = 0 : i64, tpu.core_type = #tpu.core_type<tc>} {
    %c0 = arith.constant 0 : index
    %c0_0 = arith.constant 0 : index
    %0 = vector.load %arg0[%c0, %c0_0] : memref<64x1xi32, #tpu.memory_space<vmem>>, vector<64x1xi32>
    %1 = tpu.iota {dimensions = array<i32: 1>} : vector<64x64xi32>
    %2 = vector.broadcast %0 : vector<64x1xi32> to vector<64x64xi32>
    %3 = arith.cmpi eq, %2, %1 : vector<64x64xi32>
    %cst = arith.constant 1.000000e+00 : f32
    %cst_1 = arith.constant 0.000000e+00 : f32
    %4 = vector.broadcast %cst : f32 to vector<64x64xf32>
    %5 = vector.broadcast %cst_1 : f32 to vector<64x64xf32>
    %6 = arith.select %3, %4, %5 : vector<64x64xi1>, vector<64x64xf32>
    %c0_2 = arith.constant 0 : index
    %c0_3 = arith.constant 0 : index
    %7 = vector.load %arg1[%c0_2, %c0_3] : memref<64x32xf32, #tpu.memory_space<vmem>>, vector<64x32xf32>
    %cst_4 = arith.constant dense<0.000000e+00> : vector<64x32xf32>
    %8 = tpu.matmul %6, %7, %cst_4 {dimension_numbers = #tpu.dot_dimension_numbers<[1], [0], [0], [1], [0, 0, 1, 1], [], []>} : vector<64x64xf32>, vector<64x32xf32>, vector<64x32xf32> -> vector<64x32xf32>
    %9 = tpu.iota {dimensions = array<i32: 0>} : vector<64x64xi32>
    %10 = tpu.iota {dimensions = array<i32: 1>} : vector<64x64xi32>
    %c32_i32 = arith.constant 32 : i32
    %c0_i32 = arith.constant 0 : i32
    %11 = arith.cmpi eq, %c32_i32, %c0_i32 : i32
    %c1_i32 = arith.constant 1 : i32
    %12 = arith.select %11, %c1_i32, %c32_i32 : i32
    %13 = vector.broadcast %12 : i32 to vector<64x64xi32>
    %14 = arith.remsi %9, %13 : vector<64x64xi32>
    %c0_i32_5 = arith.constant 0 : i32
    %15 = vector.broadcast %c0_i32_5 : i32 to vector<64x64xi32>
    %16 = arith.cmpi ne, %14, %15 : vector<64x64xi32>
    %c0_i32_6 = arith.constant 0 : i32
    %17 = vector.broadcast %c0_i32_6 : i32 to vector<64x64xi32>
    %18 = arith.cmpi slt, %14, %17 : vector<64x64xi32>
    %c0_i32_7 = arith.constant 0 : i32
    %19 = arith.cmpi slt, %12, %c0_i32_7 : i32
    %20 = vector.broadcast %19 : i1 to vector<64x64xi1>
    %21 = vector.broadcast %20 : vector<64x64xi1> to vector<64x64xi1>
    %22 = arith.xori %18, %21 : vector<64x64xi1>
    %23 = arith.andi %22, %16 : vector<64x64xi1>
    %24 = vector.broadcast %12 : i32 to vector<64x64xi32>
    %25 = arith.addi %14, %24 : vector<64x64xi32>
    %26 = arith.select %23, %25, %14 : vector<64x64xi1>, vector<64x64xi32>
    %c1_i32_8 = arith.constant 1 : i32
    %27 = vector.broadcast %c1_i32_8 : i32 to vector<64x64xi32>
    %28 = arith.subi %9, %27 : vector<64x64xi32>
    %29 = arith.cmpi eq, %10, %28 : vector<64x64xi32>
    %c0_i32_9 = arith.constant 0 : i32
    %30 = vector.broadcast %c0_i32_9 : i32 to vector<64x64xi32>
    %31 = arith.cmpi ne, %26, %30 : vector<64x64xi32>
    %32 = arith.andi %29, %31 : vector<64x64xi1>
    %cst_10 = arith.constant 1.000000e+00 : f32
    %cst_11 = arith.constant 0.000000e+00 : f32
    %33 = vector.broadcast %cst_10 : f32 to vector<64x64xf32>
    %34 = vector.broadcast %cst_11 : f32 to vector<64x64xf32>
    %35 = arith.select %32, %33, %34 : vector<64x64xi1>, vector<64x64xf32>
    %c1_i32_12 = arith.constant 1 : i32
    %36 = vector.broadcast %c1_i32_12 : i32 to vector<64x64xi32>
    %37 = arith.addi %9, %36 : vector<64x64xi32>
    %38 = arith.cmpi eq, %10, %37 : vector<64x64xi32>
    %c31_i32 = arith.constant 31 : i32
    %39 = vector.broadcast %c31_i32 : i32 to vector<64x64xi32>
    %40 = arith.cmpi ne, %26, %39 : vector<64x64xi32>
    %41 = arith.andi %38, %40 : vector<64x64xi1>
    %cst_13 = arith.constant 1.000000e+00 : f32
    %cst_14 = arith.constant 0.000000e+00 : f32
    %42 = vector.broadcast %cst_13 : f32 to vector<64x64xf32>
    %43 = vector.broadcast %cst_14 : f32 to vector<64x64xf32>
    %44 = arith.select %41, %42, %43 : vector<64x64xi1>, vector<64x64xf32>
    %cst_15 = arith.constant dense<0.000000e+00> : vector<64x32xf32>
    %45 = tpu.matmul %35, %8, %cst_15 {dimension_numbers = #tpu.dot_dimension_numbers<[1], [0], [0], [1], [0, 0, 1, 1], [], []>} : vector<64x64xf32>, vector<64x32xf32>, vector<64x32xf32> -> vector<64x32xf32>
    %cst_16 = arith.constant dense<0.000000e+00> : vector<64x32xf32>
    %46 = tpu.matmul %44, %8, %cst_16 {dimension_numbers = #tpu.dot_dimension_numbers<[1], [0], [0], [1], [0, 0, 1, 1], [], []>} : vector<64x64xf32>, vector<64x32xf32>, vector<64x32xf32> -> vector<64x32xf32>
    %c0_17 = arith.constant 0 : index
    %c0_18 = arith.constant 0 : index
    %c0_19 = arith.constant 0 : index
    %47 = vector.load %arg2[%c0_17, %c0_18, %c0_19] : memref<3x32x64xf32, #tpu.memory_space<vmem>>, vector<1x32x64xf32>
    %48 = vector.shape_cast %47 : vector<1x32x64xf32> to vector<32x64xf32>
    %cst_20 = arith.constant dense<0.000000e+00> : vector<64x64xf32>
    %49 = tpu.matmul %45, %48, %cst_20 {dimension_numbers = #tpu.dot_dimension_numbers<[1], [0], [0], [1], [0, 0, 1, 1], [], []>} : vector<64x32xf32>, vector<32x64xf32>, vector<64x64xf32> -> vector<64x64xf32>
    %c1 = arith.constant 1 : index
    %c0_21 = arith.constant 0 : index
    %c0_22 = arith.constant 0 : index
    %50 = vector.load %arg2[%c1, %c0_21, %c0_22] : memref<3x32x64xf32, #tpu.memory_space<vmem>>, vector<1x32x64xf32>
    %51 = vector.shape_cast %50 : vector<1x32x64xf32> to vector<32x64xf32>
    %cst_23 = arith.constant dense<0.000000e+00> : vector<64x64xf32>
    %52 = tpu.matmul %8, %51, %cst_23 {dimension_numbers = #tpu.dot_dimension_numbers<[1], [0], [0], [1], [0, 0, 1, 1], [], []>} : vector<64x32xf32>, vector<32x64xf32>, vector<64x64xf32> -> vector<64x64xf32>
    %53 = arith.addf %49, %52 : vector<64x64xf32>
    %c2 = arith.constant 2 : index
    %c0_24 = arith.constant 0 : index
    %c0_25 = arith.constant 0 : index
    %54 = vector.load %arg2[%c2, %c0_24, %c0_25] : memref<3x32x64xf32, #tpu.memory_space<vmem>>, vector<1x32x64xf32>
    %55 = vector.shape_cast %54 : vector<1x32x64xf32> to vector<32x64xf32>
    %cst_26 = arith.constant dense<0.000000e+00> : vector<64x64xf32>
    %56 = tpu.matmul %46, %55, %cst_26 {dimension_numbers = #tpu.dot_dimension_numbers<[1], [0], [0], [1], [0, 0, 1, 1], [], []>} : vector<64x32xf32>, vector<32x64xf32>, vector<64x64xf32> -> vector<64x64xf32>
    %57 = arith.addf %53, %56 : vector<64x64xf32>
    %c0_27 = arith.constant 0 : index
    %c0_28 = arith.constant 0 : index
    %58 = vector.load %arg3[%c0_27, %c0_28] : memref<1x64xf32, #tpu.memory_space<vmem>>, vector<1x64xf32>
    %59 = vector.broadcast %58 : vector<1x64xf32> to vector<64x64xf32>
    %60 = arith.addf %57, %59 : vector<64x64xf32>
    %cst_29 = arith.constant 0.000000e+00 : f32
    %61 = vector.broadcast %cst_29 : f32 to vector<64x64xf32>
    %62 = arith.maximumf %60, %61 : vector<64x64xf32>
    %c0_30 = arith.constant 0 : index
    %c0_31 = arith.constant 0 : index
    %63 = vector.load %arg4[%c0_30, %c0_31] : memref<1x64xf32, #tpu.memory_space<vmem>>, vector<1x64xf32>
    %64 = vector.broadcast %63 : vector<1x64xf32> to vector<64x64xf32>
    %65 = arith.mulf %62, %64 : vector<64x64xf32>
    %c0_32 = arith.constant 0 : index
    %c0_33 = arith.constant 0 : index
    %66 = vector.load %arg5[%c0_32, %c0_33] : memref<1x64xf32, #tpu.memory_space<vmem>>, vector<1x64xf32>
    %67 = vector.broadcast %66 : vector<1x64xf32> to vector<64x64xf32>
    %68 = arith.addf %65, %67 : vector<64x64xf32>
    %cst_34 = arith.constant dense<0.000000e+00> : vector<64x64xf32>
    %69 = tpu.matmul %35, %68, %cst_34 {dimension_numbers = #tpu.dot_dimension_numbers<[1], [0], [0], [1], [0, 0, 1, 1], [], []>} : vector<64x64xf32>, vector<64x64xf32>, vector<64x64xf32> -> vector<64x64xf32>
    %cst_35 = arith.constant dense<0.000000e+00> : vector<64x64xf32>
    %70 = tpu.matmul %44, %68, %cst_35 {dimension_numbers = #tpu.dot_dimension_numbers<[1], [0], [0], [1], [0, 0, 1, 1], [], []>} : vector<64x64xf32>, vector<64x64xf32>, vector<64x64xf32> -> vector<64x64xf32>
    %c0_36 = arith.constant 0 : index
    %c0_37 = arith.constant 0 : index
    %c0_38 = arith.constant 0 : index
    %71 = vector.load %arg6[%c0_36, %c0_37, %c0_38] : memref<3x64x64xf32, #tpu.memory_space<vmem>>, vector<1x64x64xf32>
    %72 = vector.shape_cast %71 : vector<1x64x64xf32> to vector<64x64xf32>
    %cst_39 = arith.constant dense<0.000000e+00> : vector<64x64xf32>
    %73 = tpu.matmul %69, %72, %cst_39 {dimension_numbers = #tpu.dot_dimension_numbers<[1], [0], [0], [1], [0, 0, 1, 1], [], []>} : vector<64x64xf32>, vector<64x64xf32>, vector<64x64xf32> -> vector<64x64xf32>
    %c1_40 = arith.constant 1 : index
    %c0_41 = arith.constant 0 : index
    %c0_42 = arith.constant 0 : index
    %74 = vector.load %arg6[%c1_40, %c0_41, %c0_42] : memref<3x64x64xf32, #tpu.memory_space<vmem>>, vector<1x64x64xf32>
    %75 = vector.shape_cast %74 : vector<1x64x64xf32> to vector<64x64xf32>
    %cst_43 = arith.constant dense<0.000000e+00> : vector<64x64xf32>
    %76 = tpu.matmul %68, %75, %cst_43 {dimension_numbers = #tpu.dot_dimension_numbers<[1], [0], [0], [1], [0, 0, 1, 1], [], []>} : vector<64x64xf32>, vector<64x64xf32>, vector<64x64xf32> -> vector<64x64xf32>
    %77 = arith.addf %73, %76 : vector<64x64xf32>
    %c2_44 = arith.constant 2 : index
    %c0_45 = arith.constant 0 : index
    %c0_46 = arith.constant 0 : index
    %78 = vector.load %arg6[%c2_44, %c0_45, %c0_46] : memref<3x64x64xf32, #tpu.memory_space<vmem>>, vector<1x64x64xf32>
    %79 = vector.shape_cast %78 : vector<1x64x64xf32> to vector<64x64xf32>
    %cst_47 = arith.constant dense<0.000000e+00> : vector<64x64xf32>
    %80 = tpu.matmul %70, %79, %cst_47 {dimension_numbers = #tpu.dot_dimension_numbers<[1], [0], [0], [1], [0, 0, 1, 1], [], []>} : vector<64x64xf32>, vector<64x64xf32>, vector<64x64xf32> -> vector<64x64xf32>
    %81 = arith.addf %77, %80 : vector<64x64xf32>
    %c0_48 = arith.constant 0 : index
    %c0_49 = arith.constant 0 : index
    %82 = vector.load %arg7[%c0_48, %c0_49] : memref<1x64xf32, #tpu.memory_space<vmem>>, vector<1x64xf32>
    %83 = vector.broadcast %82 : vector<1x64xf32> to vector<64x64xf32>
    %84 = arith.addf %81, %83 : vector<64x64xf32>
    %cst_50 = arith.constant 0.000000e+00 : f32
    %85 = vector.broadcast %cst_50 : f32 to vector<64x64xf32>
    %86 = arith.maximumf %84, %85 : vector<64x64xf32>
    %c0_51 = arith.constant 0 : index
    %c0_52 = arith.constant 0 : index
    %87 = vector.load %arg8[%c0_51, %c0_52] : memref<1x64xf32, #tpu.memory_space<vmem>>, vector<1x64xf32>
    %88 = vector.broadcast %87 : vector<1x64xf32> to vector<64x64xf32>
    %89 = arith.mulf %86, %88 : vector<64x64xf32>
    %c0_53 = arith.constant 0 : index
    %c0_54 = arith.constant 0 : index
    %90 = vector.load %arg9[%c0_53, %c0_54] : memref<1x64xf32, #tpu.memory_space<vmem>>, vector<1x64xf32>
    %91 = vector.broadcast %90 : vector<1x64xf32> to vector<64x64xf32>
    %92 = arith.addf %89, %91 : vector<64x64xf32>
    %c0_55 = arith.constant 0 : index
    %c0_56 = arith.constant 0 : index
    %93 = vector.load %arg10[%c0_55, %c0_56] : memref<64x64xf32, #tpu.memory_space<vmem>>, vector<64x64xf32>
    tpu.vector_store %arg10[%c0_55, %c0_56], %92 {strides = array<i32>} : memref<64x64xf32, #tpu.memory_space<vmem>>, vector<64x64xf32>,
    return
  }
}

module attributes {stable_mosaic.version = 11 : i64} {
  func.func @fc_heads_kernel(%arg0: i32, %arg1: memref<2x2048xf32, #tpu.memory_space<vmem>>, %arg2: memref<2048x64xbf16, #tpu.memory_space<vmem>>, %arg3: memref<1x64xf32, #tpu.memory_space<vmem>>, %arg4: memref<64x6144xbf16, #tpu.memory_space<vmem>>, %arg5: memref<1x6144xf32, #tpu.memory_space<vmem>>, %arg6: memref<2x6144xf32, #tpu.memory_space<vmem>>) attributes {dimension_semantics = [#tpu.dimension_semantics<parallel>], iteration_bounds = array<i64: 2>, scalar_prefetch = 0 : i64, scratch_operands = 0 : i64, tpu.core_type = #tpu.core_type<tc>, window_params = [{pipeline_mode = #tpu.pipeline_mode<synchronous>, transform_indices = @transform_0, window_bounds = array<i64: 2, 2048>}, {pipeline_mode = #tpu.pipeline_mode<synchronous>, transform_indices = @transform_1, window_bounds = array<i64: 2048, 64>}, {pipeline_mode = #tpu.pipeline_mode<synchronous>, transform_indices = @transform_2, window_bounds = array<i64: 1, 64>}, {transform_indices = @transform_3, window_bounds = array<i64: 64, 6144>}, {transform_indices = @transform_4, window_bounds = array<i64: 1, 6144>}, {transform_indices = @transform_5, window_bounds = array<i64: 2, 6144>}]} {
    %c0 = arith.constant 0 : index
    %c0_0 = arith.constant 0 : index
    %0 = vector.load %arg1[%c0, %c0_0] : memref<2x2048xf32, #tpu.memory_space<vmem>>, vector<2x2048xf32>
    %1 = arith.truncf %0 : vector<2x2048xf32> to vector<2x2048xbf16>
    %c0_1 = arith.constant 0 : index
    %c0_2 = arith.constant 0 : index
    %2 = vector.load %arg2[%c0_1, %c0_2] : memref<2048x64xbf16, #tpu.memory_space<vmem>>, vector<2048x64xbf16>
    %cst = arith.constant dense<0.000000e+00> : vector<2x64xf32>
    %3 = tpu.matmul %1, %2, %cst {dimension_numbers = #tpu.dot_dimension_numbers<[1], [0], [0], [1], [0, 0, 1, 1], [], []>} : vector<2x2048xbf16>, vector<2048x64xbf16>, vector<2x64xf32> -> vector<2x64xf32>
    %c0_3 = arith.constant 0 : index
    %c0_4 = arith.constant 0 : index
    %4 = vector.load %arg3[%c0_3, %c0_4] : memref<1x64xf32, #tpu.memory_space<vmem>>, vector<1x64xf32>
    %5 = vector.broadcast %4 : vector<1x64xf32> to vector<2x64xf32>
    %6 = arith.addf %3, %5 : vector<2x64xf32>
    %cst_5 = arith.constant 0.000000e+00 : f32
    %7 = vector.broadcast %cst_5 : f32 to vector<2x64xf32>
    %8 = arith.maximumf %6, %7 : vector<2x64xf32>
    %9 = arith.truncf %8 : vector<2x64xf32> to vector<2x64xbf16>
    %c0_6 = arith.constant 0 : index
    %c0_7 = arith.constant 0 : index
    %10 = vector.load %arg4[%c0_6, %c0_7] : memref<64x6144xbf16, #tpu.memory_space<vmem>>, vector<64x6144xbf16>
    %cst_8 = arith.constant dense<0.000000e+00> : vector<2x6144xf32>
    %11 = tpu.matmul %9, %10, %cst_8 {dimension_numbers = #tpu.dot_dimension_numbers<[1], [0], [0], [1], [0, 0, 1, 1], [], []>} : vector<2x64xbf16>, vector<64x6144xbf16>, vector<2x6144xf32> -> vector<2x6144xf32>
    %c0_9 = arith.constant 0 : index
    %c0_10 = arith.constant 0 : index
    %12 = vector.load %arg5[%c0_9, %c0_10] : memref<1x6144xf32, #tpu.memory_space<vmem>>, vector<1x6144xf32>
    %13 = vector.broadcast %12 : vector<1x6144xf32> to vector<2x6144xf32>
    %14 = arith.addf %11, %13 : vector<2x6144xf32>
    %15 = arith.negf %14 : vector<2x6144xf32>
    %16 = math.exp %15 : vector<2x6144xf32>
    %cst_11 = arith.constant 1.000000e+00 : f32
    %17 = vector.broadcast %cst_11 : f32 to vector<2x6144xf32>
    %18 = arith.addf %17, %16 : vector<2x6144xf32>
    %19 = arith.divf %17, %18 : vector<2x6144xf32>
    %c0_12 = arith.constant 0 : index
    %c0_13 = arith.constant 0 : index
    %20 = vector.load %arg6[%c0_12, %c0_13] : memref<2x6144xf32, #tpu.memory_space<vmem>>, vector<2x6144xf32>
    tpu.vector_store %arg6[%c0_12, %c0_13], %19 {strides = array<i32>} : memref<2x6144xf32, #tpu.memory_space<vmem>>, vector<2x6144xf32>,
    return
  }
  func.func @transform_0(%arg0: i32) -> (i32, i32) {
    %c0_i32 = arith.constant 0 : i32
    %c0_i32_0 = arith.constant 0 : i32
    %c0_i32_1 = arith.constant 0 : i32
    return %c0_i32, %c0_i32_0 : i32, i32
  }
  func.func @transform_1(%arg0: i32) -> (i32, i32) {
    %c0_i32 = arith.constant 0 : i32
    %c0_i32_0 = arith.constant 0 : i32
    %c0_i32_1 = arith.constant 0 : i32
    return %c0_i32, %c0_i32_0 : i32, i32
  }
  func.func @transform_2(%arg0: i32) -> (i32, i32) {
    %c0_i32 = arith.constant 0 : i32
    %c0_i32_0 = arith.constant 0 : i32
    %c0_i32_1 = arith.constant 0 : i32
    return %c0_i32, %c0_i32_0 : i32, i32
  }
  func.func @transform_3(%arg0: i32) -> (i32, i32) {
    %c0_i32 = arith.constant 0 : i32
    %c0_i32_0 = arith.constant 0 : i32
    return %c0_i32, %arg0 : i32, i32
  }
  func.func @transform_4(%arg0: i32) -> (i32, i32) {
    %c0_i32 = arith.constant 0 : i32
    %c0_i32_0 = arith.constant 0 : i32
    return %c0_i32, %arg0 : i32, i32
  }
  func.func @transform_5(%arg0: i32) -> (i32, i32) {
    %c0_i32 = arith.constant 0 : i32
    %c0_i32_0 = arith.constant 0 : i32
    return %c0_i32, %arg0 : i32, i32
  }
}

</mosaic_0001>

<bundles_post_ra>
// kernel: forward.2
= control target key start
LH: loop header
LB: loop body
LE: loop exit
PB: predicated region body
PF: predicated region fallthrough
CT: control target
= control target key end

     0   :  { %15 = vsyncpa [#allocation3], 0  ;;  %s3450_s0 = inlined_call_operand.vmem [shape: s32[64,1], index: 0, kind: input, shape index: {}]   ;;  %s3451_s1 = inlined_call_operand.vmem [shape: f32[64,32], index: 1, kind: input, shape index: {}]   ;;  %s3452_s2 = inlined_call_operand.hbm [shape: f32[3,32,64], index: 2, kind: input, shape index: {}]   ;;  %s3453_s3 = inlined_call_operand.hbm [shape: f32[1,64], index: 3, kind: input, shape index: {}]   ;;  %s3454_s4 = inlined_call_operand.hbm [shape: f32[1,64], index: 4, kind: input, shape index: {}]   ;;  %s3455_s5 = inlined_call_operand.hbm [shape: f32[1,64], index: 5, kind: input, shape index: {}]   ;;  %s3456_s6 = inlined_call_operand.hbm [shape: f32[3,64,64], index: 6, kind: input, shape index: {}]   ;;  %s3457_s7 = inlined_call_operand.hbm [shape: f32[1,64], index: 7, kind: input, shape index: {}]   ;;  %s3458_s8 = inlined_call_operand.hbm [shape: f32[1,64], index: 8, kind: input, shape index: {}]   ;;  %s3459_s9 = inlined_call_operand.hbm [shape: f32[1,64], index: 9, kind: input, shape index: {}]   ;;  %s3460_s10 = inlined_call_operand.vmem [shape: f32[64,64], index: 10, kind: output, shape index: {}]  }
   0x1   :  { %16 = vsyncpa [#allocation5], 0 }
   0x2   :  { %17 = vsyncpa [#allocation8], 0 }
   0x3   :  { %18 = vsyncpa [#allocation11], 0 }
   0x4   :  { %19 = vsyncpa [#allocation14], 0  ;;  %s2869_s13 = smov [#allocation4]   ;;  %s2870_s15 = smov [#allocation7]  }
   0x5   :  { %s42_s14 = sshll.u32 %s2869_s13, 4  ;;  %s62_s16 = sshll.u32 %s2870_s15, 4  ;;  %s43_s14 = int_to_ptr.vmem [resolvable:$true] %s42_s14  ;;  %s63_s16 = int_to_ptr.vmem [resolvable:$true] %s62_s16 }
   0x6   :  { %s2683_s19 = scalar_lea.hbm %s3453_s3, 16 }
   0x7   :  { %p2684_p0 = scmp.ne.s32.totalorder %s3453_s3, %s2683_s19  ;;  %p2687_p1 = scmp.lt.u32.totalorder %s2683_s19, %s3453_s3 }
   0x9   :  { %p2689_p2 = pnand %p2687_p1, %p2684_p0 }
   0xb   :  { %2692 = shalt.err (!%p2689_p2)
}
   0xc   :  { %s2693_s24 = scalar_lea.vmem %s43_s14, 16  ;;  %s2697_s25 = scalar_lea.vmem %s43_s14, 32 }
   0xd   :  { %p2694_p3 = scmp.ne.s32.totalorder %s43_s14, %s2693_s24  ;;  %p2698_p4 = scmp.lt.s32.totalorder %s43_s14, %s43_s14 }
   0xe   :  { %p2699_p5 = scmp.lt.s32.totalorder %s2697_s25, %s2693_s24 }
  0x10   :  { %p2700_p6 = por %p2699_p5, %p2698_p4 }
  0x12   :  { %p2701_p7 = pnand %p2700_p6, %p2694_p3 }
  0x14   :  { %2704 = shalt.err (!%p2701_p7)
}
  0x15   :  { %45 = dma.hbm_to_vmem [thread:$0]  %s3453_s3, 16, %s43_s14, [#allocation5]  }
  0x16   :  { %s2705_s30 = scalar_lea.hbm %s3455_s5, 16 }
  0x17   :  { %p2706_p8 = scmp.ne.s32.totalorder %s3455_s5, %s2705_s30  ;;  %p2709_p9 = scmp.lt.u32.totalorder %s2705_s30, %s3455_s5 }
  0x19   :  { %p2711_p10 = pnand %p2709_p9, %p2706_p8 }
  0x1b   :  { %2714 = shalt.err (!%p2711_p10)
}
  0x1c   :  { %s2715_s17 = scalar_lea.vmem %s63_s16, 16  ;;  %s2719_s18 = scalar_lea.vmem %s63_s16, 32 }
  0x1d   :  { %p2716_p11 = scmp.ne.s32.totalorder %s63_s16, %s2715_s17  ;;  %p2720_p12 = scmp.lt.s32.totalorder %s63_s16, %s63_s16 }
  0x1e   :  { %p2721_p13 = scmp.lt.s32.totalorder %s2719_s18, %s2715_s17 }
  0x20   :  { %p2722_p0 = por %p2721_p13, %p2720_p12 }
  0x22   :  { %p2723_p1 = pnand %p2722_p0, %p2716_p11 }
  0x24   :  { %2726 = shalt.err (!%p2723_p1)
}
  0x25   :  { %65 = dma.hbm_to_vmem [thread:$0]  %s3455_s5, 16, %s63_s16, [#allocation8]  }
  0x26   :  { %s2871_s19 = smov [#allocation10]   ;;  %s2872_s21 = smov [#allocation2]  }
  0x27   :  { %s84_s20 = sshll.u32 %s2871_s19, 4  ;;  %s29_s22 = sshll.u32 %s2872_s21, 4  ;;  %s85_s20 = int_to_ptr.vmem [resolvable:$true] %s84_s20  ;;  %s2960_s22 = int_to_ptr.vmem [resolvable:$true] %s29_s22 }
  0x28   :  { %s2727_s25 = scalar_lea.hbm %s3457_s7, 16 }
  0x29   :  { %p2728_p2 = scmp.ne.s32.totalorder %s3457_s7, %s2727_s25  ;;  %p2731_p3 = scmp.lt.u32.totalorder %s2727_s25, %s3457_s7 }
  0x2b   :  { %p2733_p4 = pnand %p2731_p3, %p2728_p2 }
  0x2d   :  { %2736 = shalt.err (!%p2733_p4)
}
  0x2e   :  { %s2737_s5 = scalar_lea.vmem %s85_s20, 16  ;;  %s2741_s16 = scalar_lea.vmem %s85_s20, 32 }
  0x2f   :  { %p2738_p5 = scmp.ne.s32.totalorder %s85_s20, %s2737_s5  ;;  %p2742_p6 = scmp.lt.s32.totalorder %s85_s20, %s85_s20 }
  0x30   :  { %p2743_p7 = scmp.lt.s32.totalorder %s2741_s16, %s2737_s5 }
  0x32   :  { %p2744_p8 = por %p2743_p7, %p2742_p6 }
  0x34   :  { %p2745_p9 = pnand %p2744_p8, %p2738_p5 }
  0x36   :  { %2748 = shalt.err (!%p2745_p9)
}
  0x37   :  { %87 = dma.hbm_to_vmem [thread:$0]  %s3457_s7, 16, %s85_s20, [#allocation11]  }
  0x38   :  { %s2749_s15 = scalar_lea.hbm %s3452_s2, 1536 }
  0x39   :  { %p2750_p10 = scmp.ne.s32.totalorder %s3452_s2, %s2749_s15  ;;  %p2753_p11 = scmp.lt.u32.totalorder %s2749_s15, %s3452_s2 }
  0x3b   :  { %p2755_p12 = pnand %p2753_p11, %p2750_p10 }
  0x3d   :  { %2758 = shalt.err (!%p2755_p12)
}
  0x3e   :  { %s2759_s19 = scalar_lea.vmem %s2960_s22, 1536  ;;  %p2764_p0 = scmp.lt.s32.totalorder %s2960_s22, %s2960_s22 }
  0x3f   :  { %p2760_p13 = scmp.ne.s32.totalorder %s2960_s22, %s2759_s19  ;;  %p2765_p1 = scmp.lt.s32.totalorder %s2759_s19, %s2759_s19 }
  0x41   :  { %p2766_p2 = por %p2765_p1, %p2764_p0 }
  0x43   :  { %p2767_p3 = pnand %p2766_p2, %p2760_p13 }
  0x45   :  { %2770 = shalt.err (!%p2767_p3)
}
  0x46   :  { %s2873_s7 = smov 128   ;;  %s2874_s20 = smov 8  }
  0x47   :  { %35 = dma.hbm_to_vmem [thread:$0]  %s3452_s2, 1536, %s2960_s22, [#allocation3], %s2873_s7, %s2873_s7, %s2874_s20  }
  0x48   :  { %s2875_s24 = smov [#allocation6]   ;;  %s2876_s26 = smov [#allocation9]  }
  0x49   :  { %s52_s25 = sshll.u32 %s2875_s24, 4  ;;  %s71_s27 = sshll.u32 %s2876_s26, 4  ;;  %s53_s25 = int_to_ptr.vmem [resolvable:$true] %s52_s25  ;;  %s2994_s27 = int_to_ptr.vmem [resolvable:$true] %s71_s27 }
  0x4a   :  { %s2771_s5 = scalar_lea.hbm %s3454_s4, 16 }
  0x4b   :  { %p2772_p4 = scmp.ne.s32.totalorder %s3454_s4, %s2771_s5  ;;  %p2775_p5 = scmp.lt.u32.totalorder %s2771_s5, %s3454_s4 }
  0x4d   :  { %p2777_p6 = pnand %p2775_p5, %p2772_p4 }
  0x4f   :  { %2780 = shalt.err (!%p2777_p6)
}
  0x50   :  { %s2781_s2 = scalar_lea.vmem %s53_s25, 16  ;;  %s2785_s22 = scalar_lea.vmem %s53_s25, 32 }
  0x51   :  { %p2782_p7 = scmp.ne.s32.totalorder %s53_s25, %s2781_s2  ;;  %p2786_p8 = scmp.lt.s32.totalorder %s53_s25, %s53_s25 }
  0x52   :  { %p2787_p9 = scmp.lt.s32.totalorder %s2785_s22, %s2781_s2 }
  0x54   :  { %p2788_p10 = por %p2787_p9, %p2786_p8 }
  0x56   :  { %p2789_p11 = pnand %p2788_p10, %p2782_p7 }
  0x58   :  { %2792 = shalt.err (!%p2789_p11)
}
  0x59   :  { %55 = dma.hbm_to_vmem [thread:$0]  %s3454_s4, 16, %s53_s25, [#allocation5]  }
  0x5a   :  { %s2793_s3 = scalar_lea.hbm %s3456_s6, 3072 }
  0x5b   :  { %p2794_p12 = scmp.ne.s32.totalorder %s3456_s6, %s2793_s3  ;;  %p2797_p13 = scmp.lt.u32.totalorder %s2793_s3, %s3456_s6 }
  0x5d   :  { %p2799_p0 = pnand %p2797_p13, %p2794_p12 }
  0x5f   :  { %2802 = shalt.err (!%p2799_p0)
}
  0x60   :  { %s2803_s24 = scalar_lea.vmem %s2994_s27, 3072  ;;  %p2808_p2 = scmp.lt.s32.totalorder %s2994_s27, %s2994_s27 }
  0x61   :  { %p2804_p1 = scmp.ne.s32.totalorder %s2994_s27, %s2803_s24  ;;  %p2809_p3 = scmp.lt.s32.totalorder %s2803_s24, %s2803_s24 }
  0x63   :  { %p2810_p4 = por %p2809_p3, %p2808_p2 }
  0x65   :  { %p2811_p5 = pnand %p2810_p4, %p2804_p1 }
  0x67   :  { %2814 = shalt.err (!%p2811_p5)
}
  0x68   :  { %77 = dma.hbm_to_vmem [thread:$0]  %s3456_s6, 3072, %s2994_s27, [#allocation8], %s2873_s7, %s2873_s7, %s2874_s20  }
  0x69   :  { %s2877_s26 = smov [#allocation12]   ;;  %s2878_s29 = smov [#allocation13]  }
  0x6a   :  { %s94_s28 = sshll.u32 %s2877_s26, 4  ;;  %s104_s5 = sshll.u32 %s2878_s29, 4  ;;  %s95_s28 = int_to_ptr.vmem [resolvable:$true] %s94_s28  ;;  %s105_s5 = int_to_ptr.vmem [resolvable:$true] %s104_s5 }
  0x6b   :  { %s2815_s11 = scalar_lea.hbm %s3458_s8, 16 }
  0x6c   :  { %p2816_p6 = scmp.ne.s32.totalorder %s3458_s8, %s2815_s11  ;;  %p2819_p7 = scmp.lt.u32.totalorder %s2815_s11, %s3458_s8 }
  0x6e   :  { %p2821_p8 = pnand %p2819_p7, %p2816_p6 }
  0x70   :  { %2824 = shalt.err (!%p2821_p8)
}
  0x71   :  { %s2825_s6 = scalar_lea.vmem %s95_s28, 16  ;;  %s2829_s7 = scalar_lea.vmem %s95_s28, 32 }
  0x72   :  { %p2826_p9 = scmp.ne.s32.totalorder %s95_s28, %s2825_s6  ;;  %p2830_p10 = scmp.lt.s32.totalorder %s95_s28, %s95_s28 }
  0x73   :  { %p2831_p11 = scmp.lt.s32.totalorder %s2829_s7, %s2825_s6 }
  0x75   :  { %p2832_p12 = por %p2831_p11, %p2830_p10 }
  0x77   :  { %p2833_p13 = pnand %p2832_p12, %p2826_p9 }
  0x79   :  { %2836 = shalt.err (!%p2833_p13)
}
  0x7a   :  { %97 = dma.hbm_to_vmem [thread:$0]  %s3458_s8, 16, %s95_s28, [#allocation11]  }
  0x7b   :  { %s2837_s18 = scalar_lea.hbm %s3459_s9, 16 }
  0x7c   :  { %p2838_p0 = scmp.ne.s32.totalorder %s3459_s9, %s2837_s18  ;;  %p2841_p1 = scmp.lt.u32.totalorder %s2837_s18, %s3459_s9 }
  0x7e   :  { %p2843_p2 = pnand %p2841_p1, %p2838_p0 }
  0x80   :  { %2846 = shalt.err (!%p2843_p2)
}
  0x81   :  { %s2847_s23 = scalar_lea.vmem %s105_s5, 16  ;;  %s2851_s24 = scalar_lea.vmem %s105_s5, 32 }
  0x82   :  { %p2848_p3 = scmp.ne.s32.totalorder %s105_s5, %s2847_s23  ;;  %p2852_p4 = scmp.lt.s32.totalorder %s105_s5, %s105_s5 }
  0x83   :  { %p2853_p5 = scmp.lt.s32.totalorder %s2851_s24, %s2847_s23 }
  0x85   :  { %p2854_p6 = por %p2853_p5, %p2852_p4 }
  0x87   :  { %p2855_p7 = pnand %p2854_p6, %p2848_p3 }
  0x89   :  { %2858 = shalt.err (!%p2855_p7)
}
  0x8a   :  { %107 = dma.hbm_to_vmem [thread:$0]  %s3459_s9, 16, %s105_s5, [#allocation14]  }
  0x8b   :  { %2859 = dma.done.wait [#allocation3], 1536  }
  0x8c   :  { %2860 = vsyncadd [#allocation3], 4294965760 }
  0x8d   :  { %2861 = dma.done.wait [#allocation5], 32  }
  0x8e   :  { %2862 = vsyncadd [#allocation5], 4294967264 }
  0x8f   :  { %2863 = dma.done.wait [#allocation8], 3088  }
  0x90   :  { %2864 = vsyncadd [#allocation8], 4294964208 }
  0x91   :  { %2865 = dma.done.wait [#allocation11], 32  }
  0x92   :  { %2866 = vsyncadd [#allocation11], 4294967264 }
  0x93   :  { %2867 = dma.done.wait [#allocation14], 16  }
  0x94   :  { %2868 = vsyncadd [#allocation14], 4294967280  ;;  %v2879_v0 = vmov 0   ;;  %v134_v1 = vld [vmem:[%s3450_s0 + $0x10] sm:$0xff]  ;;  %v132_v2 = vld [vmem:[%s3450_s0] sm:$0xff]  ;;  %v140_v21 = vlaneseq  ;;  %vm190_vm0 = vcmask 523264  }
  0x95   :  { %2682 = vset.pattern.permute.xlu1 %v2879_v0  ;;  %2681 = vset.pattern.permute.xlu0 %v2879_v0  ;;  %v135_v3 = vld [vmem:[%s3450_s0 + $0x18] sm:$0xff]  ;;  %v133_v4 = vld [vmem:[%s3450_s0 + $0x8] sm:$0xff]  ;;  %v182_v5 = vld [vmem:[%s3451_s1] sm:$0xff]  ;;  %v2880_v25 = vmov 0.0  }
  0x96   :  { %149 = vperm.xlu1 %2682, %v134_v1   ;;  %143 = vperm.xlu0 %2681, %v132_v2   ;;  %v183_v6 = vld [vmem:[%s3451_s1 + $0x8] sm:$0xff]  ;;  %v184_v7 = vld [vmem:[%s3451_s1 + $0x10] sm:$0xff]  ;;  %v185_v8 = vld [vmem:[%s3451_s1 + $0x18] sm:$0xff]  ;;  %v3100_v22 = vand.u32 127, %v140_v21  ;;  %v3126_v40 = vshrl.u32 %v140_v21, 7 }
  0x97   :  { %v2477_v9 = vpack.c.bf16 %v183_v6, %v182_v5  ;;  %v2481_v10 = vpack.c.bf16 %v185_v8, %v184_v7  ;;  %v186_v11 = vld [vmem:[%s3451_s1 + $0x20] sm:$0xff]  ;;  %v187_v12 = vld [vmem:[%s3451_s1 + $0x28] sm:$0xff]  ;;  %v188_v16 = vld [vmem:[%s3451_s1 + $0x30] sm:$0xff] }
  0x98   :  { %v137_v13 = vld [vmem:[%s3450_s0 + $0x28] sm:$0xff]  ;;  %v136_v14 = vld [vmem:[%s3450_s0 + $0x20] sm:$0xff]  ;;  %v2485_v15 = vpack.c.bf16 %v187_v12, %v186_v11  ;;  %v189_v17 = vld [vmem:[%s3451_s1 + $0x38] sm:$0xff]  ;;  %v333_v41 = vand.u32 31, %v3126_v40  ;;  %v1935_v42 = vadd.s32 4294967295, %v3126_v40  ;;  %v465_v44 = vadd.s32 1, %v3126_v40 }
  0x99   :  { %2478 = vmatprep.subr.bf16.mxu1 %v2477_v9  ;;  %v139_v18 = vld [vmem:[%s3450_s0 + $0x38] sm:$0xff]  ;;  %v138_v19 = vld [vmem:[%s3450_s0 + $0x30] sm:$0xff]  ;;  %v2489_v20 = vpack.c.bf16 %v189_v17, %v188_v16  ;;  %v322_v50 = vadd.s32 8, %v3126_v40  ;;  %v323_v52 = vadd.s32 16, %v3126_v40  ;;  %v325_v53 = vadd.s32 32, %v3126_v40  ;;  %v768_v0 = vld [vmem:[#allocation2 + $0x20] sm:$0xff] }
  0x9a   :  { %152 = vperm.xlu1 %2682, %v135_v3   ;;  %146 = vperm.xlu0 %2681, %v133_v4   ;;  %vm433_vm9 = vcmp.eq.s32.totalorder %v3100_v22, %v1935_v42  ;;  %vm441_vm10 = vcmp.ne.s32.totalorder %v333_v41, 0  ;;  %vm473_vm12 = vcmp.eq.s32.totalorder %v3100_v22, %v465_v44  ;;  %v324_v57 = vadd.s32 24, %v3126_v40  ;;  %v769_v1 = vld [vmem:[#allocation2 + $0x28] sm:$0xff] }
  0x9b   :  { %2480 = vmatpush3.bf16.msra.mxu1 %v2477_v9  ;;  %vm449_vm11 = vmand %vm433_vm9, %vm441_vm10  ;;  %v3139_v45 = vsel %vm473_vm12, 1.0, %v2880_v25  ;;  %v1936_v56 = vadd.s32 4294967295, %v322_v50  ;;  %v1937_v59 = vadd.s32 4294967295, %v323_v52  ;;  %v361_v60 = vand.u32 31, %v325_v53 }
  0x9c   :  { %2482 = vmatprep.subr.bf16.mxu1 %v2481_v10  ;;  %v3132_v43 = vsel %vm449_vm11, 1.0, %v2880_v25  ;;  %2265 = vmatprep.mubr.msk.f32.mxu0 %vm190_vm0, %v3139_v45  ;;  %v1939_v61 = vadd.s32 4294967295, %v325_v53  ;;  %v466_v63 = vadd.s32 1, %v322_v50  ;;  %v354_v2 = vand.u32 31, %v324_v57 }
  0x9d   :  { %v468_v3 = vadd.s32 1, %v324_v57  ;;  %vm434_vm13 = vcmp.eq.s32.totalorder %v3100_v22, %v1936_v56  ;;  %v1938_v5 = vadd.s32 4294967295, %v324_v57  ;;  %v467_v6 = vadd.s32 1, %v323_v52  ;;  %v765_v52 = vld [vmem:[#allocation2 + $0x10] sm:$0xff] }
  0x9e   :  { %158 = vperm.xlu1 %2682, %v137_v13   ;;  %155 = vperm.xlu0 %2681, %v136_v14   ;;  %vm435_vm14 = vcmp.eq.s32.totalorder %v3100_v22, %v1937_v59  ;;  %vm437_vm15 = vcmp.eq.s32.totalorder %v3100_v22, %v1939_v61  ;;  %v326_v9 = vadd.s32 40, %v3126_v40  ;;  %v2525_v11 = vpack.c.bf16 %v769_v1, %v768_v0  ;;  %v770_v13 = vld [vmem:[#allocation2 + $0x30] sm:$0xff]  ;;  %v771_v14 = vld [vmem:[#allocation2 + $0x38] sm:$0xff] }
  0x9f   :  { %2484 = vmatpush3.bf16.msra.mxu1 %v2481_v10  ;;  %v327_v12 = vadd.s32 48, %v3126_v40  ;;  %v3189_v16 = vsel %vm434_vm13, 1.0, %v2880_v25  ;;  %v469_v17 = vadd.s32 1, %v325_v53  ;;  %v328_v21 = vadd.s32 56, %v3126_v40  ;;  %v766_v53 = vld [vmem:[#allocation2 + $0x18] sm:$0xff] }
  0xa0   :  { %2486 = vmatprep.subr.bf16.mxu1 %v2485_v15 }
  0xa1   :  { %vm477_vm9 = vcmp.eq.s32.totalorder %v3100_v22, %v469_v17 }
  0xa2   :  { %164 = vperm.xlu1 %2682, %v139_v18   ;;  %161 = vperm.xlu0 %2681, %v138_v19   ;;  %v3195_v18 = vsel %vm435_vm14, 1.0, %v2880_v25  ;;  %v3251_v40 = vsel %vm477_vm9, 1.0, %v2880_v25 }
  0xa3   :  { %2488 = vmatpush3.bf16.msra.mxu1 %v2485_v15 }
  0xa4   :  { %2490 = vmatprep.subr.bf16.mxu1 %v2489_v20 }
  0xa7   :  { %2492 = vmatpush3.bf16.msra.mxu1 %v2489_v20  ;;  %v1940_v20 = vadd.s32 4294967295, %v326_v9 }
  0xa9   :  { %vm438_vm10 = vcmp.eq.s32.totalorder %v3100_v22, %v1940_v20 }
  0xaa   :  { %v3264_v41 = vsel %vm438_vm10, 1.0, %v2880_v25 }
 0x115   :  { %v150_v23 = vpop.permute.xlu1 %149  ;;  %v144_v24 = vpop.permute.xlu0 %143 }
 0x116   :  { %vm166_vm1 = vcmp.eq.s32.totalorder %v144_v24, %v3100_v22  ;;  %vm168_vm2 = vcmp.eq.s32.totalorder %v150_v23, %v3100_v22  ;;  %v1941_v24 = vadd.s32 4294967295, %v327_v12 }
 0x117   :  { %v174_v26 = vsel %vm166_vm1, 1.0, %v2880_v25  ;;  %v176_v29 = vsel %vm168_vm2, 1.0, %v2880_v25  ;;  %vm3172_vm1 = vcmp.ne.s32.totalorder %v361_v60, 0  ;;  %vm474_vm2 = vcmp.eq.s32.totalorder %v3100_v22, %v466_v63 }
 0x118   :  { %2209 = vmatprep.mubr.msk.f32.mxu1 %vm190_vm0, %v174_v26  ;;  %v3209_v23 = vsel %vm474_vm2, 1.0, %v2880_v25  ;;  %v2529_v26 = vpack.c.bf16 %v771_v14, %v770_v13  ;;  %vm439_vm11 = vcmp.eq.s32.totalorder %v3100_v22, %v1941_v24  ;;  %v1985_v14 = vld [vmem:[#allocation7] ss:$0 sm:$0xff] }
 0x119   :  { %v153_v27 = vpop.permute.xlu1 %152  ;;  %v147_v28 = vpop.permute.xlu0 %146  ;;  %v3272_v44 = vsel %vm439_vm11, 1.0, %v2880_v25 }
 0x11a   :  { %vm167_vm3 = vcmp.eq.s32.totalorder %v147_v28, %v3100_v22  ;;  %vm169_vm4 = vcmp.eq.s32.totalorder %v153_v27, %v3100_v22  ;;  %v470_v28 = vadd.s32 1, %v326_v9 }
 0x11b   :  { %v175_v30 = vsel %vm167_vm3, 1.0, %v2880_v25  ;;  %v177_v33 = vsel %vm169_vm4, 1.0, %v2880_v25  ;;  %vm476_vm3 = vcmp.eq.s32.totalorder %v3100_v22, %v468_v3  ;;  %vm3182_vm4 = vcmp.ne.s32.totalorder %v354_v2, 31 }
 0x11c   :  { %2210 = vmatmul.mubr.msk.f32.vlgmr.msra.gmra.mrb[0].mxu1 %vm190_vm0, %v175_v30  ;;  %v471_v30 = vadd.s32 1, %v327_v12  ;;  %vm478_vm12 = vcmp.eq.s32.totalorder %v3100_v22, %v470_v28 }
 0x11d   :  { %v159_v31 = vpop.permute.xlu1 %158  ;;  %2212 = vmatprep.mubr.msk.f32.mxu1 %vm190_vm0, %v176_v29  ;;  %v156_v32 = vpop.permute.xlu0 %155  ;;  %v3267_v42 = vsel %vm478_vm12, 1.0, %v2880_v25 }
 0x11e   :  { %vm170_vm5 = vcmp.eq.s32.totalorder %v156_v32, %v3100_v22  ;;  %vm171_vm6 = vcmp.eq.s32.totalorder %v159_v31, %v3100_v22  ;;  %v382_v31 = vand.u32 31, %v328_v21  ;;  %v472_v32 = vadd.s32 1, %v328_v21 }
 0x11f   :  { %v178_v34 = vsel %vm170_vm5, 1.0, %v2880_v25  ;;  %v179_v37 = vsel %vm171_vm6, 1.0, %v2880_v25  ;;  %vm475_vm5 = vcmp.eq.s32.totalorder %v3100_v22, %v467_v6  ;;  %vm3201_vm6 = vmand %vm437_vm15, %vm3172_vm1  ;;  %vm479_vm13 = vcmp.eq.s32.totalorder %v3100_v22, %v471_v30 }
 0x120   :  { %2213 = vmatmul.mubr.msk.f32.gmra.mrb[2].mxu1 %vm190_vm0, %v177_v33  ;;  %v3221_v29 = vsel %vm475_vm5, 1.0, %v2880_v25  ;;  %v763_v33 = vld [vmem:[#allocation2] sm:$0xff]  ;;  %vm480_vm14 = vcmp.eq.s32.totalorder %v3100_v22, %v472_v32  ;;  %vm488_vm15 = vcmp.ne.s32.totalorder %v382_v31, 31 }
 0x121   :  { %v165_v35 = vpop.permute.xlu1 %164  ;;  %2215 = vmatprep.mubr.msk.f32.mxu1 %vm190_vm0, %v178_v34  ;;  %v162_v36 = vpop.permute.xlu0 %161  ;;  %v764_v34 = vld [vmem:[#allocation2 + $0x8] sm:$0xff]  ;;  %vm496_vm2 = vmand %vm480_vm14, %vm488_vm15 }
 0x122   :  { %vm172_vm7 = vcmp.eq.s32.totalorder %v162_v36, %v3100_v22  ;;  %vm173_vm8 = vcmp.eq.s32.totalorder %v165_v35, %v3100_v22  ;;  %v3238_v36 = vsel %vm3201_vm6, 1.0, %v2880_v25 }
 0x123   :  { %v180_v38 = vsel %vm172_vm7, 1.0, %v2880_v25  ;;  %v181_v39 = vsel %vm173_vm8, 1.0, %v2880_v25  ;;  %vm436_vm7 = vcmp.eq.s32.totalorder %v3100_v22, %v1938_v5  ;;  %vm3216_vm8 = vmand %vm476_vm3, %vm3182_vm4  ;;  %vm772_vm3 = vcmask 261120  }
 0x124   :  { %2216 = vmatmul.mubr.msk.f32.gmra.mrb[4].mxu1 %vm190_vm0, %v179_v37  ;;  %v3233_v35 = vsel %vm436_vm7, 1.0, %v2880_v25  ;;  %v3244_v37 = vsel %vm3216_vm8, 1.0, %v2880_v25 }
 0x125   :  { %2218 = vmatprep.mubr.msk.f32.mxu1 %vm190_vm0, %v180_v38  ;;  %v1942_v38 = vadd.s32 4294967295, %v328_v21 }
 0x127   :  { %vm440_vm1 = vcmp.eq.s32.totalorder %v3100_v22, %v1942_v38  ;;  %v3292_v22 = vsel %vm496_vm2, 1.0, %v2880_v25 }
 0x128   :  { %2219 = vmatmul.mubr.msk.f32.gmra.mrb[6].mxu1 %vm190_vm0, %v181_v39  ;;  %v2533_v39 = vpack.c.bf16 %v764_v34, %v763_v33  ;;  %v3287_v50 = vsel %vm440_vm1, 1.0, %v2880_v25 }
 0x129   :  { %2237 = vmatprep.mubr.msk.f32.mxu1 %vm190_vm0, %v3132_v43 }
 0x1ef   :  { %v3143_v46 = vpop.f32.mrb[0].mxu1 }
 0x1f0   :  { %v3145_v47 = vpop.f32.mrb[1].mxu1 }
 0x1f1   :  { %v2493_v48 = vpack.c.bf16 %v3143_v46, %v3145_v47 }
 0x1f3   :  { %v3149_v49 = vpop.f32.mrb[2].mxu1  ;;  %2494 = vmatprep.subr.bf16.mxu1 %v2493_v48  ;;  %2510 = vmatprep.subr.bf16.mxu0 %v2493_v48 }
 0x1f4   :  { %v3152_v51 = vpop.f32.mrb[3].mxu1  ;;  %2496 = vmatpush3.bf16.msra.mxu1 %v2493_v48  ;;  %2512 = vmatpush3.bf16.msra.mxu0 %v2493_v48  ;;  %v3278_v48 = vsel %vm479_vm13, 1.0, %v2880_v25  ;;  %v1032_v25 = vld [vmem:[#allocation2 + $0x40] sm:$0xff] }
 0x1f5   :  { %v2497_v54 = vpack.c.bf16 %v3149_v49, %v3152_v51 }
 0x1f7   :  { %v3158_v55 = vpop.f32.mrb[4].mxu1  ;;  %2498 = vmatprep.subr.bf16.mxu1 %v2497_v54  ;;  %2514 = vmatprep.subr.bf16.mxu0 %v2497_v54 }
 0x1f8   :  { %v3161_v58 = vpop.f32.mrb[5].mxu1  ;;  %2500 = vmatpush3.bf16.msra.mxu1 %v2497_v54  ;;  %2516 = vmatpush3.bf16.msra.mxu0 %v2497_v54  ;;  %v2537_v54 = vpack.c.bf16 %v766_v53, %v765_v52 }
 0x1f9   :  { %v2501_v62 = vpack.c.bf16 %v3158_v55, %v3161_v58 }
 0x1fb   :  { %v3165_v4 = vpop.f32.mrb[6].mxu1  ;;  %2502 = vmatprep.subr.bf16.mxu1 %v2501_v62  ;;  %2518 = vmatprep.subr.bf16.mxu0 %v2501_v62 }
 0x1fc   :  { %v3168_v7 = vpop.f32.mrb[7].mxu1  ;;  %2504 = vmatpush3.bf16.msra.mxu1 %v2501_v62  ;;  %2520 = vmatpush3.bf16.msra.mxu0 %v2501_v62 }
 0x1fd   :  { %v2505_v10 = vpack.c.bf16 %v3165_v4, %v3168_v7 }
 0x1ff   :  { %2506 = vmatprep.subr.bf16.mxu1 %v2505_v10  ;;  %2522 = vmatprep.subr.bf16.mxu0 %v2505_v10 }
 0x200   :  { %2508 = vmatpush3.bf16.msra.mxu1 %v2505_v10  ;;  %2524 = vmatpush3.bf16.msra.mxu0 %v2505_v10 }
 0x201   :  { %2526 = vmatprep.subr.bf16.mxu1 %v2525_v11 }
 0x203   :  { %2238 = vmatmul.mubr.msk.f32.vlgmr.msra.gmra.mrb[8].mxu1 %vm190_vm0, %v3189_v16  ;;  %2266 = vmatmul.mubr.msk.f32.vlgmr.msra.gmra.mrb[0].mxu0 %vm190_vm0, %v3209_v23 }
 0x204   :  { %2240 = vmatprep.mubr.msk.f32.mxu1 %vm190_vm0, %v3195_v18  ;;  %2528 = vmatpush3.bf16.msra.mxu1 %v2525_v11  ;;  %v1984_v11 = vld [vmem:[#allocation6] ss:$0 sm:$0xff] }
 0x205   :  { %2530 = vmatprep.subr.bf16.mxu1 %v2529_v26  ;;  %2268 = vmatprep.mubr.msk.f32.mxu0 %vm190_vm0, %v3221_v29 }
 0x207   :  { %2241 = vmatmul.mubr.msk.f32.gmra.mrb[10].mxu1 %vm190_vm0, %v3233_v35  ;;  %2269 = vmatmul.mubr.msk.f32.gmra.mrb[2].mxu0 %vm190_vm0, %v3244_v37 }
 0x208   :  { %2243 = vmatprep.mubr.msk.f32.mxu1 %vm190_vm0, %v3238_v36  ;;  %2532 = vmatpush3.bf16.msra.mxu1 %v2529_v26 }
 0x209   :  { %2271 = vmatprep.mubr.msk.f32.mxu0 %vm190_vm0, %v3251_v40  ;;  %2534 = vmatprep.subr.bf16.mxu1 %v2533_v39 }
 0x20b   :  { %2244 = vmatmul.mubr.msk.f32.gmra.mrb[12].mxu1 %vm190_vm0, %v3264_v41  ;;  %2272 = vmatmul.mubr.msk.f32.gmra.mrb[4].mxu0 %vm190_vm0, %v3267_v42 }
 0x20c   :  { %2246 = vmatprep.mubr.msk.f32.mxu1 %vm190_vm0, %v3272_v44  ;;  %2274 = vmatprep.mubr.msk.f32.mxu0 %vm190_vm0, %v3278_v48 }
 0x20f   :  { %2247 = vmatmul.mubr.msk.f32.gmra.mrb[14].mxu1 %vm190_vm0, %v3287_v50  ;;  %2275 = vmatmul.mubr.msk.f32.gmra.mrb[6].mxu0 %vm190_vm0, %v3292_v22 }
 0x210   :  { %2285 = vmatprep.mubr.msk.f32.mxu1 %vm772_vm3, %v3145_v47  ;;  %2353 = vmatprep.mubr.msk.f32.mxu0 %vm190_vm0, %v3132_v43  ;;  %v1033_v43 = vld [vmem:[#allocation2 + $0x48] sm:$0xff]  ;;  %v1034_v47 = vld [vmem:[#allocation2 + $0x50] sm:$0xff] }
 0x213   :  { %2286 = vmatmul.mubr.msk.f32.vlgmr.msra.gmra.mrb[16].mxu1 %vm772_vm3, %v3143_v46  ;;  %v2541_v46 = vpack.c.bf16 %v1033_v43, %v1032_v25 }
 0x214   :  { %2288 = vmatprep.mubr.msk.f32.mxu1 %vm772_vm3, %v3152_v51  ;;  %2536 = vmatpush3.bf16.msra.mxu1 %v2533_v39  ;;  %v1035_v51 = vld [vmem:[#allocation2 + $0x58] sm:$0xff] }
 0x215   :  { %2538 = vmatprep.subr.bf16.mxu1 %v2537_v54 }
 0x217   :  { %2289 = vmatmul.mubr.msk.f32.gmra.mrb[18].mxu1 %vm772_vm3, %v3149_v49 }
 0x218   :  { %2291 = vmatprep.mubr.msk.f32.mxu1 %vm772_vm3, %v3161_v58  ;;  %2540 = vmatpush3.bf16.msra.mxu1 %v2537_v54  ;;  %v2545_v58 = vpack.c.bf16 %v1035_v51, %v1034_v47 }
 0x219   :  { %2542 = vmatprep.subr.bf16.mxu1 %v2541_v46 }
 0x21b   :  { %2292 = vmatmul.mubr.msk.f32.gmra.mrb[20].mxu1 %vm772_vm3, %v3158_v55 }
 0x21c   :  { %2294 = vmatprep.mubr.msk.f32.mxu1 %vm772_vm3, %v3168_v7  ;;  %v1983_v7 = vld [vmem:[#allocation4] ss:$0 sm:$0xff] }
 0x21f   :  { %2295 = vmatmul.mubr.msk.f32.gmra.mrb[22].mxu1 %vm772_vm3, %v3165_v4 }
 0x2d6   :  { %v2239_v49 = vpop.f32.mrb[8].mxu1  ;;  %v2267_v56 = vpop.f32.mrb[0].mxu0 }
 0x2d7   :  { %v595_v57 = vpop.f32.mrb[9].mxu1  ;;  %v724_v59 = vpop.f32.mrb[1].mxu0 }
 0x2d8   :  { %2305 = vmatprep.mubr.msk.f32.mxu1 %vm772_vm3, %v595_v57 }
 0x2d9   :  { %2306 = vmatmul.mubr.msk.f32.vlgmr.msra.gmra.mrb[16].mxu1 %vm772_vm3, %v2239_v49 }
 0x2da   :  { %v2242_v55 = vpop.f32.mrb[10].mxu1  ;;  %2544 = vmatpush3.bf16.msra.mxu1 %v2541_v46  ;;  %v2270_v60 = vpop.f32.mrb[2].mxu0 }
 0x2db   :  { %v605_v61 = vpop.f32.mrb[11].mxu1  ;;  %2546 = vmatprep.subr.bf16.mxu1 %v2545_v58  ;;  %v734_v62 = vpop.f32.mrb[3].mxu0 }
 0x2dc   :  { %2308 = vmatprep.mubr.msk.f32.mxu1 %vm772_vm3, %v605_v61 }
 0x2dd   :  { %2309 = vmatmul.mubr.msk.f32.gmra.mrb[18].mxu1 %vm772_vm3, %v2242_v55 }
 0x2de   :  { %v2245_v63 = vpop.f32.mrb[12].mxu1  ;;  %2548 = vmatpush3.bf16.msra.mxu1 %v2545_v58  ;;  %v2273_v0 = vpop.f32.mrb[4].mxu0 }
 0x2df   :  { %v615_v1 = vpop.f32.mrb[13].mxu1  ;;  %v744_v2 = vpop.f32.mrb[5].mxu0 }
 0x2e0   :  { %2311 = vmatprep.mubr.msk.f32.mxu1 %vm772_vm3, %v615_v1 }
 0x2e1   :  { %2312 = vmatmul.mubr.msk.f32.gmra.mrb[20].mxu1 %vm772_vm3, %v2245_v63 }
 0x2e2   :  { %v2248_v3 = vpop.f32.mrb[14].mxu1  ;;  %v2276_v4 = vpop.f32.mrb[6].mxu0 }
 0x2e3   :  { %v625_v5 = vpop.f32.mrb[15].mxu1  ;;  %v754_v6 = vpop.f32.mrb[7].mxu0 }
 0x2e4   :  { %2314 = vmatprep.mubr.msk.f32.mxu1 %vm772_vm3, %v625_v5  ;;  %v1445_v5 = vld [vmem:[#allocation9 + $0x40] sm:$0xff] }
 0x2e5   :  { %2315 = vmatmul.mubr.msk.f32.gmra.mrb[22].mxu1 %vm772_vm3, %v2248_v3 }
 0x2e6   :  { %2325 = vmatprep.mubr.msk.f32.mxu1 %vm772_vm3, %v724_v59 }
 0x2e9   :  { %2326 = vmatmul.mubr.msk.f32.vlgmr.msra.gmra.mrb[16].mxu1 %vm772_vm3, %v2267_v56 }
 0x2ea   :  { %2328 = vmatprep.mubr.msk.f32.mxu1 %vm772_vm3, %v734_v62 }
 0x2ed   :  { %2329 = vmatmul.mubr.msk.f32.gmra.mrb[18].mxu1 %vm772_vm3, %v2270_v60 }
 0x2ee   :  { %2331 = vmatprep.mubr.msk.f32.mxu1 %vm772_vm3, %v744_v2 }
 0x2f1   :  { %2332 = vmatmul.mubr.msk.f32.gmra.mrb[20].mxu1 %vm772_vm3, %v2273_v0 }
 0x2f2   :  { %2334 = vmatprep.mubr.msk.f32.mxu1 %vm772_vm3, %v754_v6  ;;  %v1446_v6 = vld [vmem:[#allocation9 + $0x48] sm:$0xff] }
 0x2f5   :  { %2335 = vmatmul.mubr.msk.f32.gmra.mrb[22].mxu1 %vm772_vm3, %v2276_v4 }
 0x3bc   :  { %v2327_v8 = vpop.f32.mrb[16].mxu1 }
 0x3bd   :  { %v1181_v9 = vadd.f32 %v2327_v8, %v1983_v7  ;;  %v1126_v10 = vpop.f32.mrb[17].mxu1  ;;  %v1450_v8 = vld [vmem:[#allocation9 + $0x68] sm:$0xff] }
 0x3be   :  { %v1180_v12 = vadd.f32 %v1983_v7, %v1126_v10  ;;  %v1437_v10 = vld [vmem:[#allocation9 + $0x8] sm:$0xff] }
 0x3bf   :  { %v1189_v13 = vmax.f32 %v1181_v9, 0.0  ;;  %v1452_v9 = vld [vmem:[#allocation9 + $0x78] sm:$0xff] }
 0x3c0   :  { %v1188_v15 = vmax.f32 %v1180_v12, 0.0  ;;  %v2330_v17 = vpop.f32.mrb[18].mxu1  ;;  %v1441_v12 = vld [vmem:[#allocation9 + $0x28] sm:$0xff] }
 0x3c1   :  { %v1204_v19 = vmul.f32 %v1984_v11, %v1189_v13  ;;  %v1183_v20 = vadd.f32 %v2330_v17, %v1983_v7  ;;  %v1136_v21 = vpop.f32.mrb[19].mxu1  ;;  %v1443_v13 = vld [vmem:[#allocation9 + $0x38] sm:$0xff] }
 0x3c2   :  { %v1203_v24 = vmul.f32 %v1984_v11, %v1188_v15  ;;  %v1182_v26 = vadd.f32 %v1983_v7, %v1136_v21  ;;  %v1713_v15 = vld [vmem:[#allocation9 + $0x88] sm:$0xff] }
 0x3c3   :  { %v3332_v27 = vadd.f32 %v1985_v14, %v1204_v19  ;;  %v1191_v28 = vmax.f32 %v1183_v20, 0.0  ;;  %v1714_v19 = vld [vmem:[#allocation9 + $0x90] sm:$0xff]  ;;  %v1715_v20 = vld [vmem:[#allocation9 + $0x98] sm:$0xff] }
 0x3c4   :  { %v3334_v30 = vadd.f32 %v1985_v14, %v1203_v24  ;;  %v1190_v31 = vmax.f32 %v1182_v26, 0.0  ;;  %v2333_v32 = vpop.f32.mrb[20].mxu1  ;;  %v2617_v21 = vpack.c.bf16 %v1715_v20, %v1714_v19  ;;  %v1716_v24 = vld [vmem:[#allocation9 + $0xa0] sm:$0xff]  ;;  %v1717_v26 = vld [vmem:[#allocation9 + $0xa8] sm:$0xff] }
 0x3c5   :  { %v1206_v33 = vmul.f32 %v1984_v11, %v1191_v28  ;;  %v1185_v34 = vadd.f32 %v2333_v32, %v1983_v7  ;;  %v1146_v38 = vpop.f32.mrb[21].mxu1  ;;  %v1718_v28 = vld [vmem:[#allocation9 + $0xb0] sm:$0xff] }
 0x3c6   :  { %v2549_v39 = vpack.c.bf16 %v3332_v27, %v3334_v30  ;;  %v1205_v52 = vmul.f32 %v1984_v11, %v1190_v31  ;;  %v1184_v53 = vadd.f32 %v1983_v7, %v1146_v38 }
 0x3c7   :  { %v3338_v54 = vadd.f32 %v1985_v14, %v1206_v33  ;;  %v1193_v25 = vmax.f32 %v1185_v34, 0.0 }
 0x3c8   :  { %v3340_v43 = vadd.f32 %v1985_v14, %v1205_v52  ;;  %v1192_v46 = vmax.f32 %v1184_v53, 0.0  ;;  %v2336_v47 = vpop.f32.mrb[22].mxu1  ;;  %2550 = vmatprep.subr.bf16.mxu0 %v2549_v39 }
 0x3c9   :  { %v1208_v51 = vmul.f32 %v1984_v11, %v1193_v25  ;;  %v1187_v49 = vadd.f32 %v2336_v47, %v1983_v7  ;;  %v1156_v56 = vpop.f32.mrb[23].mxu1  ;;  %2552 = vmatpush3.bf16.msra.mxu0 %v2549_v39 }
 0x3ca   :  { %v2553_v57 = vpack.c.bf16 %v3338_v54, %v3340_v43  ;;  %v1207_v58 = vmul.f32 %v1984_v11, %v1192_v46  ;;  %v1186_v59 = vadd.f32 %v1983_v7, %v1156_v56  ;;  %v1448_v7 = vld [vmem:[#allocation9 + $0x58] sm:$0xff] }
 0x3cb   :  { %v3344_v55 = vadd.f32 %v1985_v14, %v1208_v51  ;;  %v1195_v60 = vmax.f32 %v1187_v49, 0.0 }
 0x3cc   :  { %v3346_v61 = vadd.f32 %v1985_v14, %v1207_v58  ;;  %v1194_v62 = vmax.f32 %v1186_v59, 0.0  ;;  %2554 = vmatprep.subr.bf16.mxu0 %v2553_v57 }
 0x3cd   :  { %v1210_v63 = vmul.f32 %v1984_v11, %v1195_v60  ;;  %2556 = vmatpush3.bf16.msra.mxu0 %v2553_v57 }
 0x3ce   :  { %v2557_v0 = vpack.c.bf16 %v3344_v55, %v3346_v61  ;;  %v1209_v1 = vmul.f32 %v1984_v11, %v1194_v62  ;;  %v1439_v11 = vld [vmem:[#allocation9 + $0x18] sm:$0xff] }
 0x3cf   :  { %v3350_v2 = vadd.f32 %v1985_v14, %v1210_v63 }
 0x3d0   :  { %v3352_v3 = vadd.f32 %v1985_v14, %v1209_v1  ;;  %2558 = vmatprep.subr.bf16.mxu0 %v2557_v0  ;;  %v1712_v14 = vld [vmem:[#allocation9 + $0x80] sm:$0xff] }
 0x3d1   :  { %2560 = vmatpush3.bf16.msra.mxu0 %v2557_v0  ;;  %v2613_v17 = vpack.c.bf16 %v1713_v15, %v1712_v14  ;;  %v2027_v1 = vld [vmem:[#allocation12] ss:$0 sm:$0xff] }
 0x3d2   :  { %v2561_v4 = vpack.c.bf16 %v3350_v2, %v3352_v3 }
 0x3d3   :  { %2629 = vmatprep.subr.bf16.mxu1 %v2613_v17 }
 0x3d4   :  { %2562 = vmatprep.subr.bf16.mxu0 %v2561_v4  ;;  %2633 = vmatpush3.bf16.msra.mxu1 %v2613_v17 }
 0x3d5   :  { %2564 = vmatpush3.bf16.msra.mxu0 %v2561_v4  ;;  %2630 = vmatprep.subr.bf16.mxu1 %v2617_v21 }
 0x3d6   :  { %2566 = vmatprep.subr.bf16.mxu0 %v2549_v39 }
 0x3d8   :  { %2354 = vmatmul.mubr.msk.f32.vlgmr.msra.gmra.mrb[8].mxu0 %vm190_vm0, %v3189_v16  ;;  %v2581_v16 = vpack.c.bf16 %v1446_v6, %v1445_v5  ;;  %2634 = vmatpush3.bf16.msra.mxu1 %v2617_v21 }
 0x3d9   :  { %2568 = vmatpush3.bf16.msra.mxu0 %v2549_v39  ;;  %2356 = vmatprep.mubr.msk.f32.mxu0 %vm190_vm0, %v3195_v18  ;;  %v1447_v18 = vld [vmem:[#allocation9 + $0x50] sm:$0xff] }
 0x3da   :  { %2570 = vmatprep.subr.bf16.mxu0 %v2553_v57 }
 0x3dc   :  { %2357 = vmatmul.mubr.msk.f32.gmra.mrb[10].mxu0 %vm190_vm0, %v3233_v35  ;;  %v2585_v35 = vpack.c.bf16 %v1448_v7, %v1447_v18 }
 0x3dd   :  { %2572 = vmatpush3.bf16.msra.mxu0 %v2553_v57  ;;  %2359 = vmatprep.mubr.msk.f32.mxu0 %vm190_vm0, %v3238_v36  ;;  %v1449_v36 = vld [vmem:[#allocation9 + $0x60] sm:$0xff] }
 0x3de   :  { %2574 = vmatprep.subr.bf16.mxu0 %v2557_v0 }
 0x3e0   :  { %2360 = vmatmul.mubr.msk.f32.gmra.mrb[12].mxu0 %vm190_vm0, %v3264_v41  ;;  %v2589_v41 = vpack.c.bf16 %v1450_v8, %v1449_v36 }
 0x3e1   :  { %2576 = vmatpush3.bf16.msra.mxu0 %v2557_v0  ;;  %2362 = vmatprep.mubr.msk.f32.mxu0 %vm190_vm0, %v3272_v44  ;;  %v1451_v44 = vld [vmem:[#allocation9 + $0x70] sm:$0xff] }
 0x3e2   :  { %2578 = vmatprep.subr.bf16.mxu0 %v2561_v4 }
 0x3e4   :  { %2363 = vmatmul.mubr.msk.f32.gmra.mrb[14].mxu0 %vm190_vm0, %v3287_v50  ;;  %v1436_v50 = vld [vmem:[#allocation9] sm:$0xff] }
 0x3e5   :  { %2580 = vmatpush3.bf16.msra.mxu0 %v2561_v4  ;;  %2381 = vmatprep.mubr.msk.f32.mxu0 %vm190_vm0, %v3139_v45  ;;  %v2593_v45 = vpack.c.bf16 %v1452_v9, %v1451_v44  ;;  %v2028_v4 = vld [vmem:[#allocation13] ss:$0 sm:$0xff] }
 0x3e6   :  { %2582 = vmatprep.subr.bf16.mxu0 %v2581_v16 }
 0x3e8   :  { %2382 = vmatmul.mubr.msk.f32.vlgmr.msra.gmra.mrb[16].mxu0 %vm190_vm0, %v3209_v23  ;;  %v2597_v23 = vpack.c.bf16 %v1437_v10, %v1436_v50 }
 0x3e9   :  { %2584 = vmatpush3.bf16.msra.mxu0 %v2581_v16  ;;  %2384 = vmatprep.mubr.msk.f32.mxu0 %vm190_vm0, %v3221_v29  ;;  %v1438_v29 = vld [vmem:[#allocation9 + $0x10] sm:$0xff] }
 0x3ea   :  { %2586 = vmatprep.subr.bf16.mxu0 %v2585_v35 }
 0x3ec   :  { %2385 = vmatmul.mubr.msk.f32.gmra.mrb[18].mxu0 %vm190_vm0, %v3244_v37  ;;  %v2601_v37 = vpack.c.bf16 %v1439_v11, %v1438_v29 }
 0x3ed   :  { %2588 = vmatpush3.bf16.msra.mxu0 %v2585_v35  ;;  %2387 = vmatprep.mubr.msk.f32.mxu0 %vm190_vm0, %v3251_v40  ;;  %v1440_v40 = vld [vmem:[#allocation9 + $0x20] sm:$0xff] }
 0x3ee   :  { %2590 = vmatprep.subr.bf16.mxu0 %v2589_v41 }
 0x3f0   :  { %2388 = vmatmul.mubr.msk.f32.gmra.mrb[20].mxu0 %vm190_vm0, %v3267_v42  ;;  %v2605_v42 = vpack.c.bf16 %v1441_v12, %v1440_v40 }
 0x3f1   :  { %2592 = vmatpush3.bf16.msra.mxu0 %v2589_v41  ;;  %2390 = vmatprep.mubr.msk.f32.mxu0 %vm190_vm0, %v3278_v48  ;;  %v1442_v48 = vld [vmem:[#allocation9 + $0x30] sm:$0xff] }
 0x3f2   :  { %2594 = vmatprep.subr.bf16.mxu0 %v2593_v45 }
 0x3f4   :  { %2391 = vmatmul.mubr.msk.f32.gmra.mrb[22].mxu0 %vm190_vm0, %v3292_v22  ;;  %v2609_v22 = vpack.c.bf16 %v1443_v13, %v1442_v48 }
 0x3f5   :  { %2596 = vmatpush3.bf16.msra.mxu0 %v2593_v45  ;;  %2409 = vmatprep.mubr.msk.f32.mxu0 %vm190_vm0, %v3334_v30  ;;  %v1719_v30 = vld [vmem:[#allocation9 + $0xb8] sm:$0xff] }
 0x3f6   :  { %2598 = vmatprep.subr.bf16.mxu0 %v2597_v23  ;;  %v2625_v31 = vpack.c.bf16 %v1719_v30, %v1718_v28 }
 0x3f8   :  { %2410 = vmatmul.mubr.msk.f32.vlgmr.msra.gmra.mrb[24].mxu0 %vm190_vm0, %v3332_v27  ;;  %v2621_v27 = vpack.c.bf16 %v1717_v26, %v1716_v24 }
 0x3f9   :  { %2412 = vmatprep.mubr.msk.f32.mxu0 %vm190_vm0, %v3340_v43  ;;  %2600 = vmatpush3.bf16.msra.mxu0 %v2597_v23 }
 0x3fa   :  { %2602 = vmatprep.subr.bf16.mxu0 %v2601_v37  ;;  %2631 = vmatprep.subr.bf16.mxu1 %v2621_v27 }
 0x3fb   :  { %2635 = vmatpush3.bf16.msra.mxu1 %v2621_v27 }
 0x3fc   :  { %2413 = vmatmul.mubr.msk.f32.gmra.mrb[26].mxu0 %vm190_vm0, %v3338_v54  ;;  %2632 = vmatprep.subr.bf16.mxu1 %v2625_v31 }
 0x3fd   :  { %2415 = vmatprep.mubr.msk.f32.mxu0 %vm190_vm0, %v3346_v61  ;;  %2604 = vmatpush3.bf16.msra.mxu0 %v2601_v37  ;;  %v2026_v61 = vld [vmem:[#allocation10] ss:$0 sm:$0xff] }
 0x3fe   :  { %2606 = vmatprep.subr.bf16.mxu0 %v2605_v42 }
 0x3ff   :  { %2636 = vmatpush3.bf16.msra.mxu1 %v2625_v31 }
 0x400   :  { %2416 = vmatmul.mubr.msk.f32.gmra.mrb[28].mxu0 %vm190_vm0, %v3344_v55 }
 0x401   :  { %2418 = vmatprep.mubr.msk.f32.mxu0 %vm190_vm0, %v3352_v3  ;;  %2608 = vmatpush3.bf16.msra.mxu0 %v2605_v42 }
 0x402   :  { %2610 = vmatprep.subr.bf16.mxu0 %v2609_v22 }
 0x404   :  { %2419 = vmatmul.mubr.msk.f32.gmra.mrb[30].mxu0 %vm190_vm0, %v3350_v2 }
 0x405   :  { %2612 = vmatpush3.bf16.msra.mxu0 %v2609_v22 }
 0x406   :  { %2614 = vmatprep.subr.bf16.mxu0 %v2613_v17 }
 0x4ab   :  { %v2355_v32 = vpop.f32.mrb[8].mxu0 }
 0x4ac   :  { %v1292_v33 = vpop.f32.mrb[9].mxu0 }
 0x4ad   :  { %2437 = vmatprep.mubr.msk.f32.mxu0 %vm190_vm0, %v1292_v33 }
 0x4ae   :  { %2438 = vmatmul.mubr.msk.f32.vlgmr.msra.gmra.mrb[24].mxu0 %vm190_vm0, %v2355_v32 }
 0x4af   :  { %v2358_v34 = vpop.f32.mrb[10].mxu0  ;;  %2616 = vmatpush3.bf16.msra.mxu0 %v2613_v17 }
 0x4b0   :  { %v1302_v38 = vpop.f32.mrb[11].mxu0  ;;  %2618 = vmatprep.subr.bf16.mxu0 %v2617_v21 }
 0x4b1   :  { %2440 = vmatprep.mubr.msk.f32.mxu0 %vm190_vm0, %v1302_v38 }
 0x4b2   :  { %2441 = vmatmul.mubr.msk.f32.gmra.mrb[26].mxu0 %vm190_vm0, %v2358_v34 }
 0x4b3   :  { %v2361_v39 = vpop.f32.mrb[12].mxu0  ;;  %2620 = vmatpush3.bf16.msra.mxu0 %v2617_v21 }
 0x4b4   :  { %v1312_v52 = vpop.f32.mrb[13].mxu0  ;;  %2622 = vmatprep.subr.bf16.mxu0 %v2621_v27 }
 0x4b5   :  { %2443 = vmatprep.mubr.msk.f32.mxu0 %vm190_vm0, %v1312_v52 }
 0x4b6   :  { %2444 = vmatmul.mubr.msk.f32.gmra.mrb[28].mxu0 %vm190_vm0, %v2361_v39 }
 0x4b7   :  { %v2364_v53 = vpop.f32.mrb[14].mxu0  ;;  %2624 = vmatpush3.bf16.msra.mxu0 %v2621_v27 }
 0x4b8   :  { %v1322_v54 = vpop.f32.mrb[15].mxu0  ;;  %2626 = vmatprep.subr.bf16.mxu0 %v2625_v31 }
 0x4b9   :  { %2446 = vmatprep.mubr.msk.f32.mxu0 %vm190_vm0, %v1322_v54 }
 0x4ba   :  { %2447 = vmatmul.mubr.msk.f32.gmra.mrb[30].mxu0 %vm190_vm0, %v2364_v53 }
 0x4bb   :  { %v2383_v25 = vpop.f32.mrb[16].mxu0  ;;  %2628 = vmatpush3.bf16.msra.mxu0 %v2625_v31 }
 0x4bc   :  { %v1397_v43 = vpop.f32.mrb[17].mxu0 }
 0x4bd   :  { %2465 = vmatprep.mubr.msk.f32.mxu0 %vm190_vm0, %v1397_v43 }
 0x4be   :  { %2466 = vmatmul.mubr.msk.f32.vlgmr.msra.gmra.mrb[24].mxu0 %vm190_vm0, %v2383_v25 }
 0x4bf   :  { %v2386_v46 = vpop.f32.mrb[18].mxu0 }
 0x4c0   :  { %v1407_v47 = vpop.f32.mrb[19].mxu0 }
 0x4c1   :  { %2468 = vmatprep.mubr.msk.f32.mxu0 %vm190_vm0, %v1407_v47 }
 0x4c2   :  { %2469 = vmatmul.mubr.msk.f32.gmra.mrb[26].mxu0 %vm190_vm0, %v2386_v46 }
 0x4c3   :  { %v2389_v51 = vpop.f32.mrb[20].mxu0 }
 0x4c4   :  { %v1417_v49 = vpop.f32.mrb[21].mxu0 }
 0x4c5   :  { %2471 = vmatprep.mubr.msk.f32.mxu1 %vm190_vm0, %v1417_v49 }
 0x4c6   :  { %2472 = vmatmul.mubr.msk.f32.vlgmr.msra.gmra.mrb[24].mxu1 %vm190_vm0, %v2389_v51 }
 0x4c7   :  { %v2392_v56 = vpop.f32.mrb[22].mxu0 }
 0x4c8   :  { %v1427_v57 = vpop.f32.mrb[23].mxu0 }
 0x4c9   :  { %2474 = vmatprep.mubr.msk.f32.mxu1 %vm190_vm0, %v1427_v57 }
 0x4ca   :  { %2475 = vmatmul.mubr.msk.f32.gmra.mrb[26].mxu1 %vm190_vm0, %v2392_v56 }
 0x589   :  { %v2445_v58 = vpop.f32.mrb[28].mxu0 }
 0x58a   :  { %v1692_v59 = vpop.f32.mrb[29].mxu0 }
 0x58d   :  { %v2448_v55 = vpop.f32.mrb[30].mxu0 }
 0x58e   :  { %v1702_v60 = vpop.f32.mrb[31].mxu0 }
 0x591   :  { %v2467_v62 = vpop.f32.mrb[24].mxu0 }
 0x592   :  { %v1865_v63 = vadd.f32 %v2467_v62, %v2026_v61  ;;  %v1810_v0 = vpop.f32.mrb[25].mxu0 }
 0x593   :  { %v1864_v2 = vadd.f32 %v2026_v61, %v1810_v0 }
 0x594   :  { %v1873_v3 = vmax.f32 %v1865_v63, 0.0 }
 0x595   :  { %v1872_v5 = vmax.f32 %v1864_v2, 0.0  ;;  %v2470_v6 = vpop.f32.mrb[26].mxu0 }
 0x596   :  { %v1888_v16 = vmul.f32 %v2027_v1, %v1873_v3  ;;  %v1867_v18 = vadd.f32 %v2470_v6, %v2026_v61  ;;  %v1820_v7 = vpop.f32.mrb[27].mxu0 }
 0x597   :  { %v1887_v35 = vmul.f32 %v2027_v1, %v1872_v5  ;;  %v1866_v36 = vadd.f32 %v2026_v61, %v1820_v7 }
 0x598   :  { %v1903_v8 = vadd.f32 %v2028_v4, %v1888_v16  ;;  %v1875_v41 = vmax.f32 %v1867_v18, 0.0 }
 0x599   :  { %v1902_v44 = vadd.f32 %v2028_v4, %v1887_v35  ;;  %v1874_v9 = vmax.f32 %v1866_v36, 0.0  ;;  %v2473_v45 = vpop.f32.mrb[24].mxu1 }
 0x59a   :  { %1911 = vst.msk [vmem:[%s3460_s10 + $0x8] sm:$0xff] %vm190_vm0, %v1903_v8  ;;  %v1890_v50 = vmul.f32 %v2027_v1, %v1875_v41  ;;  %v2637_v10 = vadd.f32 %v2473_v45, %v2445_v58  ;;  %v1830_v23 = vpop.f32.mrb[25].mxu1 }
 0x59b   :  { %1910 = vst.msk [vmem:[%s3460_s10] sm:$0xff] %vm190_vm0, %v1902_v44  ;;  %v1889_v29 = vmul.f32 %v2027_v1, %v1874_v9  ;;  %v2638_v11 = vadd.f32 %v1830_v23, %v1692_v59 }
 0x59c   :  { %v1905_v37 = vadd.f32 %v2028_v4, %v1890_v50  ;;  %v1869_v40 = vadd.f32 %v2637_v10, %v2026_v61 }
 0x59d   :  { %v1904_v12 = vadd.f32 %v2028_v4, %v1889_v29  ;;  %v1868_v42 = vadd.f32 %v2638_v11, %v2026_v61  ;;  %v2476_v48 = vpop.f32.mrb[26].mxu1 }
 0x59e   :  { %1913 = vst.msk [vmem:[%s3460_s10 + $0x18] sm:$0xff] %vm190_vm0, %v1905_v37  ;;  %v1877_v13 = vmax.f32 %v1869_v40, 0.0  ;;  %v2639_v22 = vadd.f32 %v2476_v48, %v2448_v55  ;;  %v1840_v14 = vpop.f32.mrb[27].mxu1 }
 0x59f   :  { %1912 = vst.msk [vmem:[%s3460_s10 + $0x10] sm:$0xff] %vm190_vm0, %v1904_v12  ;;  %v1876_v15 = vmax.f32 %v1868_v42, 0.0  ;;  %v2640_v17 = vadd.f32 %v1840_v14, %v1702_v60 }
 0x5a0   :  { %v1892_v19 = vmul.f32 %v2027_v1, %v1877_v13  ;;  %v1871_v20 = vadd.f32 %v2639_v22, %v2026_v61 }
 0x5a1   :  { %v1891_v21 = vmul.f32 %v2027_v1, %v1876_v15  ;;  %v1870_v24 = vadd.f32 %v2640_v17, %v2026_v61 }
 0x5a2   :  { %v1907_v26 = vadd.f32 %v2028_v4, %v1892_v19  ;;  %v1879_v27 = vmax.f32 %v1871_v20, 0.0 }
 0x5a3   :  { %v1906_v28 = vadd.f32 %v2028_v4, %v1891_v21  ;;  %v1878_v30 = vmax.f32 %v1870_v24, 0.0 }
 0x5a4   :  { %1915 = vst.msk [vmem:[%s3460_s10 + $0x28] sm:$0xff] %vm190_vm0, %v1907_v26  ;;  %v1894_v31 = vmul.f32 %v2027_v1, %v1879_v27 }
 0x5a5   :  { %1914 = vst.msk [vmem:[%s3460_s10 + $0x20] sm:$0xff] %vm190_vm0, %v1906_v28  ;;  %v1893_v32 = vmul.f32 %v2027_v1, %v1878_v30 }
 0x5a6   :  { %v1909_v33 = vadd.f32 %v2028_v4, %v1894_v31 }
 0x5a7   :  { %v1908_v34 = vadd.f32 %v2028_v4, %v1893_v32 }
 0x5a8   :  { %1917 = vst.msk [vmem:[%s3460_s10 + $0x38] sm:$0xff] %vm190_vm0, %v1909_v33 }
 0x5a9   :  { %1916 = vst.msk [vmem:[%s3460_s10 + $0x30] sm:$0xff] %vm190_vm0, %v1908_v34 }
 0x5aa   :  { %1922 = vsyncpa [#allocation3], 1 }
 0x5ab   :  { %1923 = vsyncpa [#allocation5], 1 }
 0x5ac   :  { %1924 = vsyncpa [#allocation8], 1 }
 0x5ad   :  { %1925 = vsyncpa [#allocation11], 1 }
 0x5ae   :  { %1926 = vsyncpa [#allocation14], 1 }

// kernel: forward.3
= control target key start
LH: loop header
LB: loop body
LE: loop exit
PB: predicated region body
PF: predicated region fallthrough
CT: control target
= control target key end

     0   :  { %10 = vsyncpa [#allocation3], 0  ;;  %s7006_s0 = inlined_call_operand.vmem [shape: f32[2,2048], index: 0, kind: input, shape index: {}]   ;;  %s7007_s1 = inlined_call_operand.vmem [shape: bf16[2048,64], index: 1, kind: input, shape index: {}]   ;;  %s7008_s2 = inlined_call_operand.hbm [shape: f32[1,64], index: 2, kind: input, shape index: {}]   ;;  %s7009_s3 = inlined_call_operand.hbm [shape: bf16[64,12288], index: 3, kind: input, shape index: {}]   ;;  %s7010_s4 = inlined_call_operand.hbm [shape: f32[1,12288], index: 4, kind: input, shape index: {}]   ;;  %s7011_s5 = inlined_call_operand.vmem [shape: f32[2,12288], index: 5, kind: output, shape index: {}]  }
   0x1   :  { %11 = vsyncpa [#allocation5], 0 }
   0x2   :  { %13 = vsyncpa [#allocation5 + $0x1], 0  ;;  %s5950_s18 = smov 0   ;;  %s5952_s19 = smov 0  }
   0x3   :  { %s5954_s20 = smov 0   ;;  %s5956_s21 = smov 0  }
   0x4 LB: > { %s5971_s22 = sadd.s32 1, %s5910_s21   ;;  %s89_s23 = sadd.s32 1, %s5906_s20  ;;  %s5910_s21 = sphi %s5956_s21, %s7032_s21   ;;  %s5906_s20 = sphi %s5954_s20, %s7031_s20   ;;  %s5902_s19 = sphi %s5952_s19, %s7030_s19   ;;  %s5898_s18 = sphi %s5950_s18, %s7029_s18  }
   0x5   : > { %s86_s24 = ssub.s32 %s5910_s21, %s5971_s22  ;;  %p96_p0 = scmp.ne.s32.totalorder %s5906_s20, %s5902_s19 }
   0x6   : > { %p87_p1 = scmp.eq.s32.totalorder %s86_s24, 0  ;;  %p97_p2 = scmp.eq.s32.totalorder %s5910_s21, 0 }
   0x7   : > { %p5420_p3 = scmp.lt.s32.totalorder %s5910_s21, 2  ;;  %s195_s26 = sand.u32 1, %s5910_s21  }
   0x8   : > { %s5981_s25 = scalar_select %p87_p1, %s5906_s20, %s89_s23  }
   0x9   : > { %p98_p4 = por %p97_p2, %p96_p0  ;;  %s197_s27 = sand.u32 1, %s5906_s20  }
   0xa   : > { %s5396_s28 = smul.u32 1536, %s197_s27  ;;  %s5999_s11 = scalar_lea.sflag [#allocation5], %s195_s26 }
   0xb   : > { %p5987_p5 = pnand %p5420_p3, %p98_p4  ;;  %s5218_s30 = smul.u32 3072, %s5910_s21 }
   0xc   : > { %s199_s9 = scalar_lea.vmem [#allocation4], %s5396_s28  ;;  %s5789_s15 = scalar_lea.hbm %s7009_s3, 49152 }
   0xd   : > { %s7018_s29 = scalar_select %p5987_p5, 1, 0 }
   0xe   : > { %s5995_s8 = scalar_lea.hbm %s7009_s3, %s5218_s30  ;;  %s206_s10 = sshll.u32 %s199_s9, 4  ;;  %s5997_s10 = int_to_ptr.vmem [resolvable:$true] %s206_s10 }
   0xf   : > { %s5784_s12 = scalar_lea.hbm %s5995_s8, 24576  ;;  %p7013_p7 = pneg %p5987_p5 }
  0x10   : > { %p5785_p6 = scmp.ne.s32.totalorder %s5995_s8, %s5784_s12  ;;  %p5790_p10 = scmp.lt.u32.totalorder %s5995_s8, %s7009_s3 }
  0x11   : > { %p5791_p11 = scmp.lt.u32.totalorder %s5789_s15, %s5784_s12  ;;  %p5793_p13 = scmp.lt.u32.totalorder %s5784_s12, %s5995_s8 }
  0x12   : > { %p5787_p8 = pnand %p7013_p7, %p5785_p6 }
  0x13   : > { %p5792_p12 = por %p5791_p11, %p5790_p10 }
  0x14   : > { %p5788_p9 = pneg %p5787_p8 }
  0x15   : > { %p5794_p0 = por %p5793_p13, %p5792_p12 }
  0x17   : > { %p5795_p1 = pnand %p5794_p0, %p5788_p9 }
  0x19   : > { %5798 = shalt.err (!%p5795_p1)
}
  0x1a   : > { %s5799_s23 = scalar_lea.vmem %s5997_s10, 24576  ;;  %s5912_s24 = smov [#allocation4]  }
  0x1b   : > { %p5800_p2 = scmp.ne.s32.totalorder %s5997_s10, %s5799_s23  ;;  %s5804_s26 = sshll.u32 %s5912_s24, 4  ;;  %s5805_s26 = int_to_ptr.vmem [resolvable:$false] %s5804_s26 }
  0x1c   : > { %s5806_s28 = scalar_lea.vmem %s5805_s26, 49152  ;;  %p5807_p6 = scmp.lt.s32.totalorder %s5997_s10, %s5805_s26 }
  0x1d   : > { %p5802_p3 = pnand %p5800_p2, %p7013_p7  ;;  %p5808_p8 = scmp.lt.s32.totalorder %s5806_s28, %s5799_s23 }
  0x1f   : > { %p5803_p4 = pneg %p5802_p3  ;;  %p5809_p10 = por %p5808_p8, %p5807_p6 }
  0x21   : > { %p5810_p11 = pnand %p5809_p10, %p5803_p4 }
  0x23   : > { %5813 = shalt.err (!%p5810_p11)
}
  0x24   : > { %s5913_s30 = smov 6144   ;;  %s5914_s6 = smov 3072  }
  0x25   : > { %s5915_s7 = smov 192   ;;  %s6028_s9 = sadd.s32 4294967295, %s5910_s21  }
  0x26   : > { %5415 = dma.hbm_to_vmem [thread:$0]  (!%p5987_p5), %s5995_s8, 24576, %s5997_s10, %s5999_s11, %s5913_s30, %s5914_s6, %s5915_s7  }
  0x27   : > { %p102_p9 = scmp.ne.s32.totalorder %s5902_s19, %s5898_s18  ;;  %p7012_p12 = scmp.eq.s32.totalorder %s6028_s9, 0 }
  0x28   : > { %p4815_p13 = scmp.ge.s32.totalorder %s5910_s21, 1  ;;  %p165_p0 = scmp.lt.s32.totalorder %s5910_s21, 3 }
  0x29   : > { %p6037_p1 = por %p7012_p12, %p102_p9  ;;  %s5916_s8 = smov [#allocation2]  }
  0x2a   : > { %p6041_p2 = pnand %p4815_p13, %p165_p0  ;;  %s184_s10 = sshll.u32 %s5916_s8, 4  ;;  %s185_s10 = int_to_ptr.vmem [resolvable:$true] %s184_s10 }
  0x2b   : > { %s7019_s12 = scalar_select %p6037_p1, 1, 0 }
  0x2c   : > { %s7020_s13 = scalar_select %p6041_p2, 1, 0 }
  0x2d   : > { %s5397_s14 = smul.u32 48, %s197_s27  ;;  %p5408_p3 = pneg %p6041_p2 }
  0x2e   : > { %s5219_s18 = smul.u32 768, %s5910_s21  ;;  %s5814_s30 = scalar_lea.hbm %s7008_s2, 16 }
  0x2f   : > { %p6052_p4 = pnand %p5408_p3, %p7012_p12  ;;  %s220_s16 = scalar_lea.vmem [#allocation6], %s5397_s14 }
  0x30   : > { %s228_s17 = sshll.u32 %s220_s16, 4  ;;  %s6059_s26 = scalar_lea.hbm %s7010_s4, %s5219_s18  ;;  %s6061_s17 = int_to_ptr.vmem [resolvable:$true] %s228_s17 }
  0x31   : > { %p5815_p6 = scmp.ne.s32.totalorder %s7008_s2, %s5814_s30  ;;  %p5816_p8 = pneg %p6052_p4 }
  0x32   : > { %p5821_p9 = scmp.lt.u32.totalorder %s5814_s30, %s7008_s2 }
  0x33   : > { %p5817_p10 = pnand %p5816_p8, %p5815_p6 }
  0x35   : > { %p5818_p11 = pneg %p5817_p10 }
  0x37   : > { %p5823_p13 = pnand %p5821_p9, %p5818_p11 }
  0x39   : > { %5826 = shalt.err (!%p5823_p13)
}
  0x3a   : > { %s5827_s14 = scalar_lea.vmem %s185_s10, 16  ;;  %s5834_s18 = scalar_lea.vmem %s185_s10, 32 }
  0x3b   : > { %p5828_p0 = scmp.ne.s32.totalorder %s185_s10, %s5827_s14  ;;  %p5835_p7 = scmp.lt.s32.totalorder %s185_s10, %s185_s10 }
  0x3c   : > { %p5836_p1 = scmp.lt.s32.totalorder %s5834_s18, %s5827_s14 }
  0x3d   : > { %p5830_p3 = pnand %p5828_p0, %p5816_p8 }
  0x3e   : > { %p5837_p2 = por %p5836_p1, %p5835_p7 }
  0x3f   : > { %p5831_p12 = pneg %p5830_p3 }
  0x41   : > { %p5838_p5 = pnand %p5837_p2, %p5831_p12 }
  0x43   : > { %5841 = shalt.err (!%p5838_p5)
}
  0x44   : > { %5411 = dma.hbm_to_vmem [thread:$0]  (!%p6052_p4), %s7008_s2, 16, %s185_s10, [#allocation3]  }
  0x45   : > { %s5842_s24 = scalar_lea.hbm %s6059_s26, 768  ;;  %p7022_p8 = scmp.ne.s32.totalorder %s7018_s29, 0 }
  0x46   : > { %p5843_p6 = scmp.ne.s32.totalorder %s6059_s26, %s5842_s24  ;;  %s5847_s30 = scalar_lea.hbm %s7010_s4, 1536 }
  0x47   : > { %p7023_p10 = pneg %p7022_p8  ;;  %p5848_p5 = scmp.lt.u32.totalorder %s6059_s26, %s7010_s4 }
  0x48   : > { %p5849_p7 = scmp.lt.u32.totalorder %s5847_s30, %s5842_s24  ;;  %p5851_p1 = scmp.lt.u32.totalorder %s5842_s24, %s6059_s26 }
  0x49   : > { %p5845_p11 = pnand %p5843_p6, %p7023_p10 }
  0x4a   : > { %p5850_p12 = por %p5849_p7, %p5848_p5 }
  0x4b   : > { %p5846_p9 = pneg %p5845_p11 }
  0x4c   : > { %p5852_p2 = por %p5851_p1, %p5850_p12 }
  0x4e   : > { %p5853_p13 = pnand %p5852_p2, %p5846_p9 }
  0x50   : > { %5856 = shalt.err (!%p5853_p13)
}
  0x51   : > { %s5857_s10 = scalar_lea.vmem %s6061_s17, 768  ;;  %p7024_p0 = pmov %p7023_p10 }
  0x52   : > { %p5858_p4 = scmp.ne.s32.totalorder %s6061_s17, %s5857_s10  ;;  %s5917_s6 = smov [#allocation6]  }
  0x53   : > { %s5862_s7 = sshll.u32 %s5917_s6, 4  ;;  %s5863_s7 = int_to_ptr.vmem [resolvable:$false] %s5862_s7 }
  0x54   : > { %p5860_p3 = pnand %p5858_p4, %p7024_p0  ;;  %s5864_s8 = scalar_lea.vmem %s5863_s7, 1536 }
  0x55   : > { %p5865_p10 = scmp.lt.s32.totalorder %s6061_s17, %s5863_s7  ;;  %p5866_p11 = scmp.lt.s32.totalorder %s5864_s8, %s5857_s10 }
  0x56   : > { %p5861_p6 = pneg %p5860_p3 }
  0x57   : > { %p5867_p5 = por %p5866_p11, %p5865_p10 }
  0x59   : > { %p5868_p7 = pnand %p5867_p5, %p5861_p6 }
  0x5b   : > { %5871 = shalt.err (!%p5868_p7)
}
  0x5c   : > { %5418 = dma.hbm_to_vmem [thread:$0]  (!%p7022_p8), %s6059_s26, 768, %s6061_s17, %s5999_s11  }
  0x5d   : > { %p7025_p9 = scmp.ne.s32.totalorder %s7020_s13, 0 }
  0x5e   : > { %p7026_p12 = scmp.eq.s32.totalorder (!%p7025_p9), %s6028_s9, 0 }
  0x5f   : > { %237 = sbr.rel (%p7025_p9) target bundleno = 893 (0x37d), region = 40 }
  0x66   : > { %5889 = dma.done.wait (%p7026_p12), [#allocation3], 16   ;;  %p7027_p1 = pmov %p7026_p12 }
  0x67   : > { %s243_s14 = sand.u32 1, %s6028_s9   ;;  %s245_s18 = sand.u32 1, %s5902_s19  }
  0x68   : > { %5891 = vsyncadd (%p7027_p1), [#allocation3], 4294967280  ;;  %s5398_s29 = smul.u32 1536, %s245_s18  ;;  %s244_s16 = scalar_lea.sflag [#allocation5], %s243_s14 }
  0x69   : > { %p7028_p8 = scmp.ne.s32.totalorder %s7019_s12, 0 }
  0x6a   : > { %s6113_s23 = scalar_lea.vmem [#allocation4], %s5398_s29 }
  0x6b   : > { %5893 = dma.done.wait (%p7028_p8), %s244_s16, 25344  }
  0x6c   : > { %5895 = vsyncadd (%p7028_p8), %s244_s16, 4294941952  ;;  %v5460_v0 = vld [vmem:[%s7007_s1 + $0x40] sm:$0xff]   ;;  %v5464_v4 = vld [vmem:[%s7007_s1 + $0x48] sm:$0xff]   ;;  %v5918_v22 = vmov 1983009808   ;;  %v309_v24 = vlaneseq  ;;  %vm3162_vm0 = vcmask 523264  }
  0x6d   : > { %v5461_v1 = vld [vmem:[%s7007_s1 + $0xc0] sm:$0xff]   ;;  %5220 = vmatprep.subr.bf16.mxu0 %v5460_v0  ;;  %v5465_v5 = vld [vmem:[%s7007_s1 + $0xc8] sm:$0xff]   ;;  %v5468_v8 = vld [vmem:[%s7007_s1 + $0x50] sm:$0xff]   ;;  %v307_v23 = vunpack.c.l.s4 %v5918_v22 }
  0x6e   : > { %v5462_v2 = vld [vmem:[%s7007_s1] sm:$0xff]   ;;  %5242 = vmatprep.subr.bf16.mxu1 %v5461_v1  ;;  %v5466_v6 = vld [vmem:[%s7007_s1 + $0x8] sm:$0xff]   ;;  %v5469_v9 = vld [vmem:[%s7007_s1 + $0xd0] sm:$0xff]   ;;  %v6197_v30 = vshrl.u32 %v309_v24, 7 }
  0x6f   : > { %v5463_v3 = vld [vmem:[%s7007_s1 + $0x80] sm:$0xff]   ;;  %5221 = vmatpush3.bf16.msra.mxu0 %v5462_v2  ;;  %v5467_v7 = vld [vmem:[%s7007_s1 + $0x88] sm:$0xff]   ;;  %v5470_v10 = vld [vmem:[%s7007_s1 + $0x10] sm:$0xff]   ;;  %v308_v29 = vunpack.c.0.s8 %v307_v23 }
  0x70   : > { %5243 = vmatpush3.bf16.msra.mxu1 %v5463_v3  ;;  %5222 = vmatprep.subr.bf16.mxu0 %v5464_v4  ;;  %v5471_v11 = vld [vmem:[%s7007_s1 + $0x90] sm:$0xff]   ;;  %v5472_v12 = vld [vmem:[%s7007_s1 + $0x58] sm:$0xff]   ;;  %v5476_v16 = vld [vmem:[%s7007_s1 + $0x60] sm:$0xff]  }
  0x71   : > { %5244 = vmatprep.subr.bf16.mxu1 %v5465_v5  ;;  %v5473_v13 = vld [vmem:[%s7007_s1 + $0xd8] sm:$0xff]   ;;  %v5477_v17 = vld [vmem:[%s7007_s1 + $0xe0] sm:$0xff]   ;;  %v5480_v20 = vld [vmem:[%s7007_s1 + $0x68] sm:$0xff]   ;;  %v6212_v35 = vsub.s32 %v308_v29, %v6197_v30 }
  0x72   : > { %v5474_v14 = vld [vmem:[%s7007_s1 + $0x18] sm:$0xff]   ;;  %v5478_v18 = vld [vmem:[%s7007_s1 + $0x20] sm:$0xff]   ;;  %v5481_v21 = vld [vmem:[%s7007_s1 + $0xe8] sm:$0xff]  }
  0x73   : > { %5223 = vmatpush3.bf16.msra.mxu0 %v5466_v6  ;;  %v5475_v15 = vld [vmem:[%s7007_s1 + $0x98] sm:$0xff]   ;;  %v5479_v19 = vld [vmem:[%s7007_s1 + $0xa0] sm:$0xff]   ;;  %v5482_v25 = vld [vmem:[%s7007_s1 + $0x28] sm:$0xff]  }
  0x74   : > { %5245 = vmatpush3.bf16.msra.mxu1 %v5467_v7  ;;  %5224 = vmatprep.subr.bf16.mxu0 %v5468_v8  ;;  %v5483_v26 = vld [vmem:[%s7007_s1 + $0xa8] sm:$0xff]   ;;  %v5484_v27 = vld [vmem:[%s7007_s1 + $0x70] sm:$0xff]   ;;  %v5488_v33 = vld [vmem:[%s7007_s1 + $0x78] sm:$0xff]  }
  0x75   : > { %5246 = vmatprep.subr.bf16.mxu1 %v5469_v9  ;;  %v5485_v28 = vld [vmem:[%s7007_s1 + $0xf0] sm:$0xff]   ;;  %v5489_v34 = vld [vmem:[%s7007_s1 + $0xf8] sm:$0xff]   ;;  %v297_v38 = vld [vmem:[%s7006_s0] sm:$0xff] }
  0x76   : > { %v5486_v31 = vld [vmem:[%s7007_s1 + $0x30] sm:$0xff]   ;;  %v5490_v36 = vld [vmem:[%s7007_s1 + $0x38] sm:$0xff]   ;;  %v312_v39 = vrot.slane %v297_v38, %v6212_v35  ;;  %v305_v40 = vcombine.high %v297_v38, %v297_v38  ;;  %v5493_v41 = vld [vmem:[%s7007_s1 + $0x140] sm:$0xff]  }
  0x77   : > { %5225 = vmatpush3.bf16.msra.mxu0 %v5470_v10  ;;  %v5487_v32 = vld [vmem:[%s7007_s1 + $0xb0] sm:$0xff]   ;;  %v5491_v37 = vld [vmem:[%s7007_s1 + $0xb8] sm:$0xff]   ;;  %v5494_v42 = vld [vmem:[%s7007_s1 + $0x1c0] sm:$0xff]  }
  0x78   : > { %5247 = vmatpush3.bf16.msra.mxu1 %v5471_v11  ;;  %5226 = vmatprep.subr.bf16.mxu0 %v5472_v12  ;;  %v320_v43 = vcombine.high %v312_v39, %v312_v39  ;;  %v319_v44 = vrot.slane %v305_v40, %v6212_v35  ;;  %v389_v45 = vpack.c.bf16 %v312_v39, %v312_v39  ;;  %v5495_v48 = vld [vmem:[%s7007_s1 + $0x100] sm:$0xff]   ;;  %v5497_v50 = vld [vmem:[%s7007_s1 + $0x148] sm:$0xff]   ;;  %v5501_v55 = vld [vmem:[%s7007_s1 + $0x150] sm:$0xff]  }
  0x79   : > { %5248 = vmatprep.subr.bf16.mxu1 %v5473_v13  ;;  %v5496_v52 = vld [vmem:[%s7007_s1 + $0x180] sm:$0xff]   ;;  %v5498_v53 = vld [vmem:[%s7007_s1 + $0x1c8] sm:$0xff]   ;;  %v5502_v57 = vld [vmem:[%s7007_s1 + $0x1d0] sm:$0xff]  }
  0x7a   : > { %v390_v46 = vpack.c.bf16 %v320_v43, %v320_v43  ;;  %v321_v47 = vcombine.high %v319_v44, %v319_v44  ;;  %v391_v49 = vpack.c.bf16 %v319_v44, %v319_v44  ;;  %v5499_v54 = vld [vmem:[%s7007_s1 + $0x108] sm:$0xff]   ;;  %v5503_v58 = vld [vmem:[%s7007_s1 + $0x110] sm:$0xff]   ;;  %v5505_v59 = vld [vmem:[%s7007_s1 + $0x158] sm:$0xff]  }
  0x7b   : > { %5227 = vmatpush3.bf16.msra.mxu0 %v5474_v14  ;;  %v5500_v56 = vld [vmem:[%s7007_s1 + $0x188] sm:$0xff]   ;;  %v5504_v60 = vld [vmem:[%s7007_s1 + $0x190] sm:$0xff]   ;;  %v5506_v61 = vld [vmem:[%s7007_s1 + $0x1d8] sm:$0xff]  }
  0x7c   : > { %5249 = vmatpush3.bf16.msra.mxu1 %v5475_v15  ;;  %5228 = vmatprep.subr.bf16.mxu0 %v5476_v16  ;;  %v392_v51 = vpack.c.bf16 %v321_v47, %v321_v47  ;;  %v5507_v62 = vld [vmem:[%s7007_s1 + $0x118] sm:$0xff]   ;;  %v5509_v63 = vld [vmem:[%s7007_s1 + $0x160] sm:$0xff]   ;;  %v5513_v3 = vld [vmem:[%s7007_s1 + $0x168] sm:$0xff]  }
  0x7d   : > { %5250 = vmatprep.subr.bf16.mxu1 %v5477_v17  ;;  %1468 = vmatprep.mubr.bf16.mxu0 %v390_v46  ;;  %v5508_v0 = vld [vmem:[%s7007_s1 + $0x198] sm:$0xff]   ;;  %v5510_v1 = vld [vmem:[%s7007_s1 + $0x1e0] sm:$0xff]   ;;  %v5514_v5 = vld [vmem:[%s7007_s1 + $0x1e8] sm:$0xff]  }
  0x7e   : > { %1508 = vmatprep.mubr.bf16.mxu1 %v392_v51  ;;  %v5511_v2 = vld [vmem:[%s7007_s1 + $0x120] sm:$0xff]   ;;  %v5515_v6 = vld [vmem:[%s7007_s1 + $0x128] sm:$0xff]   ;;  %v5517_v7 = vld [vmem:[%s7007_s1 + $0x170] sm:$0xff]  }
  0x7f   : > { %5229 = vmatpush3.bf16.msra.mxu0 %v5478_v18  ;;  %v5512_v4 = vld [vmem:[%s7007_s1 + $0x1a0] sm:$0xff]   ;;  %v5516_v8 = vld [vmem:[%s7007_s1 + $0x1a8] sm:$0xff]   ;;  %v5518_v9 = vld [vmem:[%s7007_s1 + $0x1f0] sm:$0xff]  }
  0x80   : > { %5251 = vmatpush3.bf16.msra.mxu1 %v5479_v19  ;;  %5230 = vmatprep.subr.bf16.mxu0 %v5480_v20  ;;  %v5519_v10 = vld [vmem:[%s7007_s1 + $0x130] sm:$0xff]   ;;  %v5521_v11 = vld [vmem:[%s7007_s1 + $0x178] sm:$0xff]   ;;  %v298_v14 = vld [vmem:[%s7006_s0 + $0x8] sm:$0xff] }
  0x81   : > { %5252 = vmatprep.subr.bf16.mxu1 %v5481_v21  ;;  %v5520_v12 = vld [vmem:[%s7007_s1 + $0x1b0] sm:$0xff]   ;;  %v5522_v13 = vld [vmem:[%s7007_s1 + $0x1f8] sm:$0xff]   ;;  %v329_v16 = vrot.slane %v298_v14, %v6212_v35  ;;  %v322_v17 = vcombine.high %v298_v14, %v298_v14  ;;  %v5526_v18 = vld [vmem:[%s7007_s1 + $0x240] sm:$0xff]  }
  0x82   : > { %v5523_v15 = vld [vmem:[%s7007_s1 + $0x138] sm:$0xff]   ;;  %v5527_v23 = vld [vmem:[%s7007_s1 + $0x2c0] sm:$0xff]   ;;  %v5536_v38 = vld [vmem:[%s7007_s1 + $0x210] sm:$0xff]  }
  0x83   : > { %5231 = vmatpush3.bf16.msra.mxu0 %v5482_v25  ;;  %v5524_v19 = vld [vmem:[%s7007_s1 + $0x1b8] sm:$0xff]   ;;  %v337_v20 = vcombine.high %v329_v16, %v329_v16  ;;  %v336_v21 = vrot.slane %v322_v17, %v6212_v35  ;;  %v393_v22 = vpack.c.bf16 %v329_v16, %v329_v16  ;;  %v5537_v40 = vld [vmem:[%s7007_s1 + $0x290] sm:$0xff]   ;;  %v5542_v43 = vld [vmem:[%s7007_s1 + $0x260] sm:$0xff]  }
  0x84   : > { %5253 = vmatpush3.bf16.msra.mxu1 %v5483_v26  ;;  %5232 = vmatprep.subr.bf16.mxu0 %v5484_v27  ;;  %v5528_v26 = vld [vmem:[%s7007_s1 + $0x200] sm:$0xff]   ;;  %v5538_v39 = vld [vmem:[%s7007_s1 + $0x258] sm:$0xff]   ;;  %v5546_v47 = vld [vmem:[%s7007_s1 + $0x268] sm:$0xff]  }
  0x85   : > { %5254 = vmatprep.subr.bf16.mxu1 %v5485_v28  ;;  %v394_v24 = vpack.c.bf16 %v337_v20, %v337_v20  ;;  %v338_v25 = vcombine.high %v336_v21, %v336_v21  ;;  %v395_v27 = vpack.c.bf16 %v336_v21, %v336_v21  ;;  %v5530_v28 = vld [vmem:[%s7007_s1 + $0x248] sm:$0xff]   ;;  %v5541_v44 = vld [vmem:[%s7007_s1 + $0x298] sm:$0xff]   ;;  %v5544_v46 = vld [vmem:[%s7007_s1 + $0x220] sm:$0xff]  }
  0x86   : > { %v5550_v51 = vld [vmem:[%s7007_s1 + $0x270] sm:$0xff]   ;;  %v5566_v14 = vld [vmem:[%s7007_s1 + $0x388] sm:$0xff]   ;;  %v5571_v17 = vld [vmem:[%s7007_s1 + $0x358] sm:$0xff]  }
  0x87   : > { %5233 = vmatpush3.bf16.msra.mxu0 %v5486_v31  ;;  %v396_v29 = vpack.c.bf16 %v338_v25, %v338_v25  ;;  %v5529_v31 = vld [vmem:[%s7007_s1 + $0x280] sm:$0xff]   ;;  %v5569_v16 = vld [vmem:[%s7007_s1 + $0x310] sm:$0xff]   ;;  %v5573_v20 = vld [vmem:[%s7007_s1 + $0x318] sm:$0xff]  }
  0x88   : > { %5255 = vmatpush3.bf16.msra.mxu1 %v5487_v32  ;;  %5234 = vmatprep.subr.bf16.mxu0 %v5488_v33  ;;  %v5531_v32 = vld [vmem:[%s7007_s1 + $0x2c8] sm:$0xff]   ;;  %v5575_v21 = vld [vmem:[%s7007_s1 + $0x360] sm:$0xff]  }
  0x89   : > { %5256 = vmatprep.subr.bf16.mxu1 %v5489_v34  ;;  %v5532_v33 = vld [vmem:[%s7007_s1 + $0x208] sm:$0xff]   ;;  %v5534_v34 = vld [vmem:[%s7007_s1 + $0x250] sm:$0xff]  }
  0x8a   : > { %v5579_v25 = vld [vmem:[%s7007_s1 + $0x368] sm:$0xff]  }
  0x8b   : > { %5235 = vmatpush3.bf16.msra.mxu0 %v5490_v36  ;;  %v5533_v36 = vld [vmem:[%s7007_s1 + $0x288] sm:$0xff]  }
  0x8c   : > { %5257 = vmatpush3.bf16.msra.mxu1 %v5491_v37  ;;  %5264 = vmatprep.subr.bf16.mxu0 %v5493_v41  ;;  %v5535_v37 = vld [vmem:[%s7007_s1 + $0x2d0] sm:$0xff]   ;;  %v5539_v41 = vld [vmem:[%s7007_s1 + $0x2d8] sm:$0xff]  }
  0x8d   : > { %5286 = vmatprep.subr.bf16.mxu1 %v5494_v42  ;;  %v5540_v42 = vld [vmem:[%s7007_s1 + $0x218] sm:$0xff]  }
  0x8e   : > { %1469 = vmatmul.mubr.bf16.vlgmr.msra.gmra.mrb[0].mxu0 %v389_v45  ;;  %v5543_v45 = vld [vmem:[%s7007_s1 + $0x2e0] sm:$0xff]  }
  0x8f   : > { %5265 = vmatpush3.bf16.msra.mxu0 %v5495_v48  ;;  %1509 = vmatmul.mubr.bf16.vlgmr.msra.gmra.mrb[0].mxu1 %v391_v49  ;;  %v5545_v48 = vld [vmem:[%s7007_s1 + $0x2a0] sm:$0xff]   ;;  %v5547_v49 = vld [vmem:[%s7007_s1 + $0x2e8] sm:$0xff]  }
  0x90   : > { %5266 = vmatprep.subr.bf16.mxu0 %v5497_v50  ;;  %5287 = vmatpush3.bf16.msra.mxu1 %v5496_v52  ;;  %v5548_v50 = vld [vmem:[%s7007_s1 + $0x228] sm:$0xff]  }
  0x91   : > { %5288 = vmatprep.subr.bf16.mxu1 %v5498_v53  ;;  %1548 = vmatprep.mubr.bf16.mxu0 %v394_v24  ;;  %v5549_v52 = vld [vmem:[%s7007_s1 + $0x2a8] sm:$0xff]   ;;  %v5551_v53 = vld [vmem:[%s7007_s1 + $0x2f0] sm:$0xff]   ;;  %v5577_v24 = vld [vmem:[%s7007_s1 + $0x320] sm:$0xff]  }
  0x92   : > { %1588 = vmatprep.mubr.bf16.mxu1 %v396_v29  ;;  %v5583_v29 = vld [vmem:[%s7007_s1 + $0x370] sm:$0xff]  }
  0x93   : > { %5267 = vmatpush3.bf16.msra.mxu0 %v5499_v54  ;;  %v5552_v54 = vld [vmem:[%s7007_s1 + $0x230] sm:$0xff]  }
  0x94   : > { %5268 = vmatprep.subr.bf16.mxu0 %v5501_v55  ;;  %5289 = vmatpush3.bf16.msra.mxu1 %v5500_v56  ;;  %v5554_v55 = vld [vmem:[%s7007_s1 + $0x278] sm:$0xff]   ;;  %v5553_v56 = vld [vmem:[%s7007_s1 + $0x2b0] sm:$0xff]  }
  0x95   : > { %5290 = vmatprep.subr.bf16.mxu1 %v5502_v57  ;;  %v5555_v57 = vld [vmem:[%s7007_s1 + $0x2f8] sm:$0xff]  }
  0x97   : > { %5269 = vmatpush3.bf16.msra.mxu0 %v5503_v58  ;;  %v299_v58 = vld [vmem:[%s7006_s0 + $0x10] sm:$0xff] }
  0x98   : > { %5270 = vmatprep.subr.bf16.mxu0 %v5505_v59  ;;  %5291 = vmatpush3.bf16.msra.mxu1 %v5504_v60  ;;  %v5556_v59 = vld [vmem:[%s7007_s1 + $0x238] sm:$0xff]   ;;  %v346_v60 = vrot.slane %v299_v58, %v6212_v35 }
  0x99   : > { %5292 = vmatprep.subr.bf16.mxu1 %v5506_v61  ;;  %v339_v61 = vcombine.high %v299_v58, %v299_v58 }
  0x9b   : > { %5271 = vmatpush3.bf16.msra.mxu0 %v5507_v62  ;;  %v5559_v62 = vld [vmem:[%s7007_s1 + $0x340] sm:$0xff]  }
  0x9c   : > { %5272 = vmatprep.subr.bf16.mxu0 %v5509_v63  ;;  %5293 = vmatpush3.bf16.msra.mxu1 %v5508_v0  ;;  %v5557_v63 = vld [vmem:[%s7007_s1 + $0x2b8] sm:$0xff]   ;;  %v354_v0 = vcombine.high %v346_v60, %v346_v60 }
  0x9d   : > { %5294 = vmatprep.subr.bf16.mxu1 %v5510_v1  ;;  %v353_v1 = vrot.slane %v339_v61, %v6212_v35  ;;  %v1807_v61 = vld [vmem:[%s6113_s23 + $0x188] sm:$0xff] }
  0x9f   : > { %5273 = vmatpush3.bf16.msra.mxu0 %v5511_v2  ;;  %v397_v2 = vpack.c.bf16 %v346_v60, %v346_v60 }
  0xa0   : > { %5274 = vmatprep.subr.bf16.mxu0 %v5513_v3  ;;  %5295 = vmatpush3.bf16.msra.mxu1 %v5512_v4  ;;  %v5560_v3 = vld [vmem:[%s7007_s1 + $0x3c0] sm:$0xff]   ;;  %v398_v4 = vpack.c.bf16 %v354_v0, %v354_v0 }
  0xa1   : > { %5296 = vmatprep.subr.bf16.mxu1 %v5514_v5  ;;  %v355_v5 = vcombine.high %v353_v1, %v353_v1 }
  0xa3   : > { %5275 = vmatpush3.bf16.msra.mxu0 %v5515_v6  ;;  %v5561_v6 = vld [vmem:[%s7007_s1 + $0x300] sm:$0xff]  }
  0xa4   : > { %5276 = vmatprep.subr.bf16.mxu0 %v5517_v7  ;;  %5297 = vmatpush3.bf16.msra.mxu1 %v5516_v8  ;;  %v399_v7 = vpack.c.bf16 %v353_v1, %v353_v1  ;;  %v5563_v8 = vld [vmem:[%s7007_s1 + $0x348] sm:$0xff]  }
  0xa5   : > { %5298 = vmatprep.subr.bf16.mxu1 %v5518_v9  ;;  %v400_v9 = vpack.c.bf16 %v355_v5, %v355_v5 }
  0xa7   : > { %5277 = vmatpush3.bf16.msra.mxu0 %v5519_v10  ;;  %v5562_v10 = vld [vmem:[%s7007_s1 + $0x380] sm:$0xff]  }
  0xa8   : > { %5278 = vmatprep.subr.bf16.mxu0 %v5521_v11  ;;  %5299 = vmatpush3.bf16.msra.mxu1 %v5520_v12  ;;  %v5564_v11 = vld [vmem:[%s7007_s1 + $0x3c8] sm:$0xff]  }
  0xa9   : > { %5300 = vmatprep.subr.bf16.mxu1 %v5522_v13  ;;  %v5565_v12 = vld [vmem:[%s7007_s1 + $0x308] sm:$0xff]   ;;  %v5567_v13 = vld [vmem:[%s7007_s1 + $0x350] sm:$0xff]  }
  0xab   : > { %5279 = vmatpush3.bf16.msra.mxu0 %v5523_v15  ;;  %v5568_v15 = vld [vmem:[%s7007_s1 + $0x3d0] sm:$0xff]  }
  0xac   : > { %5308 = vmatprep.subr.bf16.mxu0 %v5526_v18  ;;  %5301 = vmatpush3.bf16.msra.mxu1 %v5524_v19  ;;  %v5570_v18 = vld [vmem:[%s7007_s1 + $0x390] sm:$0xff]   ;;  %v5572_v19 = vld [vmem:[%s7007_s1 + $0x3d8] sm:$0xff]  }
  0xad   : > { %5330 = vmatprep.subr.bf16.mxu1 %v5527_v23  ;;  %v5576_v23 = vld [vmem:[%s7007_s1 + $0x3e0] sm:$0xff]  }
  0xae   : > { %1549 = vmatmul.mubr.bf16.vlgmr.msra.gmra.mrb[4].mxu0 %v393_v22  ;;  %v5574_v22 = vld [vmem:[%s7007_s1 + $0x398] sm:$0xff]  }
  0xaf   : > { %5309 = vmatpush3.bf16.msra.mxu0 %v5528_v26  ;;  %1589 = vmatmul.mubr.bf16.vlgmr.msra.gmra.mrb[4].mxu1 %v395_v27  ;;  %v5578_v26 = vld [vmem:[%s7007_s1 + $0x3a0] sm:$0xff]   ;;  %v5580_v27 = vld [vmem:[%s7007_s1 + $0x3e8] sm:$0xff]  }
  0xb0   : > { %5310 = vmatprep.subr.bf16.mxu0 %v5530_v28  ;;  %5331 = vmatpush3.bf16.msra.mxu1 %v5529_v31  ;;  %v5581_v28 = vld [vmem:[%s7007_s1 + $0x328] sm:$0xff]  }
  0xb1   : > { %5332 = vmatprep.subr.bf16.mxu1 %v5531_v32  ;;  %1628 = vmatprep.mubr.bf16.mxu0 %v398_v4  ;;  %v5582_v31 = vld [vmem:[%s7007_s1 + $0x3a8] sm:$0xff]   ;;  %v5584_v32 = vld [vmem:[%s7007_s1 + $0x3f0] sm:$0xff]  }
  0xb2   : > { %1668 = vmatprep.mubr.bf16.mxu1 %v400_v9  ;;  %v1855_v4 = vld [vmem:[%s6113_s23 + $0x308] sm:$0xff] }
  0xb3   : > { %5311 = vmatpush3.bf16.msra.mxu0 %v5532_v33  ;;  %v5585_v33 = vld [vmem:[%s7007_s1 + $0x330] sm:$0xff]  }
  0xb4   : > { %5312 = vmatprep.subr.bf16.mxu0 %v5534_v34  ;;  %5333 = vmatpush3.bf16.msra.mxu1 %v5533_v36  ;;  %v5587_v34 = vld [vmem:[%s7007_s1 + $0x378] sm:$0xff]   ;;  %v5586_v36 = vld [vmem:[%s7007_s1 + $0x3b0] sm:$0xff]  }
  0xb5   : > { %5334 = vmatprep.subr.bf16.mxu1 %v5535_v37  ;;  %v5588_v37 = vld [vmem:[%s7007_s1 + $0x3f8] sm:$0xff]  }
  0xb7   : > { %5313 = vmatpush3.bf16.msra.mxu0 %v5536_v38  ;;  %v5589_v38 = vld [vmem:[%s7007_s1 + $0x338] sm:$0xff]  }
  0xb8   : > { %5314 = vmatprep.subr.bf16.mxu0 %v5538_v39  ;;  %5335 = vmatpush3.bf16.msra.mxu1 %v5537_v40  ;;  %v300_v39 = vld [vmem:[%s7006_s0 + $0x18] sm:$0xff] }
  0xb9   : > { %5336 = vmatprep.subr.bf16.mxu1 %v5539_v41  ;;  %v363_v40 = vrot.slane %v300_v39, %v6212_v35  ;;  %v356_v41 = vcombine.high %v300_v39, %v300_v39 }
  0xbb   : > { %5315 = vmatpush3.bf16.msra.mxu0 %v5540_v42  ;;  %v5590_v42 = vld [vmem:[%s7007_s1 + $0x3b8] sm:$0xff]  }
  0xbc   : > { %5316 = vmatprep.subr.bf16.mxu0 %v5542_v43  ;;  %5337 = vmatpush3.bf16.msra.mxu1 %v5541_v44  ;;  %v371_v43 = vcombine.high %v363_v40, %v363_v40  ;;  %v370_v44 = vrot.slane %v356_v41, %v6212_v35 }
  0xbd   : > { %5338 = vmatprep.subr.bf16.mxu1 %v5543_v45  ;;  %v401_v45 = vpack.c.bf16 %v363_v40, %v363_v40 }
  0xbf   : > { %5317 = vmatpush3.bf16.msra.mxu0 %v5544_v46  ;;  %v402_v46 = vpack.c.bf16 %v371_v43, %v371_v43 }
  0xc0   : > { %5318 = vmatprep.subr.bf16.mxu0 %v5546_v47  ;;  %5339 = vmatpush3.bf16.msra.mxu1 %v5545_v48  ;;  %v372_v47 = vcombine.high %v370_v44, %v370_v44  ;;  %v403_v48 = vpack.c.bf16 %v370_v44, %v370_v44 }
  0xc1   : > { %5340 = vmatprep.subr.bf16.mxu1 %v5547_v49 }
  0xc2   : > { %v404_v49 = vpack.c.bf16 %v372_v47, %v372_v47 }
  0xc3   : > { %5319 = vmatpush3.bf16.msra.mxu0 %v5548_v50  ;;  %v1758_v50 = vld [vmem:[%s6113_s23] sm:$0xff] }
  0xc4   : > { %5320 = vmatprep.subr.bf16.mxu0 %v5550_v51  ;;  %5341 = vmatpush3.bf16.msra.mxu1 %v5549_v52  ;;  %v1782_v51 = vld [vmem:[%s6113_s23 + $0xc0] sm:$0xff]  ;;  %v1759_v52 = vld [vmem:[%s6113_s23 + $0x8] sm:$0xff] }
  0xc5   : > { %5342 = vmatprep.subr.bf16.mxu1 %v5551_v53  ;;  %v4952_v53 = vcombine.low %v1758_v50, %v1782_v51 }
  0xc7   : > { %5321 = vmatpush3.bf16.msra.mxu0 %v5552_v54  ;;  %v4953_v54 = vcombine.high %v1758_v50, %v1782_v51 }
  0xc8   : > { %5322 = vmatprep.subr.bf16.mxu0 %v5554_v55  ;;  %5343 = vmatpush3.bf16.msra.mxu1 %v5553_v56  ;;  %v1783_v55 = vld [vmem:[%s6113_s23 + $0xc8] sm:$0xff]  ;;  %v1806_v56 = vld [vmem:[%s6113_s23 + $0x180] sm:$0xff] }
  0xc9   : > { %5344 = vmatprep.subr.bf16.mxu1 %v5555_v57  ;;  %v1830_v57 = vld [vmem:[%s6113_s23 + $0x240] sm:$0xff]  ;;  %v4954_v58 = vcombine.low %v1759_v52, %v1783_v55 }
  0xca   : > { %v5001_v60 = vcombine.high %v1806_v56, %v1830_v57  ;;  %v5000_v0 = vcombine.low %v1806_v56, %v1830_v57 }
  0xcb   : > { %5323 = vmatpush3.bf16.msra.mxu0 %v5556_v59  ;;  %v4955_v59 = vcombine.high %v1759_v52, %v1783_v55 }
  0xcc   : > { %5352 = vmatprep.subr.bf16.mxu0 %v5559_v62  ;;  %5345 = vmatpush3.bf16.msra.mxu1 %v5557_v63  ;;  %v1831_v62 = vld [vmem:[%s6113_s23 + $0x248] sm:$0xff] }
  0xcd   : > { %5374 = vmatprep.subr.bf16.mxu1 %v5560_v3  ;;  %v5003_v63 = vcombine.high %v1807_v61, %v1831_v62  ;;  %v5002_v1 = vcombine.low %v1807_v61, %v1831_v62  ;;  %v1878_v3 = vld [vmem:[%s6113_s23 + $0x3c0] sm:$0xff] }
  0xce   : > { %1629 = vmatmul.mubr.bf16.vlgmr.msra.gmra.mrb[8].mxu0 %v397_v2  ;;  %v1854_v2 = vld [vmem:[%s6113_s23 + $0x300] sm:$0xff] }
  0xcf   : > { %5353 = vmatpush3.bf16.msra.mxu0 %v5561_v6  ;;  %1669 = vmatmul.mubr.bf16.vlgmr.msra.gmra.mrb[8].mxu1 %v399_v7  ;;  %v5049_v5 = vcombine.high %v1854_v2, %v1878_v3  ;;  %v1879_v6 = vld [vmem:[%s6113_s23 + $0x3c8] sm:$0xff]  ;;  %v5048_v7 = vcombine.low %v1854_v2, %v1878_v3 }
  0xd0   : > { %5354 = vmatprep.subr.bf16.mxu0 %v5563_v8  ;;  %5375 = vmatpush3.bf16.msra.mxu1 %v5562_v10  ;;  %v5050_v8 = vcombine.low %v1855_v4, %v1879_v6  ;;  %v5051_v9 = vcombine.high %v1855_v4, %v1879_v6  ;;  %v1902_v10 = vld [vmem:[%s6113_s23 + $0x480] sm:$0xff] }
  0xd1   : > { %5376 = vmatprep.subr.bf16.mxu1 %v5564_v11  ;;  %1708 = vmatprep.mubr.bf16.mxu0 %v402_v46  ;;  %v1926_v11 = vld [vmem:[%s6113_s23 + $0x540] sm:$0xff] }
  0xd2   : > { %1748 = vmatprep.mubr.bf16.mxu1 %v404_v49 }
  0xd3   : > { %5355 = vmatpush3.bf16.msra.mxu0 %v5565_v12  ;;  %v1903_v12 = vld [vmem:[%s6113_s23 + $0x488] sm:$0xff] }
  0xd4   : > { %5356 = vmatprep.subr.bf16.mxu0 %v5567_v13  ;;  %5377 = vmatpush3.bf16.msra.mxu1 %v5566_v14  ;;  %v5097_v13 = vcombine.high %v1902_v10, %v1926_v11  ;;  %v1927_v14 = vld [vmem:[%s6113_s23 + $0x548] sm:$0xff] }
  0xd5   : > { %5378 = vmatprep.subr.bf16.mxu1 %v5568_v15  ;;  %v5096_v15 = vcombine.low %v1902_v10, %v1926_v11 }
  0xd7   : > { %5357 = vmatpush3.bf16.msra.mxu0 %v5569_v16  ;;  %v5098_v16 = vcombine.low %v1903_v12, %v1927_v14 }
  0xd8   : > { %5358 = vmatprep.subr.bf16.mxu0 %v5571_v17  ;;  %5379 = vmatpush3.bf16.msra.mxu1 %v5570_v18  ;;  %v5099_v17 = vcombine.high %v1903_v12, %v1927_v14  ;;  %v6545_v18 = vld [vmem:[%s6113_s23 + $0x10] sm:$0xff] }
  0xd9   : > { %5380 = vmatprep.subr.bf16.mxu1 %v5572_v19  ;;  %v6548_v19 = vld [vmem:[%s6113_s23 + $0xd0] sm:$0xff] }
  0xda   : > { %v1808_v14 = vld [vmem:[%s6113_s23 + $0x190] sm:$0xff] }
  0xdb   : > { %5359 = vmatpush3.bf16.msra.mxu0 %v5573_v20  ;;  %v6551_v20 = vld [vmem:[%s6113_s23 + $0x18] sm:$0xff] }
  0xdc   : > { %5360 = vmatprep.subr.bf16.mxu0 %v5575_v21  ;;  %5381 = vmatpush3.bf16.msra.mxu1 %v5574_v22  ;;  %v5919_v21 = vmov 0   ;;  %v4956_v22 = vcombine.low %v6545_v18, %v6548_v19 }
  0xdd   : > { %5382 = vmatprep.subr.bf16.mxu1 %v5576_v23  ;;  %v4957_v23 = vcombine.high %v6545_v18, %v6548_v19 }
  0xdf   : > { %5361 = vmatpush3.bf16.msra.mxu0 %v5577_v24  ;;  %v6559_v24 = vld [vmem:[%s6113_s23 + $0xd8] sm:$0xff] }
  0xe0   : > { %5362 = vmatprep.subr.bf16.mxu0 %v5579_v25  ;;  %5383 = vmatpush3.bf16.msra.mxu1 %v5578_v26  ;;  %v4958_v25 = vcombine.low %v6551_v20, %v6559_v24  ;;  %v4959_v26 = vcombine.high %v6551_v20, %v6559_v24  ;;  %v1762_v24 = vld [vmem:[%s6113_s23 + $0x20] sm:$0xff] }
  0xe1   : > { %5384 = vmatprep.subr.bf16.mxu1 %v5580_v27 }
  0xe3   : > { %5363 = vmatpush3.bf16.msra.mxu0 %v5581_v28  ;;  %v4823_v28 = vld [vmem:[#allocation2] ss:$0 sm:$0xff] }
  0xe4   : > { %5364 = vmatprep.subr.bf16.mxu0 %v5583_v29  ;;  %5385 = vmatpush3.bf16.msra.mxu1 %v5582_v31 }
  0xe5   : > { %5386 = vmatprep.subr.bf16.mxu1 %v5584_v32 }
  0xe7   : > { %5365 = vmatpush3.bf16.msra.mxu0 %v5585_v33 }
  0xe8   : > { %5366 = vmatprep.subr.bf16.mxu0 %v5587_v34  ;;  %5387 = vmatpush3.bf16.msra.mxu1 %v5586_v36 }
  0xe9   : > { %5388 = vmatprep.subr.bf16.mxu1 %v5588_v37 }
  0xeb   : > { %5367 = vmatpush3.bf16.msra.mxu0 %v5589_v38 }
  0xec   : > { %5389 = vmatpush3.bf16.msra.mxu1 %v5590_v42  ;;  %3166 = vmatprep.subr.bf16.mxu0 %v4953_v54 }
  0xed   : > { %3207 = vmatprep.subr.bf16.mxu1 %v4955_v59 }
  0xee   : > { %1709 = vmatmul.mubr.bf16.vlgmr.msra.gmra.mrb[12].mxu0 %v401_v45 }
  0xef   : > { %1749 = vmatmul.mubr.bf16.vlgmr.msra.gmra.mrb[12].mxu1 %v403_v48  ;;  %3167 = vmatpush1.bf16.msra.mxu0 %v4952_v53 }
  0xf0   : > { %3208 = vmatpush1.bf16.msra.mxu1 %v4954_v58  ;;  %3168 = vmatprep.subr.bf16.mxu0 %v5001_v60 }
  0xf1   : > { %3209 = vmatprep.subr.bf16.mxu1 %v5003_v63  ;;  %3198 = vmatprep.mubr.bf16.mxu0 %v5919_v21 }
  0xf2   : > { %3239 = vmatprep.mubr.bf16.mxu1 %v5919_v21 }
  0xf3   : > { %3169 = vmatpush1.bf16.msra.mxu0 %v5000_v0 }
  0xf4   : > { %3210 = vmatpush1.bf16.msra.mxu1 %v5002_v1  ;;  %3170 = vmatprep.subr.bf16.mxu0 %v5049_v5 }
  0xf5   : > { %3211 = vmatprep.subr.bf16.mxu1 %v5051_v9 }
  0xf7   : > { %3171 = vmatpush1.bf16.msra.mxu0 %v5048_v7 }
  0xf8   : > { %3212 = vmatpush1.bf16.msra.mxu1 %v5050_v8  ;;  %3172 = vmatprep.subr.bf16.mxu0 %v5097_v13 }
  0xf9   : > { %3213 = vmatprep.subr.bf16.mxu1 %v5099_v17  ;;  %v1833_v17 = vld [vmem:[%s6113_s23 + $0x258] sm:$0xff] }
  0xfb   : > { %3173 = vmatpush1.bf16.msra.mxu0 %v5096_v15  ;;  %v1832_v15 = vld [vmem:[%s6113_s23 + $0x250] sm:$0xff] }
  0xfc   : > { %3214 = vmatpush1.bf16.msra.mxu1 %v5098_v16  ;;  %3248 = vmatprep.subr.bf16.mxu0 %v4957_v23  ;;  %v1809_v16 = vld [vmem:[%s6113_s23 + $0x198] sm:$0xff] }
  0xfd   : > { %3289 = vmatprep.subr.bf16.mxu1 %v4959_v26 }
 0x161   : > { %v5236_v27 = vpop.f32.mrb[0].mxu0 }
 0x162   : > { %v5237_v29 = vpop.f32.mrb[1].mxu0  ;;  %v5258_v31 = vpop.f32.mrb[0].mxu1 }
 0x163   : > { %v5238_v32 = vadd.f32 %v5237_v29, %v5236_v27  ;;  %v5239_v33 = vpop.f32.mrb[2].mxu0  ;;  %v5259_v34 = vpop.f32.mrb[1].mxu1  ;;  %v5005_v27 = vcombine.high %v1808_v14, %v1832_v15  ;;  %v1856_v29 = vld [vmem:[%s6113_s23 + $0x310] sm:$0xff] }
 0x164   : > { %v5240_v36 = vpop.f32.mrb[3].mxu0  ;;  %v5260_v38 = vadd.f32 %v5259_v34, %v5258_v31  ;;  %v5261_v39 = vpop.f32.mrb[2].mxu1  ;;  %v1880_v31 = vld [vmem:[%s6113_s23 + $0x3d0] sm:$0xff]  ;;  %v1881_v33 = vld [vmem:[%s6113_s23 + $0x3d8] sm:$0xff]  ;;  %v5004_v34 = vcombine.low %v1808_v14, %v1832_v15 }
 0x165   : > { %v1471_v37 = vadd.f32 %v5238_v32, %v4823_v28  ;;  %v5262_v40 = vpop.f32.mrb[3].mxu1  ;;  %v5007_v28 = vcombine.high %v1809_v16, %v1833_v17  ;;  %v1857_v32 = vld [vmem:[%s6113_s23 + $0x318] sm:$0xff]  ;;  %v5006_v36 = vcombine.low %v1809_v16, %v1833_v17  ;;  %v1904_v39 = vld [vmem:[%s6113_s23 + $0x490] sm:$0xff]  ;;  %v5052_v18 = vcombine.low %v1856_v29, %v1880_v31 }
 0x166   : > { %v1928_v40 = vld [vmem:[%s6113_s23 + $0x550] sm:$0xff]  ;;  %v5054_v19 = vcombine.low %v1857_v32, %v1881_v33 }
 0x167   : > { %v1511_v41 = vadd.f32 %v5260_v38, %v1471_v37  ;;  %v5053_v37 = vcombine.high %v1856_v29, %v1880_v31  ;;  %v5055_v38 = vcombine.high %v1857_v32, %v1881_v33  ;;  %v5101_v20 = vcombine.high %v1904_v39, %v1928_v40  ;;  %v1812_v17 = vld [vmem:[%s6113_s23 + $0x1b0] sm:$0xff] }
 0x181   : > { %v5280_v42 = vpop.f32.mrb[4].mxu0 }
 0x182   : > { %v5281_v43 = vpop.f32.mrb[5].mxu0  ;;  %v5302_v44 = vpop.f32.mrb[4].mxu1 }
 0x183   : > { %v5282_v45 = vadd.f32 %v5281_v43, %v5280_v42  ;;  %v5283_v46 = vpop.f32.mrb[6].mxu0  ;;  %v5303_v47 = vpop.f32.mrb[5].mxu1  ;;  %v1929_v42 = vld [vmem:[%s6113_s23 + $0x558] sm:$0xff]  ;;  %v1763_v43 = vld [vmem:[%s6113_s23 + $0x28] sm:$0xff] }
 0x184   : > { %v5284_v48 = vpop.f32.mrb[7].mxu0  ;;  %v5304_v50 = vadd.f32 %v5303_v47, %v5302_v44  ;;  %v5305_v51 = vpop.f32.mrb[6].mxu1  ;;  %v1787_v44 = vld [vmem:[%s6113_s23 + $0xe8] sm:$0xff] }
 0x185   : > { %v1551_v49 = vadd.f32 %v5282_v45, %v1511_v41  ;;  %v5306_v52 = vpop.f32.mrb[7].mxu1  ;;  %v1905_v41 = vld [vmem:[%s6113_s23 + $0x498] sm:$0xff]  ;;  %v5100_v45 = vcombine.low %v1904_v39, %v1928_v40  ;;  %v4963_v48 = vcombine.high %v1763_v43, %v1787_v44  ;;  %v1811_v51 = vld [vmem:[%s6113_s23 + $0x1a8] sm:$0xff] }
 0x186   : > { %v5102_v46 = vcombine.low %v1905_v41, %v1929_v42  ;;  %v1835_v52 = vld [vmem:[%s6113_s23 + $0x268] sm:$0xff] }
 0x187   : > { %v1591_v53 = vadd.f32 %v5304_v50, %v1551_v49  ;;  %v1810_v49 = vld [vmem:[%s6113_s23 + $0x1a0] sm:$0xff] }
 0x188   : > { %v1834_v50 = vld [vmem:[%s6113_s23 + $0x260] sm:$0xff] }
 0x1a1   : > { %v5324_v54 = vpop.f32.mrb[8].mxu0 }
 0x1a2   : > { %v5325_v55 = vpop.f32.mrb[9].mxu0  ;;  %v5346_v56 = vpop.f32.mrb[8].mxu1 }
 0x1a3   : > { %v5326_v57 = vadd.f32 %v5325_v55, %v5324_v54  ;;  %v5327_v58 = vpop.f32.mrb[10].mxu0  ;;  %v5347_v59 = vpop.f32.mrb[9].mxu1  ;;  %v4962_v54 = vcombine.low %v1763_v43, %v1787_v44  ;;  %v5009_v55 = vcombine.high %v1810_v49, %v1834_v50 }
 0x1a4   : > { %v5328_v60 = vpop.f32.mrb[11].mxu0  ;;  %v5348_v62 = vadd.f32 %v5347_v59, %v5346_v56  ;;  %v5349_v63 = vpop.f32.mrb[10].mxu1  ;;  %v5011_v56 = vcombine.high %v1811_v51, %v1835_v52  ;;  %v1882_v58 = vld [vmem:[%s6113_s23 + $0x3e0] sm:$0xff]  ;;  %v1859_v59 = vld [vmem:[%s6113_s23 + $0x328] sm:$0xff] }
 0x1a5   : > { %v1631_v61 = vadd.f32 %v5326_v57, %v1591_v53  ;;  %v5350_v0 = vpop.f32.mrb[11].mxu1  ;;  %v1858_v57 = vld [vmem:[%s6113_s23 + $0x320] sm:$0xff]  ;;  %v1883_v60 = vld [vmem:[%s6113_s23 + $0x3e8] sm:$0xff] }
 0x1a6   : > { %v5057_v63 = vcombine.high %v1858_v57, %v1882_v58  ;;  %v5059_v0 = vcombine.high %v1859_v59, %v1883_v60 }
 0x1a7   : > { %v1671_v1 = vadd.f32 %v5348_v62, %v1631_v61  ;;  %v5008_v61 = vcombine.low %v1810_v49, %v1834_v50  ;;  %v5010_v62 = vcombine.low %v1811_v51, %v1835_v52 }
 0x1c1   : > { %v5368_v2 = vpop.f32.mrb[12].mxu0 }
 0x1c2   : > { %v5369_v3 = vpop.f32.mrb[13].mxu0  ;;  %v5390_v4 = vpop.f32.mrb[12].mxu1 }
 0x1c3   : > { %v5370_v5 = vadd.f32 %v5369_v3, %v5368_v2  ;;  %v5371_v6 = vpop.f32.mrb[14].mxu0  ;;  %v5391_v7 = vpop.f32.mrb[13].mxu1  ;;  %v1930_v2 = vld [vmem:[%s6113_s23 + $0x560] sm:$0xff]  ;;  %v1907_v3 = vld [vmem:[%s6113_s23 + $0x4a8] sm:$0xff] }
 0x1c4   : > { %v5372_v8 = vpop.f32.mrb[15].mxu0  ;;  %v5392_v10 = vadd.f32 %v5391_v7, %v5390_v4  ;;  %v5393_v11 = vpop.f32.mrb[14].mxu1  ;;  %v1931_v4 = vld [vmem:[%s6113_s23 + $0x568] sm:$0xff]  ;;  %v5058_v6 = vcombine.low %v1859_v59, %v1883_v60 }
 0x1c5   : > { %v1711_v9 = vadd.f32 %v5370_v5, %v1671_v1  ;;  %v5394_v12 = vpop.f32.mrb[15].mxu1  ;;  %v1906_v1 = vld [vmem:[%s6113_s23 + $0x4a0] sm:$0xff]  ;;  %v5056_v5 = vcombine.low %v1858_v57, %v1882_v58  ;;  %v5107_v8 = vcombine.high %v1907_v3, %v1931_v4  ;;  %v1765_v11 = vld [vmem:[%s6113_s23 + $0x38] sm:$0xff]  ;;  %v5106_v14 = vcombine.low %v1907_v3, %v1931_v4 }
 0x1c6   : > { %v5105_v7 = vcombine.high %v1906_v1, %v1930_v2  ;;  %v1789_v12 = vld [vmem:[%s6113_s23 + $0xf8] sm:$0xff] }
 0x1c7   : > { %v1751_v13 = vadd.f32 %v5392_v10, %v1711_v9  ;;  %v1764_v9 = vld [vmem:[%s6113_s23 + $0x30] sm:$0xff]  ;;  %v4967_v16 = vcombine.high %v1765_v11, %v1789_v12  ;;  %v4966_v31 = vcombine.low %v1765_v11, %v1789_v12 }
 0x1c8   : > { %v1788_v10 = vld [vmem:[%s6113_s23 + $0xf0] sm:$0xff] }
 0x1c9   : > { %v1756_v23 = vmax.f32 %v1751_v13, 0.0  ;;  %v5104_v13 = vcombine.low %v1906_v1, %v1930_v2  ;;  %v4965_v15 = vcombine.high %v1764_v9, %v1788_v10  ;;  %v4964_v29 = vcombine.low %v1764_v9, %v1788_v10 }
 0x1cb   : > { %v6570_v26 = vpack.c.bf16 %v1756_v23, %v1756_v23  ;;  %v1836_v23 = vld [vmem:[%s6113_s23 + $0x270] sm:$0xff] }
 0x1cc   : > { %v5013_v32 = vcombine.high %v1812_v17, %v1836_v23  ;;  %v5012_v39 = vcombine.low %v1812_v17, %v1836_v23 }
 0x1cd   : > { %5144 = vmatmul.mubr.msk.bf16.vlgmr.msra.gmra.mrb[16].mxu0 %vm3162_vm0, %v6570_v26  ;;  %5145 = vmatmul.mubr.msk.bf16.vlgmr.msra.gmra.mrb[16].mxu1 %vm3162_vm0, %v6570_v26 }
 0x1ce   : > { %3249 = vmatpush1.bf16.msra.mxu0 %v4956_v22  ;;  %3290 = vmatpush1.bf16.msra.mxu1 %v4958_v25  ;;  %v5103_v22 = vcombine.high %v1905_v41, %v1929_v42  ;;  %v1786_v25 = vld [vmem:[%s6113_s23 + $0xe0] sm:$0xff] }
 0x1cf   : > { %3250 = vmatprep.subr.bf16.mxu0 %v5005_v27  ;;  %3291 = vmatprep.subr.bf16.mxu1 %v5007_v28  ;;  %v4961_v47 = vcombine.high %v1762_v24, %v1786_v25  ;;  %v4960_v53 = vcombine.low %v1762_v24, %v1786_v25  ;;  %v1813_v27 = vld [vmem:[%s6113_s23 + $0x1b8] sm:$0xff] }
 0x1d0   : > { %3280 = vmatprep.mubr.bf16.mxu0 %v5919_v21  ;;  %3321 = vmatprep.mubr.bf16.mxu1 %v5919_v21  ;;  %v1837_v28 = vld [vmem:[%s6113_s23 + $0x278] sm:$0xff] }
 0x1d1   : > { %v5015_v33 = vcombine.high %v1813_v27, %v1837_v28  ;;  %v5014_v40 = vcombine.low %v1813_v27, %v1837_v28 }
 0x1d2   : > { %3251 = vmatpush1.bf16.msra.mxu0 %v5004_v34  ;;  %3292 = vmatpush1.bf16.msra.mxu1 %v5006_v36  ;;  %v1860_v34 = vld [vmem:[%s6113_s23 + $0x330] sm:$0xff] }
 0x1d3   : > { %3252 = vmatprep.subr.bf16.mxu0 %v5053_v37  ;;  %3293 = vmatprep.subr.bf16.mxu1 %v5055_v38  ;;  %v1884_v36 = vld [vmem:[%s6113_s23 + $0x3f0] sm:$0xff]  ;;  %v1861_v37 = vld [vmem:[%s6113_s23 + $0x338] sm:$0xff] }
 0x1d4   : > { %v1885_v38 = vld [vmem:[%s6113_s23 + $0x3f8] sm:$0xff]  ;;  %v5061_v41 = vcombine.high %v1860_v34, %v1884_v36  ;;  %v5060_v24 = vcombine.low %v1860_v34, %v1884_v36 }
 0x1d5   : > { %v5063_v42 = vcombine.high %v1861_v37, %v1885_v38  ;;  %v5062_v25 = vcombine.low %v1861_v37, %v1885_v38 }
 0x1d6   : > { %3253 = vmatpush1.bf16.msra.mxu0 %v5052_v18  ;;  %3294 = vmatpush1.bf16.msra.mxu1 %v5054_v19  ;;  %v1908_v18 = vld [vmem:[%s6113_s23 + $0x4b0] sm:$0xff] }
 0x1d7   : > { %3254 = vmatprep.subr.bf16.mxu0 %v5101_v20  ;;  %3295 = vmatprep.subr.bf16.mxu1 %v5103_v22  ;;  %v1932_v19 = vld [vmem:[%s6113_s23 + $0x570] sm:$0xff]  ;;  %v1909_v20 = vld [vmem:[%s6113_s23 + $0x4b8] sm:$0xff] }
 0x1d8   : > { %v1933_v22 = vld [vmem:[%s6113_s23 + $0x578] sm:$0xff]  ;;  %v5109_v43 = vcombine.high %v1908_v18, %v1932_v19  ;;  %v5108_v49 = vcombine.low %v1908_v18, %v1932_v19 }
 0x1d9   : > { %v5111_v44 = vcombine.high %v1909_v20, %v1933_v22  ;;  %v5110_v50 = vcombine.low %v1909_v20, %v1933_v22 }
 0x1da   : > { %3255 = vmatpush1.bf16.msra.mxu0 %v5100_v45  ;;  %3296 = vmatpush1.bf16.msra.mxu1 %v5102_v46  ;;  %v1766_v45 = vld [vmem:[%s6113_s23 + $0x40] sm:$0xff] }
 0x1db   : > { %3330 = vmatprep.subr.bf16.mxu0 %v4961_v47  ;;  %3371 = vmatprep.subr.bf16.mxu1 %v4963_v48  ;;  %v1790_v46 = vld [vmem:[%s6113_s23 + $0x100] sm:$0xff]  ;;  %v1767_v47 = vld [vmem:[%s6113_s23 + $0x48] sm:$0xff] }
 0x1dc   : > { %v1791_v48 = vld [vmem:[%s6113_s23 + $0x108] sm:$0xff]  ;;  %v4969_v51 = vcombine.high %v1766_v45, %v1790_v46  ;;  %v4968_v57 = vcombine.low %v1766_v45, %v1790_v46 }
 0x1dd   : > { %5146 = vmatmul.mubr.msk.bf16.vlgmr.msra.gmra.mrb[20].mxu0 %vm3162_vm0, %v6570_v26  ;;  %5147 = vmatmul.mubr.msk.bf16.vlgmr.msra.gmra.mrb[20].mxu1 %vm3162_vm0, %v6570_v26  ;;  %v4971_v52 = vcombine.high %v1767_v47, %v1791_v48  ;;  %v4970_v58 = vcombine.low %v1767_v47, %v1791_v48 }
 0x1de   : > { %3331 = vmatpush1.bf16.msra.mxu0 %v4960_v53  ;;  %3372 = vmatpush1.bf16.msra.mxu1 %v4962_v54  ;;  %v1814_v53 = vld [vmem:[%s6113_s23 + $0x1c0] sm:$0xff] }
 0x1df   : > { %3332 = vmatprep.subr.bf16.mxu0 %v5009_v55  ;;  %3373 = vmatprep.subr.bf16.mxu1 %v5011_v56  ;;  %v1838_v54 = vld [vmem:[%s6113_s23 + $0x280] sm:$0xff]  ;;  %v1815_v55 = vld [vmem:[%s6113_s23 + $0x1c8] sm:$0xff] }
 0x1e0   : > { %3362 = vmatprep.mubr.bf16.mxu0 %v5919_v21  ;;  %3403 = vmatprep.mubr.bf16.mxu1 %v5919_v21  ;;  %v1839_v56 = vld [vmem:[%s6113_s23 + $0x288] sm:$0xff]  ;;  %v5017_v59 = vcombine.high %v1814_v53, %v1838_v54  ;;  %v5016_v1 = vcombine.low %v1814_v53, %v1838_v54 }
 0x1e1   : > { %v5019_v60 = vcombine.high %v1815_v55, %v1839_v56  ;;  %v5018_v2 = vcombine.low %v1815_v55, %v1839_v56 }
 0x1e2   : > { %3333 = vmatpush1.bf16.msra.mxu0 %v5008_v61  ;;  %3374 = vmatpush1.bf16.msra.mxu1 %v5010_v62  ;;  %v1862_v61 = vld [vmem:[%s6113_s23 + $0x340] sm:$0xff] }
 0x1e3   : > { %3334 = vmatprep.subr.bf16.mxu0 %v5057_v63  ;;  %3375 = vmatprep.subr.bf16.mxu1 %v5059_v0  ;;  %v1886_v62 = vld [vmem:[%s6113_s23 + $0x400] sm:$0xff]  ;;  %v1863_v63 = vld [vmem:[%s6113_s23 + $0x348] sm:$0xff] }
 0x1e4   : > { %v1887_v0 = vld [vmem:[%s6113_s23 + $0x408] sm:$0xff]  ;;  %v5065_v3 = vcombine.high %v1862_v61, %v1886_v62  ;;  %v5064_v9 = vcombine.low %v1862_v61, %v1886_v62 }
 0x1e5   : > { %v5067_v4 = vcombine.high %v1863_v63, %v1887_v0  ;;  %v5066_v10 = vcombine.low %v1863_v63, %v1887_v0 }
 0x1e6   : > { %3335 = vmatpush1.bf16.msra.mxu0 %v5056_v5  ;;  %3376 = vmatpush1.bf16.msra.mxu1 %v5058_v6  ;;  %v1910_v5 = vld [vmem:[%s6113_s23 + $0x4c0] sm:$0xff] }
 0x1e7   : > { %3336 = vmatprep.subr.bf16.mxu0 %v5105_v7  ;;  %3377 = vmatprep.subr.bf16.mxu1 %v5107_v8  ;;  %v1934_v6 = vld [vmem:[%s6113_s23 + $0x580] sm:$0xff]  ;;  %v1911_v7 = vld [vmem:[%s6113_s23 + $0x4c8] sm:$0xff] }
 0x1e8   : > { %v1935_v8 = vld [vmem:[%s6113_s23 + $0x588] sm:$0xff]  ;;  %v5113_v11 = vcombine.high %v1910_v5, %v1934_v6  ;;  %v5112_v17 = vcombine.low %v1910_v5, %v1934_v6 }
 0x1e9   : > { %v5115_v12 = vcombine.high %v1911_v7, %v1935_v8  ;;  %v5114_v23 = vcombine.low %v1911_v7, %v1935_v8 }
 0x1ea   : > { %3337 = vmatpush1.bf16.msra.mxu0 %v5104_v13  ;;  %3378 = vmatpush1.bf16.msra.mxu1 %v5106_v14  ;;  %v1768_v13 = vld [vmem:[%s6113_s23 + $0x50] sm:$0xff] }
 0x1eb   : > { %3412 = vmatprep.subr.bf16.mxu0 %v4965_v15  ;;  %3453 = vmatprep.subr.bf16.mxu1 %v4967_v16  ;;  %v1792_v14 = vld [vmem:[%s6113_s23 + $0x110] sm:$0xff]  ;;  %v1769_v15 = vld [vmem:[%s6113_s23 + $0x58] sm:$0xff] }
 0x1ec   : > { %v1793_v16 = vld [vmem:[%s6113_s23 + $0x118] sm:$0xff]  ;;  %v4973_v27 = vcombine.high %v1768_v13, %v1792_v14  ;;  %v4972_v34 = vcombine.low %v1768_v13, %v1792_v14 }
 0x1ed   : > { %5148 = vmatmul.mubr.msk.bf16.vlgmr.msra.gmra.mrb[24].mxu0 %vm3162_vm0, %v6570_v26  ;;  %5149 = vmatmul.mubr.msk.bf16.vlgmr.msra.gmra.mrb[24].mxu1 %vm3162_vm0, %v6570_v26  ;;  %v4975_v28 = vcombine.high %v1769_v15, %v1793_v16  ;;  %v4974_v36 = vcombine.low %v1769_v15, %v1793_v16 }
 0x1ee   : > { %3413 = vmatpush1.bf16.msra.mxu0 %v4964_v29  ;;  %3454 = vmatpush1.bf16.msra.mxu1 %v4966_v31  ;;  %v1816_v29 = vld [vmem:[%s6113_s23 + $0x1d0] sm:$0xff] }
 0x1ef   : > { %3414 = vmatprep.subr.bf16.mxu0 %v5013_v32  ;;  %3455 = vmatprep.subr.bf16.mxu1 %v5015_v33  ;;  %v1840_v31 = vld [vmem:[%s6113_s23 + $0x290] sm:$0xff]  ;;  %v1817_v32 = vld [vmem:[%s6113_s23 + $0x1d8] sm:$0xff] }
 0x1f0   : > { %3444 = vmatprep.mubr.bf16.mxu0 %v5919_v21  ;;  %3485 = vmatprep.mubr.bf16.mxu1 %v5919_v21  ;;  %v1841_v33 = vld [vmem:[%s6113_s23 + $0x298] sm:$0xff]  ;;  %v5021_v37 = vcombine.high %v1816_v29, %v1840_v31  ;;  %v5020_v18 = vcombine.low %v1816_v29, %v1840_v31 }
 0x1f1   : > { %v5023_v38 = vcombine.high %v1817_v32, %v1841_v33  ;;  %v5022_v19 = vcombine.low %v1817_v32, %v1841_v33 }
 0x1f2   : > { %3415 = vmatpush1.bf16.msra.mxu0 %v5012_v39  ;;  %3456 = vmatpush1.bf16.msra.mxu1 %v5014_v40  ;;  %v1864_v39 = vld [vmem:[%s6113_s23 + $0x350] sm:$0xff] }
 0x1f3   : > { %3416 = vmatprep.subr.bf16.mxu0 %v5061_v41  ;;  %3457 = vmatprep.subr.bf16.mxu1 %v5063_v42  ;;  %v1888_v40 = vld [vmem:[%s6113_s23 + $0x410] sm:$0xff]  ;;  %v1865_v41 = vld [vmem:[%s6113_s23 + $0x358] sm:$0xff] }
 0x1f4   : > { %v1889_v42 = vld [vmem:[%s6113_s23 + $0x418] sm:$0xff]  ;;  %v5069_v20 = vcombine.high %v1864_v39, %v1888_v40  ;;  %v5068_v45 = vcombine.low %v1864_v39, %v1888_v40 }
 0x1f5   : > { %v5071_v22 = vcombine.high %v1865_v41, %v1889_v42  ;;  %v5070_v46 = vcombine.low %v1865_v41, %v1889_v42 }
 0x1f6   : > { %3417 = vmatpush1.bf16.msra.mxu0 %v5060_v24  ;;  %3458 = vmatpush1.bf16.msra.mxu1 %v5062_v25  ;;  %v1912_v24 = vld [vmem:[%s6113_s23 + $0x4d0] sm:$0xff] }
 0x1f7   : > { %3418 = vmatprep.subr.bf16.mxu0 %v5109_v43  ;;  %3459 = vmatprep.subr.bf16.mxu1 %v5111_v44  ;;  %v1936_v25 = vld [vmem:[%s6113_s23 + $0x590] sm:$0xff]  ;;  %v1913_v43 = vld [vmem:[%s6113_s23 + $0x4d8] sm:$0xff] }
 0x1f8   : > { %v1937_v44 = vld [vmem:[%s6113_s23 + $0x598] sm:$0xff]  ;;  %v5117_v47 = vcombine.high %v1912_v24, %v1936_v25  ;;  %v5116_v53 = vcombine.low %v1912_v24, %v1936_v25 }
 0x1f9   : > { %v5119_v48 = vcombine.high %v1913_v43, %v1937_v44  ;;  %v5118_v54 = vcombine.low %v1913_v43, %v1937_v44 }
 0x1fa   : > { %3419 = vmatpush1.bf16.msra.mxu0 %v5108_v49  ;;  %3460 = vmatpush1.bf16.msra.mxu1 %v5110_v50  ;;  %v1770_v49 = vld [vmem:[%s6113_s23 + $0x60] sm:$0xff] }
 0x1fb   : > { %3494 = vmatprep.subr.bf16.mxu0 %v4969_v51  ;;  %3535 = vmatprep.subr.bf16.mxu1 %v4971_v52  ;;  %v1794_v50 = vld [vmem:[%s6113_s23 + $0x120] sm:$0xff]  ;;  %v1771_v51 = vld [vmem:[%s6113_s23 + $0x68] sm:$0xff] }
 0x1fc   : > { %v1795_v52 = vld [vmem:[%s6113_s23 + $0x128] sm:$0xff]  ;;  %v4977_v55 = vcombine.high %v1770_v49, %v1794_v50  ;;  %v4976_v61 = vcombine.low %v1770_v49, %v1794_v50 }
 0x1fd   : > { %5150 = vmatmul.mubr.msk.bf16.vlgmr.msra.gmra.mrb[28].mxu0 %vm3162_vm0, %v6570_v26  ;;  %5151 = vmatmul.mubr.msk.bf16.vlgmr.msra.gmra.mrb[28].mxu1 %vm3162_vm0, %v6570_v26  ;;  %v4979_v56 = vcombine.high %v1771_v51, %v1795_v52  ;;  %v4978_v62 = vcombine.low %v1771_v51, %v1795_v52 }
 0x1fe   : > { %3495 = vmatpush1.bf16.msra.mxu0 %v4968_v57  ;;  %3536 = vmatpush1.bf16.msra.mxu1 %v4970_v58  ;;  %v1818_v57 = vld [vmem:[%s6113_s23 + $0x1e0] sm:$0xff] }
 0x1ff   : > { %3496 = vmatprep.subr.bf16.mxu0 %v5017_v59  ;;  %3537 = vmatprep.subr.bf16.mxu1 %v5019_v60  ;;  %v1842_v58 = vld [vmem:[%s6113_s23 + $0x2a0] sm:$0xff]  ;;  %v1819_v59 = vld [vmem:[%s6113_s23 + $0x1e8] sm:$0xff] }
 0x200   : > { %3526 = vmatprep.mubr.bf16.mxu0 %v5919_v21  ;;  %3567 = vmatprep.mubr.bf16.mxu1 %v5919_v21  ;;  %v1843_v60 = vld [vmem:[%s6113_s23 + $0x2a8] sm:$0xff]  ;;  %v5025_v63 = vcombine.high %v1818_v57, %v1842_v58  ;;  %v5024_v5 = vcombine.low %v1818_v57, %v1842_v58 }
 0x201   : > { %v5027_v0 = vcombine.high %v1819_v59, %v1843_v60  ;;  %v5026_v6 = vcombine.low %v1819_v59, %v1843_v60 }
 0x202   : > { %3497 = vmatpush1.bf16.msra.mxu0 %v5016_v1  ;;  %3538 = vmatpush1.bf16.msra.mxu1 %v5018_v2  ;;  %v1866_v1 = vld [vmem:[%s6113_s23 + $0x360] sm:$0xff] }
 0x203   : > { %3498 = vmatprep.subr.bf16.mxu0 %v5065_v3  ;;  %3539 = vmatprep.subr.bf16.mxu1 %v5067_v4  ;;  %v1890_v2 = vld [vmem:[%s6113_s23 + $0x420] sm:$0xff]  ;;  %v1867_v3 = vld [vmem:[%s6113_s23 + $0x368] sm:$0xff] }
 0x204   : > { %v1891_v4 = vld [vmem:[%s6113_s23 + $0x428] sm:$0xff]  ;;  %v5073_v7 = vcombine.high %v1866_v1, %v1890_v2  ;;  %v5072_v13 = vcombine.low %v1866_v1, %v1890_v2 }
 0x205   : > { %v5075_v8 = vcombine.high %v1867_v3, %v1891_v4  ;;  %v5074_v14 = vcombine.low %v1867_v3, %v1891_v4 }
 0x206   : > { %3499 = vmatpush1.bf16.msra.mxu0 %v5064_v9  ;;  %3540 = vmatpush1.bf16.msra.mxu1 %v5066_v10  ;;  %v1914_v9 = vld [vmem:[%s6113_s23 + $0x4e0] sm:$0xff] }
 0x207   : > { %3500 = vmatprep.subr.bf16.mxu0 %v5113_v11  ;;  %3541 = vmatprep.subr.bf16.mxu1 %v5115_v12  ;;  %v1938_v10 = vld [vmem:[%s6113_s23 + $0x5a0] sm:$0xff]  ;;  %v1915_v11 = vld [vmem:[%s6113_s23 + $0x4e8] sm:$0xff] }
 0x208   : > { %v1939_v12 = vld [vmem:[%s6113_s23 + $0x5a8] sm:$0xff]  ;;  %v5121_v15 = vcombine.high %v1914_v9, %v1938_v10  ;;  %v5120_v29 = vcombine.low %v1914_v9, %v1938_v10 }
 0x209   : > { %v5123_v16 = vcombine.high %v1915_v11, %v1939_v12  ;;  %v5122_v31 = vcombine.low %v1915_v11, %v1939_v12 }
 0x20a   : > { %3501 = vmatpush1.bf16.msra.mxu0 %v5112_v17  ;;  %3542 = vmatpush1.bf16.msra.mxu1 %v5114_v23  ;;  %v1772_v17 = vld [vmem:[%s6113_s23 + $0x70] sm:$0xff] }
 0x20b   : > { %3576 = vmatprep.subr.bf16.mxu0 %v4973_v27  ;;  %3617 = vmatprep.subr.bf16.mxu1 %v4975_v28  ;;  %v1796_v23 = vld [vmem:[%s6113_s23 + $0x130] sm:$0xff]  ;;  %v1773_v27 = vld [vmem:[%s6113_s23 + $0x78] sm:$0xff] }
 0x20c   : > { %v1797_v28 = vld [vmem:[%s6113_s23 + $0x138] sm:$0xff]  ;;  %v4981_v32 = vcombine.high %v1772_v17, %v1796_v23  ;;  %v4980_v39 = vcombine.low %v1772_v17, %v1796_v23 }
 0x20d   : > { %5152 = vmatmul.mubr.msk.bf16.vlgmr.msra.gmra.mrb[32].mxu0 %vm3162_vm0, %v6570_v26  ;;  %5153 = vmatmul.mubr.msk.bf16.vlgmr.msra.gmra.mrb[32].mxu1 %vm3162_vm0, %v6570_v26  ;;  %v4983_v33 = vcombine.high %v1773_v27, %v1797_v28  ;;  %v4982_v40 = vcombine.low %v1773_v27, %v1797_v28 }
 0x20e   : > { %3577 = vmatpush1.bf16.msra.mxu0 %v4972_v34  ;;  %3618 = vmatpush1.bf16.msra.mxu1 %v4974_v36  ;;  %v1820_v34 = vld [vmem:[%s6113_s23 + $0x1f0] sm:$0xff] }
 0x20f   : > { %3578 = vmatprep.subr.bf16.mxu0 %v5021_v37  ;;  %3619 = vmatprep.subr.bf16.mxu1 %v5023_v38  ;;  %v1844_v36 = vld [vmem:[%s6113_s23 + $0x2b0] sm:$0xff]  ;;  %v1821_v37 = vld [vmem:[%s6113_s23 + $0x1f8] sm:$0xff] }
 0x210   : > { %3608 = vmatprep.mubr.bf16.mxu0 %v5919_v21  ;;  %3649 = vmatprep.mubr.bf16.mxu1 %v5919_v21  ;;  %v1845_v38 = vld [vmem:[%s6113_s23 + $0x2b8] sm:$0xff]  ;;  %v5029_v41 = vcombine.high %v1820_v34, %v1844_v36  ;;  %v5028_v24 = vcombine.low %v1820_v34, %v1844_v36 }
 0x211   : > { %v5031_v42 = vcombine.high %v1821_v37, %v1845_v38  ;;  %v5030_v25 = vcombine.low %v1821_v37, %v1845_v38 }
 0x212   : > { %3579 = vmatpush1.bf16.msra.mxu0 %v5020_v18  ;;  %3620 = vmatpush1.bf16.msra.mxu1 %v5022_v19  ;;  %v1868_v18 = vld [vmem:[%s6113_s23 + $0x370] sm:$0xff] }
 0x213   : > { %3580 = vmatprep.subr.bf16.mxu0 %v5069_v20  ;;  %3621 = vmatprep.subr.bf16.mxu1 %v5071_v22  ;;  %v1892_v19 = vld [vmem:[%s6113_s23 + $0x430] sm:$0xff]  ;;  %v1869_v20 = vld [vmem:[%s6113_s23 + $0x378] sm:$0xff] }
 0x214   : > { %v1893_v22 = vld [vmem:[%s6113_s23 + $0x438] sm:$0xff]  ;;  %v5077_v43 = vcombine.high %v1868_v18, %v1892_v19  ;;  %v5076_v49 = vcombine.low %v1868_v18, %v1892_v19 }
 0x215   : > { %v5079_v44 = vcombine.high %v1869_v20, %v1893_v22  ;;  %v5078_v50 = vcombine.low %v1869_v20, %v1893_v22 }
 0x216   : > { %3581 = vmatpush1.bf16.msra.mxu0 %v5068_v45  ;;  %3622 = vmatpush1.bf16.msra.mxu1 %v5070_v46  ;;  %v1916_v45 = vld [vmem:[%s6113_s23 + $0x4f0] sm:$0xff] }
 0x217   : > { %3582 = vmatprep.subr.bf16.mxu0 %v5117_v47  ;;  %3623 = vmatprep.subr.bf16.mxu1 %v5119_v48  ;;  %v1940_v46 = vld [vmem:[%s6113_s23 + $0x5b0] sm:$0xff]  ;;  %v1917_v47 = vld [vmem:[%s6113_s23 + $0x4f8] sm:$0xff] }
 0x218   : > { %v1941_v48 = vld [vmem:[%s6113_s23 + $0x5b8] sm:$0xff]  ;;  %v5125_v51 = vcombine.high %v1916_v45, %v1940_v46  ;;  %v5124_v57 = vcombine.low %v1916_v45, %v1940_v46 }
 0x219   : > { %v5127_v52 = vcombine.high %v1917_v47, %v1941_v48  ;;  %v5126_v58 = vcombine.low %v1917_v47, %v1941_v48 }
 0x21a   : > { %3583 = vmatpush1.bf16.msra.mxu0 %v5116_v53  ;;  %3624 = vmatpush1.bf16.msra.mxu1 %v5118_v54  ;;  %v1774_v53 = vld [vmem:[%s6113_s23 + $0x80] sm:$0xff] }
 0x21b   : > { %3658 = vmatprep.subr.bf16.mxu0 %v4977_v55  ;;  %3699 = vmatprep.subr.bf16.mxu1 %v4979_v56  ;;  %v1798_v54 = vld [vmem:[%s6113_s23 + $0x140] sm:$0xff]  ;;  %v1775_v55 = vld [vmem:[%s6113_s23 + $0x88] sm:$0xff] }
 0x21c   : > { %v1799_v56 = vld [vmem:[%s6113_s23 + $0x148] sm:$0xff]  ;;  %v4985_v59 = vcombine.high %v1774_v53, %v1798_v54  ;;  %v4984_v1 = vcombine.low %v1774_v53, %v1798_v54 }
 0x21d   : > { %5154 = vmatmul.mubr.msk.bf16.vlgmr.msra.gmra.mrb[36].mxu0 %vm3162_vm0, %v6570_v26  ;;  %5155 = vmatmul.mubr.msk.bf16.vlgmr.msra.gmra.mrb[36].mxu1 %vm3162_vm0, %v6570_v26  ;;  %v4987_v60 = vcombine.high %v1775_v55, %v1799_v56  ;;  %v4986_v2 = vcombine.low %v1775_v55, %v1799_v56 }
 0x21e   : > { %3659 = vmatpush1.bf16.msra.mxu0 %v4976_v61  ;;  %3700 = vmatpush1.bf16.msra.mxu1 %v4978_v62  ;;  %v1822_v61 = vld [vmem:[%s6113_s23 + $0x200] sm:$0xff] }
 0x21f   : > { %3660 = vmatprep.subr.bf16.mxu0 %v5025_v63  ;;  %3701 = vmatprep.subr.bf16.mxu1 %v5027_v0  ;;  %v1846_v62 = vld [vmem:[%s6113_s23 + $0x2c0] sm:$0xff]  ;;  %v1823_v63 = vld [vmem:[%s6113_s23 + $0x208] sm:$0xff] }
 0x220   : > { %3690 = vmatprep.mubr.bf16.mxu0 %v5919_v21  ;;  %3731 = vmatprep.mubr.bf16.mxu1 %v5919_v21  ;;  %v1847_v0 = vld [vmem:[%s6113_s23 + $0x2c8] sm:$0xff]  ;;  %v5033_v3 = vcombine.high %v1822_v61, %v1846_v62  ;;  %v5032_v9 = vcombine.low %v1822_v61, %v1846_v62 }
 0x221   : > { %v5035_v4 = vcombine.high %v1823_v63, %v1847_v0  ;;  %v5034_v10 = vcombine.low %v1823_v63, %v1847_v0 }
 0x222   : > { %3661 = vmatpush1.bf16.msra.mxu0 %v5024_v5  ;;  %3702 = vmatpush1.bf16.msra.mxu1 %v5026_v6  ;;  %v1870_v5 = vld [vmem:[%s6113_s23 + $0x380] sm:$0xff] }
 0x223   : > { %3662 = vmatprep.subr.bf16.mxu0 %v5073_v7  ;;  %3703 = vmatprep.subr.bf16.mxu1 %v5075_v8  ;;  %v1894_v6 = vld [vmem:[%s6113_s23 + $0x440] sm:$0xff]  ;;  %v1871_v7 = vld [vmem:[%s6113_s23 + $0x388] sm:$0xff] }
 0x224   : > { %v1895_v8 = vld [vmem:[%s6113_s23 + $0x448] sm:$0xff]  ;;  %v5081_v11 = vcombine.high %v1870_v5, %v1894_v6  ;;  %v5080_v17 = vcombine.low %v1870_v5, %v1894_v6 }
 0x225   : > { %v5083_v12 = vcombine.high %v1871_v7, %v1895_v8  ;;  %v5082_v23 = vcombine.low %v1871_v7, %v1895_v8 }
 0x226   : > { %3663 = vmatpush1.bf16.msra.mxu0 %v5072_v13  ;;  %3704 = vmatpush1.bf16.msra.mxu1 %v5074_v14  ;;  %v1918_v13 = vld [vmem:[%s6113_s23 + $0x500] sm:$0xff] }
 0x227   : > { %3664 = vmatprep.subr.bf16.mxu0 %v5121_v15  ;;  %3705 = vmatprep.subr.bf16.mxu1 %v5123_v16  ;;  %v1942_v14 = vld [vmem:[%s6113_s23 + $0x5c0] sm:$0xff]  ;;  %v1919_v15 = vld [vmem:[%s6113_s23 + $0x508] sm:$0xff] }
 0x228   : > { %v1943_v16 = vld [vmem:[%s6113_s23 + $0x5c8] sm:$0xff]  ;;  %v5129_v27 = vcombine.high %v1918_v13, %v1942_v14  ;;  %v5128_v34 = vcombine.low %v1918_v13, %v1942_v14 }
 0x229   : > { %v5131_v28 = vcombine.high %v1919_v15, %v1943_v16  ;;  %v5130_v36 = vcombine.low %v1919_v15, %v1943_v16 }
 0x22a   : > { %3665 = vmatpush1.bf16.msra.mxu0 %v5120_v29  ;;  %3706 = vmatpush1.bf16.msra.mxu1 %v5122_v31  ;;  %v1776_v29 = vld [vmem:[%s6113_s23 + $0x90] sm:$0xff] }
 0x22b   : > { %3740 = vmatprep.subr.bf16.mxu0 %v4981_v32  ;;  %3781 = vmatprep.subr.bf16.mxu1 %v4983_v33  ;;  %v1800_v31 = vld [vmem:[%s6113_s23 + $0x150] sm:$0xff]  ;;  %v1777_v32 = vld [vmem:[%s6113_s23 + $0x98] sm:$0xff] }
 0x22c   : > { %v1801_v33 = vld [vmem:[%s6113_s23 + $0x158] sm:$0xff]  ;;  %v4989_v37 = vcombine.high %v1776_v29, %v1800_v31  ;;  %v4988_v18 = vcombine.low %v1776_v29, %v1800_v31 }
 0x22d   : > { %5156 = vmatmul.mubr.msk.bf16.vlgmr.msra.gmra.mrb[40].mxu0 %vm3162_vm0, %v6570_v26  ;;  %5157 = vmatmul.mubr.msk.bf16.vlgmr.msra.gmra.mrb[40].mxu1 %vm3162_vm0, %v6570_v26  ;;  %v4991_v38 = vcombine.high %v1777_v32, %v1801_v33  ;;  %v4990_v19 = vcombine.low %v1777_v32, %v1801_v33 }
 0x22e   : > { %3741 = vmatpush1.bf16.msra.mxu0 %v4980_v39  ;;  %3782 = vmatpush1.bf16.msra.mxu1 %v4982_v40  ;;  %v1824_v39 = vld [vmem:[%s6113_s23 + $0x210] sm:$0xff] }
 0x22f   : > { %3742 = vmatprep.subr.bf16.mxu0 %v5029_v41  ;;  %3783 = vmatprep.subr.bf16.mxu1 %v5031_v42  ;;  %v1848_v40 = vld [vmem:[%s6113_s23 + $0x2d0] sm:$0xff]  ;;  %v1825_v41 = vld [vmem:[%s6113_s23 + $0x218] sm:$0xff] }
 0x230   : > { %3772 = vmatprep.mubr.bf16.mxu0 %v5919_v21  ;;  %3813 = vmatprep.mubr.bf16.mxu1 %v5919_v21  ;;  %v1849_v42 = vld [vmem:[%s6113_s23 + $0x2d8] sm:$0xff]  ;;  %v5037_v20 = vcombine.high %v1824_v39, %v1848_v40  ;;  %v5036_v45 = vcombine.low %v1824_v39, %v1848_v40 }
 0x231   : > { %v5039_v22 = vcombine.high %v1825_v41, %v1849_v42  ;;  %v5038_v46 = vcombine.low %v1825_v41, %v1849_v42 }
 0x232   : > { %3743 = vmatpush1.bf16.msra.mxu0 %v5028_v24  ;;  %3784 = vmatpush1.bf16.msra.mxu1 %v5030_v25  ;;  %v1872_v24 = vld [vmem:[%s6113_s23 + $0x390] sm:$0xff] }
 0x233   : > { %3744 = vmatprep.subr.bf16.mxu0 %v5077_v43  ;;  %3785 = vmatprep.subr.bf16.mxu1 %v5079_v44  ;;  %v1896_v25 = vld [vmem:[%s6113_s23 + $0x450] sm:$0xff]  ;;  %v1873_v43 = vld [vmem:[%s6113_s23 + $0x398] sm:$0xff] }
 0x234   : > { %v1897_v44 = vld [vmem:[%s6113_s23 + $0x458] sm:$0xff]  ;;  %v5085_v47 = vcombine.high %v1872_v24, %v1896_v25  ;;  %v5084_v53 = vcombine.low %v1872_v24, %v1896_v25 }
 0x235   : > { %v5087_v48 = vcombine.high %v1873_v43, %v1897_v44  ;;  %v5086_v54 = vcombine.low %v1873_v43, %v1897_v44 }
 0x236   : > { %3745 = vmatpush1.bf16.msra.mxu0 %v5076_v49  ;;  %3786 = vmatpush1.bf16.msra.mxu1 %v5078_v50  ;;  %v1920_v49 = vld [vmem:[%s6113_s23 + $0x510] sm:$0xff] }
 0x237   : > { %3746 = vmatprep.subr.bf16.mxu0 %v5125_v51  ;;  %3787 = vmatprep.subr.bf16.mxu1 %v5127_v52  ;;  %v1944_v50 = vld [vmem:[%s6113_s23 + $0x5d0] sm:$0xff]  ;;  %v1921_v51 = vld [vmem:[%s6113_s23 + $0x518] sm:$0xff] }
 0x238   : > { %v1945_v52 = vld [vmem:[%s6113_s23 + $0x5d8] sm:$0xff]  ;;  %v5133_v55 = vcombine.high %v1920_v49, %v1944_v50  ;;  %v5132_v61 = vcombine.low %v1920_v49, %v1944_v50 }
 0x239   : > { %v5135_v56 = vcombine.high %v1921_v51, %v1945_v52  ;;  %v5134_v62 = vcombine.low %v1921_v51, %v1945_v52 }
 0x23a   : > { %3747 = vmatpush1.bf16.msra.mxu0 %v5124_v57  ;;  %3788 = vmatpush1.bf16.msra.mxu1 %v5126_v58  ;;  %v1778_v57 = vld [vmem:[%s6113_s23 + $0xa0] sm:$0xff] }
 0x23b   : > { %3822 = vmatprep.subr.bf16.mxu0 %v4985_v59  ;;  %3863 = vmatprep.subr.bf16.mxu1 %v4987_v60  ;;  %v1802_v58 = vld [vmem:[%s6113_s23 + $0x160] sm:$0xff]  ;;  %v1779_v59 = vld [vmem:[%s6113_s23 + $0xa8] sm:$0xff] }
 0x23c   : > { %v1803_v60 = vld [vmem:[%s6113_s23 + $0x168] sm:$0xff]  ;;  %v4993_v63 = vcombine.high %v1778_v57, %v1802_v58  ;;  %v4992_v5 = vcombine.low %v1778_v57, %v1802_v58 }
 0x23d   : > { %5158 = vmatmul.mubr.msk.bf16.vlgmr.msra.gmra.mrb[44].mxu0 %vm3162_vm0, %v6570_v26  ;;  %5159 = vmatmul.mubr.msk.bf16.vlgmr.msra.gmra.mrb[44].mxu1 %vm3162_vm0, %v6570_v26  ;;  %v4995_v0 = vcombine.high %v1779_v59, %v1803_v60  ;;  %v4994_v6 = vcombine.low %v1779_v59, %v1803_v60 }
 0x23e   : > { %3823 = vmatpush1.bf16.msra.mxu0 %v4984_v1  ;;  %3864 = vmatpush1.bf16.msra.mxu1 %v4986_v2  ;;  %v1826_v1 = vld [vmem:[%s6113_s23 + $0x220] sm:$0xff] }
 0x23f   : > { %3824 = vmatprep.subr.bf16.mxu0 %v5033_v3  ;;  %3865 = vmatprep.subr.bf16.mxu1 %v5035_v4  ;;  %v1850_v2 = vld [vmem:[%s6113_s23 + $0x2e0] sm:$0xff]  ;;  %v1827_v3 = vld [vmem:[%s6113_s23 + $0x228] sm:$0xff] }
 0x240   : > { %3854 = vmatprep.mubr.bf16.mxu0 %v5919_v21  ;;  %3895 = vmatprep.mubr.bf16.mxu1 %v5919_v21  ;;  %v1851_v4 = vld [vmem:[%s6113_s23 + $0x2e8] sm:$0xff]  ;;  %v5041_v7 = vcombine.high %v1826_v1, %v1850_v2  ;;  %v5040_v13 = vcombine.low %v1826_v1, %v1850_v2  ;;  %v6828_v1 = vsub.s32 1, %v6197_v30  ;;  %v6831_v2 = vsub.s32 3, %v6197_v30 }
 0x241   : > { %v5043_v8 = vcombine.high %v1827_v3, %v1851_v4  ;;  %v5042_v14 = vcombine.low %v1827_v3, %v1851_v4 }
 0x242   : > { %3825 = vmatpush1.bf16.msra.mxu0 %v5032_v9  ;;  %3866 = vmatpush1.bf16.msra.mxu1 %v5034_v10  ;;  %v1874_v9 = vld [vmem:[%s6113_s23 + $0x3a0] sm:$0xff] }
 0x243   : > { %3826 = vmatprep.subr.bf16.mxu0 %v5081_v11  ;;  %3867 = vmatprep.subr.bf16.mxu1 %v5083_v12  ;;  %v1898_v10 = vld [vmem:[%s6113_s23 + $0x460] sm:$0xff]  ;;  %v1875_v11 = vld [vmem:[%s6113_s23 + $0x3a8] sm:$0xff] }
 0x244   : > { %v1899_v12 = vld [vmem:[%s6113_s23 + $0x468] sm:$0xff]  ;;  %v5089_v15 = vcombine.high %v1874_v9, %v1898_v10  ;;  %v5088_v29 = vcombine.low %v1874_v9, %v1898_v10 }
 0x245   : > { %v5091_v16 = vcombine.high %v1875_v11, %v1899_v12  ;;  %v5090_v31 = vcombine.low %v1875_v11, %v1899_v12 }
 0x246   : > { %3827 = vmatpush1.bf16.msra.mxu0 %v5080_v17  ;;  %3868 = vmatpush1.bf16.msra.mxu1 %v5082_v23  ;;  %v1922_v17 = vld [vmem:[%s6113_s23 + $0x520] sm:$0xff] }
 0x247   : > { %3828 = vmatprep.subr.bf16.mxu0 %v5129_v27  ;;  %3869 = vmatprep.subr.bf16.mxu1 %v5131_v28  ;;  %v1946_v23 = vld [vmem:[%s6113_s23 + $0x5e0] sm:$0xff]  ;;  %v1923_v27 = vld [vmem:[%s6113_s23 + $0x528] sm:$0xff] }
 0x248   : > { %v1947_v28 = vld [vmem:[%s6113_s23 + $0x5e8] sm:$0xff]  ;;  %v5137_v32 = vcombine.high %v1922_v17, %v1946_v23  ;;  %v5136_v39 = vcombine.low %v1922_v17, %v1946_v23 }
 0x249   : > { %v5139_v33 = vcombine.high %v1923_v27, %v1947_v28  ;;  %v5138_v40 = vcombine.low %v1923_v27, %v1947_v28 }
 0x24a   : > { %3829 = vmatpush1.bf16.msra.mxu0 %v5128_v34  ;;  %3870 = vmatpush1.bf16.msra.mxu1 %v5130_v36  ;;  %v1780_v34 = vld [vmem:[%s6113_s23 + $0xb0] sm:$0xff] }
 0x24b   : > { %3904 = vmatprep.subr.bf16.mxu0 %v4989_v37  ;;  %3945 = vmatprep.subr.bf16.mxu1 %v4991_v38  ;;  %v1804_v36 = vld [vmem:[%s6113_s23 + $0x170] sm:$0xff]  ;;  %v1781_v37 = vld [vmem:[%s6113_s23 + $0xb8] sm:$0xff] }
 0x24c   : > { %v1805_v38 = vld [vmem:[%s6113_s23 + $0x178] sm:$0xff]  ;;  %v4997_v41 = vcombine.high %v1780_v34, %v1804_v36  ;;  %v4996_v24 = vcombine.low %v1780_v34, %v1804_v36  ;;  %v6847_v34 = vsub.s32 7, %v6197_v30 }
 0x24d   : > { %5160 = vmatmul.mubr.msk.bf16.vlgmr.msra.gmra.mrb[48].mxu0 %vm3162_vm0, %v6570_v26  ;;  %5161 = vmatmul.mubr.msk.bf16.vlgmr.msra.gmra.mrb[48].mxu1 %vm3162_vm0, %v6570_v26  ;;  %v4999_v42 = vcombine.high %v1781_v37, %v1805_v38  ;;  %v4998_v25 = vcombine.low %v1781_v37, %v1805_v38 }
 0x24e   : > { %3905 = vmatpush1.bf16.msra.mxu0 %v4988_v18  ;;  %3946 = vmatpush1.bf16.msra.mxu1 %v4990_v19  ;;  %v1828_v18 = vld [vmem:[%s6113_s23 + $0x230] sm:$0xff] }
 0x24f   : > { %3906 = vmatprep.subr.bf16.mxu0 %v5037_v20  ;;  %3947 = vmatprep.subr.bf16.mxu1 %v5039_v22  ;;  %v1852_v19 = vld [vmem:[%s6113_s23 + $0x2f0] sm:$0xff]  ;;  %v1829_v20 = vld [vmem:[%s6113_s23 + $0x238] sm:$0xff] }
 0x250   : > { %3936 = vmatprep.mubr.bf16.mxu0 %v5919_v21  ;;  %3977 = vmatprep.mubr.bf16.mxu1 %v5919_v21  ;;  %v1853_v22 = vld [vmem:[%s6113_s23 + $0x2f8] sm:$0xff]  ;;  %v5045_v43 = vcombine.high %v1828_v18, %v1852_v19  ;;  %v5044_v49 = vcombine.low %v1828_v18, %v1852_v19 }
 0x251   : > { %v5047_v44 = vcombine.high %v1829_v20, %v1853_v22  ;;  %v5046_v50 = vcombine.low %v1829_v20, %v1853_v22 }
 0x252   : > { %3907 = vmatpush1.bf16.msra.mxu0 %v5036_v45  ;;  %3948 = vmatpush1.bf16.msra.mxu1 %v5038_v46  ;;  %v1876_v45 = vld [vmem:[%s6113_s23 + $0x3b0] sm:$0xff] }
 0x253   : > { %3908 = vmatprep.subr.bf16.mxu0 %v5085_v47  ;;  %3949 = vmatprep.subr.bf16.mxu1 %v5087_v48  ;;  %v1900_v46 = vld [vmem:[%s6113_s23 + $0x470] sm:$0xff]  ;;  %v1877_v47 = vld [vmem:[%s6113_s23 + $0x3b8] sm:$0xff] }
 0x254   : > { %v1901_v48 = vld [vmem:[%s6113_s23 + $0x478] sm:$0xff]  ;;  %v5093_v51 = vcombine.high %v1876_v45, %v1900_v46  ;;  %v5092_v57 = vcombine.low %v1876_v45, %v1900_v46 }
 0x255   : > { %v5095_v52 = vcombine.high %v1877_v47, %v1901_v48  ;;  %v5094_v58 = vcombine.low %v1877_v47, %v1901_v48 }
 0x256   : > { %3909 = vmatpush1.bf16.msra.mxu0 %v5084_v53  ;;  %3950 = vmatpush1.bf16.msra.mxu1 %v5086_v54  ;;  %v1924_v53 = vld [vmem:[%s6113_s23 + $0x530] sm:$0xff] }
 0x257   : > { %3910 = vmatprep.subr.bf16.mxu0 %v5133_v55  ;;  %3951 = vmatprep.subr.bf16.mxu1 %v5135_v56  ;;  %v1948_v54 = vld [vmem:[%s6113_s23 + $0x5f0] sm:$0xff]  ;;  %v1925_v55 = vld [vmem:[%s6113_s23 + $0x538] sm:$0xff] }
 0x258   : > { %v1949_v56 = vld [vmem:[%s6113_s23 + $0x5f8] sm:$0xff]  ;;  %v5141_v59 = vcombine.high %v1924_v53, %v1948_v54  ;;  %s5399_s23 = smul.u32 48, %s245_s18 }
 0x259   : > { %v5143_v60 = vcombine.high %v1925_v55, %v1949_v56  ;;  %s290_s18 = smul.u32 48, %s6028_s9 }
 0x25a   : > { %3911 = vmatpush1.bf16.msra.mxu0 %v5132_v61  ;;  %3952 = vmatpush1.bf16.msra.mxu1 %v5134_v62  ;;  %v5140_v61 = vcombine.low %v1924_v53, %v1948_v54  ;;  %v5142_v62 = vcombine.low %v1925_v55, %v1949_v56  ;;  %s6824_s6 = scalar_lea.vmem [#allocation6], %s5399_s23 }
 0x25b   : > { %3986 = vmatprep.subr.bf16.mxu0 %v4993_v63  ;;  %4027 = vmatprep.subr.bf16.mxu1 %v4995_v0  ;;  %v6822_v63 = vsub.s32 2, %v6197_v30  ;;  %v1950_v0 = vld [vmem:[%s6824_s6] sm:$0xff]  ;;  %p291_p2 = scmp.lt.s32.totalorder %s290_s18, 95 }
 0x25c   : > { %v1969_v4 = vrot.slane %v1950_v0, %v6828_v1 }
 0x25d   : > { %5162 = vmatmul.mubr.msk.bf16.vlgmr.msra.gmra.mrb[52].mxu0 %vm3162_vm0, %v6570_v26  ;;  %5163 = vmatmul.mubr.msk.bf16.vlgmr.msra.gmra.mrb[52].mxu1 %vm3162_vm0, %v6570_v26  ;;  %v1973_v3 = vrot.slane %v1950_v0, %v6822_v63  ;;  %s7034_s18 = smov (!%p291_p2, %s290_s18), 95 }
 0x25e   : > { %3987 = vmatpush1.bf16.msra.mxu0 %v4992_v5  ;;  %4028 = vmatpush1.bf16.msra.mxu1 %v4994_v6  ;;  %v1977_v5 = vrot.slane %v1950_v0, %v6831_v2  ;;  %s4822_s9 = sshll.u32 %s7034_s18, 1 }
 0x25f   : > { %3988 = vmatprep.subr.bf16.mxu0 %v5041_v7  ;;  %4029 = vmatprep.subr.bf16.mxu1 %v5043_v8  ;;  %s6873_s14 = scalar_lea.vmem %s7011_s5, %s4822_s9 }
 0x260   : > { %4018 = vmatprep.mubr.bf16.mxu0 %v5919_v21  ;;  %4059 = vmatprep.mubr.bf16.mxu1 %v5919_v21 }
 0x262   : > { %3989 = vmatpush1.bf16.msra.mxu0 %v5040_v13  ;;  %4030 = vmatpush1.bf16.msra.mxu1 %v5042_v14 }
 0x263   : > { %3990 = vmatprep.subr.bf16.mxu0 %v5089_v15  ;;  %4031 = vmatprep.subr.bf16.mxu1 %v5091_v16 }
 0x266   : > { %3991 = vmatpush1.bf16.msra.mxu0 %v5088_v29  ;;  %4032 = vmatpush1.bf16.msra.mxu1 %v5090_v31  ;;  %v6838_v31 = vsub.s32 4, %v6197_v30 }
 0x267   : > { %3992 = vmatprep.subr.bf16.mxu0 %v5137_v32  ;;  %4033 = vmatprep.subr.bf16.mxu1 %v5139_v33  ;;  %v6841_v32 = vsub.s32 6, %v6197_v30  ;;  %v6844_v33 = vsub.s32 5, %v6197_v30 }
 0x268   : > { %v1981_v36 = vrot.slane %v1950_v0, %v6838_v31 }
 0x269   : > { %v1989_v37 = vrot.slane %v1950_v0, %v6841_v32  ;;  %v1985_v38 = vrot.slane %v1950_v0, %v6844_v33 }
 0x26a   : > { %3993 = vmatpush1.bf16.msra.mxu0 %v5136_v39  ;;  %4034 = vmatpush1.bf16.msra.mxu1 %v5138_v40  ;;  %v1993_v39 = vrot.slane %v1950_v0, %v6847_v34 }
 0x26b   : > { %4068 = vmatprep.subr.bf16.mxu0 %v4997_v41  ;;  %4109 = vmatprep.subr.bf16.mxu1 %v4999_v42 }
 0x26d   : > { %5164 = vmatmul.mubr.msk.bf16.vlgmr.msra.gmra.mrb[56].mxu0 %vm3162_vm0, %v6570_v26  ;;  %5165 = vmatmul.mubr.msk.bf16.vlgmr.msra.gmra.mrb[56].mxu1 %vm3162_vm0, %v6570_v26 }
 0x26e   : > { %4069 = vmatpush1.bf16.msra.mxu0 %v4996_v24  ;;  %4110 = vmatpush1.bf16.msra.mxu1 %v4998_v25 }
 0x26f   : > { %4070 = vmatprep.subr.bf16.mxu0 %v5045_v43  ;;  %4111 = vmatprep.subr.bf16.mxu1 %v5047_v44 }
 0x270   : > { %4100 = vmatprep.mubr.bf16.mxu0 %v5919_v21  ;;  %4141 = vmatprep.mubr.bf16.mxu1 %v5919_v21  ;;  %v6819_v21 = vsub.s32 0, %v6197_v30 }
 0x272   : > { %4071 = vmatpush1.bf16.msra.mxu0 %v5044_v49  ;;  %4112 = vmatpush1.bf16.msra.mxu1 %v5046_v50 }
 0x273   : > { %4072 = vmatprep.subr.bf16.mxu0 %v5093_v51  ;;  %4113 = vmatprep.subr.bf16.mxu1 %v5095_v52 }
 0x276   : > { %4073 = vmatpush1.bf16.msra.mxu0 %v5092_v57  ;;  %4114 = vmatpush1.bf16.msra.mxu1 %v5094_v58  ;;  %v6855_v57 = vld [vmem:[%s6824_s6 + $0x8] sm:$0xff] }
 0x277   : > { %4074 = vmatprep.subr.bf16.mxu0 %v5141_v59  ;;  %4115 = vmatprep.subr.bf16.mxu1 %v5143_v60  ;;  %v1997_v60 = vrot.slane %v6855_v57, %v6819_v21 }
 0x27a   : > { %4075 = vmatpush1.bf16.msra.mxu0 %v5140_v61  ;;  %4116 = vmatpush1.bf16.msra.mxu1 %v5142_v62  ;;  %v2005_v61 = vrot.slane %v6855_v57, %v6822_v63 }
 0x27d   : > { %5166 = vmatmul.mubr.msk.bf16.vlgmr.msra.gmra.mrb[60].mxu0 %vm3162_vm0, %v6570_v26  ;;  %5167 = vmatmul.mubr.msk.bf16.vlgmr.msra.gmra.mrb[60].mxu1 %vm3162_vm0, %v6570_v26  ;;  %v1965_v26 = vrot.slane %v1950_v0, %v6819_v21  ;;  %v2001_v0 = vrot.slane %v6855_v57, %v6828_v1 }
 0x2a0   : > { %v3200_v6 = vpop.f32.mrb[16].mxu0  ;;  %v3241_v7 = vpop.f32.mrb[16].mxu1 }
 0x2a1   : > { %v3201_v8 = vadd.f32 %v3200_v6, %v1965_v26  ;;  %v3242_v9 = vadd.f32 %v3241_v7, %v1973_v3  ;;  %v3202_v10 = vpop.f32.mrb[17].mxu0  ;;  %v3243_v11 = vpop.f32.mrb[17].mxu1  ;;  %v2009_v26 = vrot.slane %v6855_v57, %v6831_v2 }
 0x2a2   : > { %v3203_v12 = vadd.f32 %v3202_v10, %v1969_v4  ;;  %v3244_v13 = vadd.f32 %v3243_v11, %v1977_v5  ;;  %v3204_v14 = vpop.f32.mrb[18].mxu0  ;;  %v3245_v15 = vpop.f32.mrb[18].mxu1 }
 0x2a3   : > { %v5168_v16 = vmul.f32 -1.442695, %v3201_v8  ;;  %v5170_v17 = vmul.f32 -1.442695, %v3242_v9  ;;  %v3205_v23 = vpop.f32.mrb[19].mxu0  ;;  %v3246_v27 = vpop.f32.mrb[19].mxu1 }
 0x2a4   : > { %v5169_v28 = vmul.f32 -1.442695, %v3203_v12  ;;  %v5171_v29 = vmul.f32 -1.442695, %v3244_v13 }
 0x2a5   : > { %5592 = vpow2.f32 %v5168_v16 }
 0x2a6   : > { %5594 = vpow2.f32 %v5170_v17 }
 0x2a7   : > { %5596 = vpow2.f32 %v5169_v28 }
 0x2a8   : > { %5598 = vpow2.f32 %v5171_v29 }
 0x2af   : > { %v5593_v40 = vpop.eup %5592 }
 0x2b0   : > { %v5595_v41 = vpop.eup %5594  ;;  %v4294_v42 = vadd.f32 1.0, %v5593_v40  ;;  %v3282_v18 = vpop.f32.mrb[20].mxu0 }
 0x2b1   : > { %v3323_v19 = vpop.f32.mrb[20].mxu1  ;;  %v5597_v20 = vpop.eup %5596  ;;  %v4296_v22 = vadd.f32 1.0, %v5595_v41  ;;  %v3283_v24 = vadd.f32 %v3282_v18, %v1981_v36 }
 0x2b2   : > { %v3324_v25 = vadd.f32 %v3323_v19, %v1989_v37  ;;  %v3284_v30 = vpop.f32.mrb[21].mxu0  ;;  %v3325_v43 = vpop.f32.mrb[21].mxu1  ;;  %5600 = vrcp.f32 %v4294_v42  ;;  %v4295_v45 = vadd.f32 1.0, %v5597_v20 }
 0x2b3   : > { %v5599_v44 = vpop.eup %5598  ;;  %v3285_v46 = vadd.f32 %v3284_v30, %v1985_v38  ;;  %v3326_v47 = vadd.f32 %v3325_v43, %v1993_v39  ;;  %v3286_v48 = vpop.f32.mrb[22].mxu0  ;;  %5602 = vrcp.f32 %v4296_v22  ;;  %v5172_v51 = vmul.f32 -1.442695, %v3283_v24 }
 0x2b4   : > { %v3327_v49 = vpop.f32.mrb[22].mxu1  ;;  %v4297_v50 = vadd.f32 1.0, %v5599_v44  ;;  %v5174_v52 = vmul.f32 -1.442695, %v3324_v25  ;;  %v3287_v53 = vpop.f32.mrb[23].mxu0  ;;  %5604 = vrcp.f32 %v4295_v45  ;;  %v2013_v25 = vrot.slane %v6855_v57, %v6838_v31 }
 0x2b5   : > { %v5173_v54 = vmul.f32 -1.442695, %v3285_v46  ;;  %v3328_v55 = vpop.f32.mrb[23].mxu1  ;;  %v5175_v56 = vmul.f32 -1.442695, %v3326_v47  ;;  %v2021_v30 = vrot.slane %v6855_v57, %v6841_v32  ;;  %v2017_v44 = vrot.slane %v6855_v57, %v6844_v33 }
 0x2b6   : > { %5606 = vrcp.f32 %v4297_v50  ;;  %v2025_v46 = vrot.slane %v6855_v57, %v6847_v34 }
 0x2b7   : > { %5608 = vpow2.f32 %v5172_v51 }
 0x2b8   : > { %5610 = vpow2.f32 %v5174_v52 }
 0x2b9   : > { %5612 = vpow2.f32 %v5173_v54 }
 0x2ba   : > { %5614 = vpow2.f32 %v5175_v56 }
 0x2bc   : > { %v5601_v58 = vpop.eup %5600 }
 0x2bd   : > { %v5603_v59 = vpop.eup %5602 }
 0x2be   : > { %v5605_v62 = vpop.eup %5604 }
 0x2bf   : > { %v4486_v4 = vcombine.low %v5601_v58, %v5605_v62 }
 0x2c0   : > { %v5607_v3 = vpop.eup %5606  ;;  %v3364_v7 = vpop.f32.mrb[24].mxu0 }
 0x2c1   : > { %v5609_v5 = vpop.eup %5608  ;;  %v4487_v6 = vcombine.low %v5603_v59, %v5607_v3  ;;  %v3405_v8 = vpop.f32.mrb[24].mxu1  ;;  %v4494_v10 = vrot.slane %v4486_v4, %v6212_v35  ;;  %v3365_v12 = vadd.f32 %v3364_v7, %v1997_v60 }
 0x2c2   : > { %v5611_v9 = vpop.eup %5610  ;;  %v4298_v11 = vadd.f32 1.0, %v5609_v5  ;;  %v3406_v13 = vadd.f32 %v3405_v8, %v2005_v61  ;;  %v3366_v14 = vpop.f32.mrb[25].mxu0 }
 0x2c3   : > { %v3407_v15 = vpop.f32.mrb[25].mxu1  ;;  %v5613_v16 = vpop.eup %5612  ;;  %v4501_v17 = vrot.slane %v4487_v6, %v6212_v35  ;;  %v4300_v23 = vadd.f32 1.0, %v5611_v9  ;;  %v3367_v27 = vadd.f32 %v3366_v14, %v2001_v0  ;;  %v5176_v39 = vmul.f32 -1.442695, %v3365_v12 }
 0x2c4   : > { %v3408_v28 = vadd.f32 %v3407_v15, %v2009_v26  ;;  %v3368_v29 = vpop.f32.mrb[26].mxu0  ;;  %v3409_v36 = vpop.f32.mrb[26].mxu1  ;;  %5616 = vrcp.f32 %v4298_v11  ;;  %v4299_v38 = vadd.f32 1.0, %v5613_v16  ;;  %v5178_v18 = vmul.f32 -1.442695, %v3406_v13  ;;  %v6888_v15 = vld [vmem:[%s6824_s6 + $0x10] sm:$0xff] }
 0x2c5   : > { %v5615_v37 = vpop.eup %5614  ;;  %v3369_v40 = vpop.f32.mrb[27].mxu0  ;;  %v4502_v41 = vcombine.low %v4494_v10, %v4501_v17  ;;  %5618 = vrcp.f32 %v4300_v23  ;;  %v5177_v20 = vmul.f32 -1.442695, %v3367_v27  ;;  %v2029_v16 = vrot.slane %v6888_v15, %v6819_v21 }
 0x2c6   : > { %v4301_v42 = vadd.f32 1.0, %v5615_v37  ;;  %v3410_v19 = vpop.f32.mrb[27].mxu1  ;;  %5620 = vrcp.f32 %v4299_v38  ;;  %v5179_v22 = vmul.f32 -1.442695, %v3408_v28  ;;  %v2037_v23 = vrot.slane %v6888_v15, %v6822_v63 }
 0x2c7   : > { %4702 = vst [vmem:[%s6873_s14] sm:$0xff] %v4502_v41  ;;  %v2033_v28 = vrot.slane %v6888_v15, %v6828_v1  ;;  %v2041_v38 = vrot.slane %v6888_v15, %v6831_v2 }
 0x2c8   : > { %5622 = vrcp.f32 %v4301_v42 }
 0x2c9   : > { %5624 = vpow2.f32 %v5176_v39 }
 0x2ca   : > { %5626 = vpow2.f32 %v5178_v18 }
 0x2cb   : > { %5628 = vpow2.f32 %v5177_v20 }
 0x2cc   : > { %5630 = vpow2.f32 %v5179_v22 }
 0x2ce   : > { %v5617_v24 = vpop.eup %5616 }
 0x2cf   : > { %v5619_v43 = vpop.eup %5618 }
 0x2d0   : > { %v5621_v45 = vpop.eup %5620  ;;  %v3446_v49 = vpop.f32.mrb[28].mxu0 }
 0x2d1   : > { %v4503_v48 = vcombine.low %v5617_v24, %v5621_v45  ;;  %v3487_v50 = vpop.f32.mrb[28].mxu1  ;;  %v3447_v53 = vadd.f32 %v3446_v49, %v2013_v25  ;;  %v3448_v55 = vpop.f32.mrb[29].mxu0 }
 0x2d2   : > { %v5623_v47 = vpop.eup %5622  ;;  %v3488_v54 = vadd.f32 %v3487_v50, %v2021_v30  ;;  %v3489_v56 = vpop.f32.mrb[29].mxu1  ;;  %v3449_v61 = vadd.f32 %v3448_v55, %v2017_v44 }
 0x2d3   : > { %v5625_v51 = vpop.eup %5624  ;;  %v4504_v52 = vcombine.low %v5619_v43, %v5623_v47  ;;  %v4511_v59 = vrot.slane %v4503_v48, %v6212_v35  ;;  %v3450_v62 = vpop.f32.mrb[30].mxu0  ;;  %v3490_v4 = vadd.f32 %v3489_v56, %v2025_v46  ;;  %v5180_v8 = vmul.f32 -1.442695, %v3447_v53 }
 0x2d4   : > { %v5627_v58 = vpop.eup %5626  ;;  %v4302_v60 = vadd.f32 1.0, %v5625_v51  ;;  %v3491_v0 = vpop.f32.mrb[30].mxu1  ;;  %v5182_v12 = vmul.f32 -1.442695, %v3488_v54  ;;  %v5181_v13 = vmul.f32 -1.442695, %v3449_v61  ;;  %v2045_v61 = vrot.slane %v6888_v15, %v6838_v31 }
 0x2d5   : > { %v5629_v26 = vpop.eup %5628  ;;  %v4518_v57 = vrot.slane %v4504_v52, %v6212_v35  ;;  %v4304_v3 = vadd.f32 1.0, %v5627_v58  ;;  %v3451_v5 = vpop.f32.mrb[31].mxu0  ;;  %v5183_v14 = vmul.f32 -1.442695, %v3490_v4  ;;  %v2053_v62 = vrot.slane %v6888_v15, %v6841_v32 }
 0x2d6   : > { %v5631_v6 = vpop.eup %5630  ;;  %5632 = vrcp.f32 %v4302_v60  ;;  %v4303_v7 = vadd.f32 1.0, %v5629_v26  ;;  %v3492_v9 = vpop.f32.mrb[31].mxu1  ;;  %v2049_v26 = vrot.slane %v6888_v15, %v6844_v33  ;;  %v2057_v5 = vrot.slane %v6888_v15, %v6847_v34 }
 0x2d7   : > { %v4519_v10 = vcombine.low %v4511_v59, %v4518_v57  ;;  %5634 = vrcp.f32 %v4304_v3  ;;  %v4305_v11 = vadd.f32 1.0, %v5631_v6 }
 0x2d8   : > { %5636 = vrcp.f32 %v4303_v7 }
 0x2d9   : > { %4703 = vst [vmem:[%s6873_s14 + $0x8] sm:$0xff] %v4519_v10  ;;  %5638 = vrcp.f32 %v4305_v11 }
 0x2da   : > { %5640 = vpow2.f32 %v5180_v8 }
 0x2db   : > { %5642 = vpow2.f32 %v5182_v12 }
 0x2dc   : > { %5644 = vpow2.f32 %v5181_v13 }
 0x2dd   : > { %5646 = vpow2.f32 %v5183_v14 }
 0x2e0   : > { %v5633_v17 = vpop.eup %5632  ;;  %v3528_v36 = vpop.f32.mrb[32].mxu0 }
 0x2e1   : > { %v5635_v27 = vpop.eup %5634  ;;  %v3569_v37 = vpop.f32.mrb[32].mxu1  ;;  %v3529_v41 = vadd.f32 %v3528_v36, %v2029_v16 }
 0x2e2   : > { %v5637_v29 = vpop.eup %5636  ;;  %v3530_v42 = vpop.f32.mrb[33].mxu0  ;;  %v3570_v22 = vadd.f32 %v3569_v37, %v2037_v23 }
 0x2e3   : > { %v5639_v39 = vpop.eup %5638  ;;  %v4520_v40 = vcombine.low %v5633_v17, %v5637_v29  ;;  %v3571_v18 = vpop.f32.mrb[33].mxu1  ;;  %v3531_v45 = vadd.f32 %v3530_v42, %v2033_v28  ;;  %v5184_v54 = vmul.f32 -1.442695, %v3529_v41 }
 0x2e4   : > { %v5641_v19 = vpop.eup %5640  ;;  %v4521_v20 = vcombine.low %v5635_v27, %v5639_v39  ;;  %v3532_v24 = vpop.f32.mrb[34].mxu0  ;;  %v3572_v50 = vadd.f32 %v3571_v18, %v2041_v38  ;;  %v5186_v58 = vmul.f32 -1.442695, %v3570_v22 }
 0x2e5   : > { %v3573_v25 = vpop.f32.mrb[34].mxu1  ;;  %v5643_v30 = vpop.eup %5642  ;;  %v4528_v43 = vrot.slane %v4520_v40, %v6212_v35  ;;  %v4306_v44 = vadd.f32 1.0, %v5641_v19  ;;  %v5185_v59 = vmul.f32 -1.442695, %v3531_v45 }
 0x2e6   : > { %v3533_v46 = vpop.f32.mrb[35].mxu0  ;;  %v5645_v47 = vpop.eup %5644  ;;  %v4535_v48 = vrot.slane %v4521_v20, %v6212_v35  ;;  %v4308_v49 = vadd.f32 1.0, %v5643_v30  ;;  %v5187_v60 = vmul.f32 -1.442695, %v3572_v50  ;;  %v6913_v30 = vld [vmem:[%s6824_s6 + $0x18] sm:$0xff] }
 0x2e7   : > { %v3574_v51 = vpop.f32.mrb[35].mxu1  ;;  %v5647_v52 = vpop.eup %5646  ;;  %5648 = vrcp.f32 %v4306_v44  ;;  %v4307_v53 = vadd.f32 1.0, %v5645_v47  ;;  %v2069_v44 = vrot.slane %v6913_v30, %v6822_v63  ;;  %v2065_v45 = vrot.slane %v6913_v30, %v6828_v1 }
 0x2e8   : > { %v4536_v55 = vcombine.low %v4528_v43, %v4535_v48  ;;  %5650 = vrcp.f32 %v4308_v49  ;;  %v4309_v56 = vadd.f32 1.0, %v5647_v52  ;;  %v2061_v43 = vrot.slane %v6913_v30, %v6819_v21 }
 0x2e9   : > { %5652 = vrcp.f32 %v4307_v53  ;;  %v2073_v47 = vrot.slane %v6913_v30, %v6831_v2 }
 0x2ea   : > { %4704 = vst [vmem:[%s6873_s14 + $0x10] sm:$0xff] %v4536_v55  ;;  %5654 = vrcp.f32 %v4309_v56 }
 0x2eb   : > { %5656 = vpow2.f32 %v5184_v54 }
 0x2ec   : > { %5658 = vpow2.f32 %v5186_v58 }
 0x2ed   : > { %5660 = vpow2.f32 %v5185_v59 }
 0x2ee   : > { %5662 = vpow2.f32 %v5187_v60 }
 0x2f0   : > { %v3610_v3 = vpop.f32.mrb[36].mxu0  ;;  %v3651_v4 = vpop.f32.mrb[36].mxu1 }
 0x2f1   : > { %v5649_v0 = vpop.eup %5648  ;;  %v3611_v7 = vadd.f32 %v3610_v3, %v2045_v61  ;;  %v3612_v8 = vpop.f32.mrb[37].mxu0  ;;  %v3652_v12 = vadd.f32 %v3651_v4, %v2053_v62 }
 0x2f2   : > { %v5651_v57 = vpop.eup %5650  ;;  %v3653_v9 = vpop.f32.mrb[37].mxu1  ;;  %v3613_v27 = vadd.f32 %v3612_v8, %v2049_v26 }
 0x2f3   : > { %v5653_v6 = vpop.eup %5652  ;;  %v3614_v13 = vpop.f32.mrb[38].mxu0  ;;  %v5188_v23 = vmul.f32 -1.442695, %v3611_v7  ;;  %v3654_v15 = vadd.f32 %v3653_v9, %v2057_v5  ;;  %v5190_v19 = vmul.f32 -1.442695, %v3652_v12 }
 0x2f4   : > { %v5655_v10 = vpop.eup %5654  ;;  %v4537_v11 = vcombine.low %v5649_v0, %v5653_v6  ;;  %v3655_v14 = vpop.f32.mrb[38].mxu1  ;;  %v5189_v24 = vmul.f32 -1.442695, %v3613_v27  ;;  %v2077_v27 = vrot.slane %v6913_v30, %v6838_v31 }
 0x2f5   : > { %v5657_v16 = vpop.eup %5656  ;;  %v4538_v17 = vcombine.low %v5651_v57, %v5655_v10  ;;  %v3615_v28 = vpop.f32.mrb[39].mxu0  ;;  %5664 = vpow2.f32 %v5188_v23  ;;  %v5191_v25 = vmul.f32 -1.442695, %v3654_v15 }
 0x2f6   : > { %v3656_v29 = vpop.f32.mrb[39].mxu1  ;;  %v5659_v36 = vpop.eup %5658  ;;  %v4545_v37 = vrot.slane %v4537_v11, %v6212_v35  ;;  %v4310_v38 = vadd.f32 1.0, %v5657_v16  ;;  %v2085_v28 = vrot.slane %v6913_v30, %v6841_v32 }
 0x2f7   : > { %v5661_v39 = vpop.eup %5660  ;;  %v4552_v40 = vrot.slane %v4538_v17, %v6212_v35  ;;  %v4312_v41 = vadd.f32 1.0, %v5659_v36  ;;  %v2081_v36 = vrot.slane %v6913_v30, %v6844_v33 }
 0x2f8   : > { %v5663_v42 = vpop.eup %5662  ;;  %5666 = vrcp.f32 %v4310_v38  ;;  %v4311_v18 = vadd.f32 1.0, %v5661_v39 }
 0x2f9   : > { %v4553_v20 = vcombine.low %v4545_v37, %v4552_v40  ;;  %5668 = vrcp.f32 %v4312_v41  ;;  %v4313_v22 = vadd.f32 1.0, %v5663_v42  ;;  %v2089_v37 = vrot.slane %v6913_v30, %v6847_v34 }
 0x2fa   : > { %5670 = vrcp.f32 %v4311_v18 }
 0x2fb   : > { %4705 = vst [vmem:[%s6873_s14 + $0x18] sm:$0xff] %v4553_v20  ;;  %5672 = vrcp.f32 %v4313_v22 }
 0x2fc   : > { %5674 = vpow2.f32 %v5190_v19 }
 0x2fd   : > { %5676 = vpow2.f32 %v5189_v24 }
 0x2fe   : > { %5678 = vpow2.f32 %v5191_v25 }
 0x2ff   : > { %v5665_v46 = vpop.eup %5664 }
 0x300   : > { %v4314_v49 = vadd.f32 1.0, %v5665_v46  ;;  %v3692_v50 = vpop.f32.mrb[40].mxu0  ;;  %v3733_v51 = vpop.f32.mrb[40].mxu1 }
 0x301   : > { %v3693_v53 = vadd.f32 %v3692_v50, %v2061_v43  ;;  %v3734_v54 = vadd.f32 %v3733_v51, %v2069_v44  ;;  %v3694_v55 = vpop.f32.mrb[41].mxu0  ;;  %v3735_v56 = vpop.f32.mrb[41].mxu1 }
 0x302   : > { %v5667_v48 = vpop.eup %5666  ;;  %v3695_v59 = vadd.f32 %v3694_v55, %v2065_v45  ;;  %v3696_v60 = vpop.f32.mrb[42].mxu0  ;;  %v3736_v3 = vadd.f32 %v3735_v56, %v2073_v47  ;;  %5680 = vrcp.f32 %v4314_v49 }
 0x303   : > { %v5669_v52 = vpop.eup %5668  ;;  %v3737_v61 = vpop.f32.mrb[42].mxu1  ;;  %v5192_v26 = vmul.f32 -1.442695, %v3693_v53  ;;  %v5194_v57 = vmul.f32 -1.442695, %v3734_v54 }
 0x304   : > { %v5671_v58 = vpop.eup %5670  ;;  %v3697_v4 = vpop.f32.mrb[43].mxu0  ;;  %v5193_v14 = vmul.f32 -1.442695, %v3695_v59  ;;  %v5195_v17 = vmul.f32 -1.442695, %v3736_v3 }
 0x305   : > { %v5673_v62 = vpop.eup %5672  ;;  %v4554_v0 = vcombine.low %v5667_v48, %v5671_v58  ;;  %v3738_v5 = vpop.f32.mrb[43].mxu1  ;;  %5682 = vpow2.f32 %v5192_v26 }
 0x306   : > { %v5675_v6 = vpop.eup %5674  ;;  %v4555_v7 = vcombine.low %v5669_v52, %v5673_v62  ;;  %5684 = vpow2.f32 %v5194_v57 }
 0x307   : > { %v5677_v8 = vpop.eup %5676  ;;  %v4562_v9 = vrot.slane %v4554_v0, %v6212_v35  ;;  %v4316_v10 = vadd.f32 1.0, %v5675_v6  ;;  %v6938_v0 = vld [vmem:[%s6824_s6 + $0x20] sm:$0xff] }
 0x308   : > { %v5679_v11 = vpop.eup %5678  ;;  %v4569_v12 = vrot.slane %v4555_v7, %v6212_v35  ;;  %v4315_v13 = vadd.f32 1.0, %v5677_v8  ;;  %v2093_v57 = vrot.slane %v6938_v0, %v6819_v21  ;;  %v2101_v3 = vrot.slane %v6938_v0, %v6822_v63 }
 0x309   : > { %5686 = vrcp.f32 %v4316_v10  ;;  %v4317_v16 = vadd.f32 1.0, %v5679_v11  ;;  %v2097_v5 = vrot.slane %v6938_v0, %v6828_v1  ;;  %v2105_v6 = vrot.slane %v6938_v0, %v6831_v2 }
 0x30a   : > { %v4570_v23 = vcombine.low %v4562_v9, %v4569_v12  ;;  %5688 = vrcp.f32 %v4315_v13 }
 0x30b   : > { %5690 = vrcp.f32 %v4317_v16 }
 0x30c   : > { %4706 = vst [vmem:[%s6873_s14 + $0x20] sm:$0xff] %v4570_v23  ;;  %5692 = vpow2.f32 %v5193_v14  ;;  %v5681_v29 = vpop.eup %5680 }
 0x30d   : > { %5694 = vpow2.f32 %v5195_v17 }
 0x30f   : > { %v5683_v38 = vpop.eup %5682 }
 0x310   : > { %v5685_v15 = vpop.eup %5684  ;;  %v4318_v39 = vadd.f32 1.0, %v5683_v38  ;;  %v3774_v40 = vpop.f32.mrb[44].mxu0 }
 0x311   : > { %v3815_v41 = vpop.f32.mrb[44].mxu1  ;;  %v4320_v18 = vadd.f32 1.0, %v5685_v15  ;;  %v3775_v19 = vadd.f32 %v3774_v40, %v2077_v27  ;;  %v3776_v22 = vpop.f32.mrb[45].mxu0 }
 0x312   : > { %v3816_v20 = vadd.f32 %v3815_v41, %v2085_v28  ;;  %v3817_v24 = vpop.f32.mrb[45].mxu1  ;;  %v3777_v43 = vadd.f32 %v3776_v22, %v2081_v36  ;;  %v3778_v45 = vpop.f32.mrb[46].mxu0  ;;  %5696 = vrcp.f32 %v4318_v39 }
 0x313   : > { %v5687_v42 = vpop.eup %5686  ;;  %v3818_v44 = vadd.f32 %v3817_v24, %v2089_v37  ;;  %v3819_v46 = vpop.f32.mrb[46].mxu1  ;;  %v5196_v30 = vmul.f32 -1.442695, %v3775_v19  ;;  %5698 = vrcp.f32 %v4320_v18 }
 0x314   : > { %v5689_v25 = vpop.eup %5688  ;;  %v5198_v49 = vmul.f32 -1.442695, %v3816_v20  ;;  %v3779_v50 = vpop.f32.mrb[47].mxu0  ;;  %v5197_v58 = vmul.f32 -1.442695, %v3777_v43 }
 0x315   : > { %v5691_v47 = vpop.eup %5690  ;;  %v4571_v48 = vcombine.low %v5681_v29, %v5689_v25  ;;  %v3820_v51 = vpop.f32.mrb[47].mxu1  ;;  %5700 = vpow2.f32 %v5196_v30  ;;  %v5199_v61 = vmul.f32 -1.442695, %v3818_v44 }
 0x316   : > { %v5693_v52 = vpop.eup %5692  ;;  %v4572_v53 = vcombine.low %v5687_v42, %v5691_v47  ;;  %5702 = vpow2.f32 %v5198_v49  ;;  %v2109_v47 = vrot.slane %v6938_v0, %v6838_v31  ;;  %v2113_v49 = vrot.slane %v6938_v0, %v6844_v33 }
 0x317   : > { %v5695_v54 = vpop.eup %5694  ;;  %v4579_v55 = vrot.slane %v4571_v48, %v6212_v35  ;;  %v4319_v56 = vadd.f32 1.0, %v5693_v52  ;;  %v2117_v48 = vrot.slane %v6938_v0, %v6841_v32  ;;  %v2121_v51 = vrot.slane %v6938_v0, %v6847_v34 }
 0x318   : > { %v4586_v59 = vrot.slane %v4572_v53, %v6212_v35  ;;  %v4321_v60 = vadd.f32 1.0, %v5695_v54 }
 0x319   : > { %5704 = vrcp.f32 %v4319_v56 }
 0x31a   : > { %v4587_v62 = vcombine.low %v4579_v55, %v4586_v59  ;;  %5706 = vrcp.f32 %v4321_v60 }
 0x31b   : > { %5708 = vpow2.f32 %v5197_v58 }
 0x31c   : > { %4707 = vst [vmem:[%s6873_s14 + $0x28] sm:$0xff] %v4587_v62  ;;  %5710 = vpow2.f32 %v5199_v61  ;;  %v5697_v26 = vpop.eup %5696 }
 0x31d   : > { %v5699_v4 = vpop.eup %5698 }
 0x31f   : > { %v5701_v7 = vpop.eup %5700 }
 0x320   : > { %v5703_v8 = vpop.eup %5702  ;;  %v4322_v9 = vadd.f32 1.0, %v5701_v7  ;;  %v3856_v10 = vpop.f32.mrb[48].mxu0 }
 0x321   : > { %v3897_v11 = vpop.f32.mrb[48].mxu1  ;;  %v4324_v13 = vadd.f32 1.0, %v5703_v8  ;;  %v3857_v14 = vadd.f32 %v3856_v10, %v2093_v57  ;;  %v3858_v17 = vpop.f32.mrb[49].mxu0 }
 0x322   : > { %v3898_v16 = vadd.f32 %v3897_v11, %v2101_v3  ;;  %v3899_v23 = vpop.f32.mrb[49].mxu1  ;;  %v3859_v29 = vadd.f32 %v3858_v17, %v2097_v5  ;;  %v3860_v37 = vpop.f32.mrb[50].mxu0  ;;  %5712 = vrcp.f32 %v4322_v9 }
 0x323   : > { %v5705_v12 = vpop.eup %5704  ;;  %v3900_v36 = vadd.f32 %v3899_v23, %v2105_v6  ;;  %v3901_v38 = vpop.f32.mrb[50].mxu1  ;;  %v5200_v40 = vmul.f32 -1.442695, %v3857_v14  ;;  %5714 = vrcp.f32 %v4324_v13 }
 0x324   : > { %v5707_v27 = vpop.eup %5706  ;;  %v4588_v28 = vcombine.low %v5697_v26, %v5705_v12  ;;  %v3861_v41 = vpop.f32.mrb[51].mxu0  ;;  %v5202_v22 = vmul.f32 -1.442695, %v3898_v16  ;;  %v5201_v43 = vmul.f32 -1.442695, %v3859_v29  ;;  %v6963_v29 = vld [vmem:[%s6824_s6 + $0x28] sm:$0xff] }
 0x325   : > { %v5709_v15 = vpop.eup %5708  ;;  %v4589_v39 = vcombine.low %v5699_v4, %v5707_v27  ;;  %v3902_v42 = vpop.f32.mrb[51].mxu1  ;;  %5716 = vpow2.f32 %v5200_v40  ;;  %v5203_v44 = vmul.f32 -1.442695, %v3900_v36  ;;  %v2125_v36 = vrot.slane %v6963_v29, %v6819_v21 }
 0x326   : > { %v5711_v18 = vpop.eup %5710  ;;  %v4596_v19 = vrot.slane %v4588_v28, %v6212_v35  ;;  %v4323_v20 = vadd.f32 1.0, %v5709_v15  ;;  %v2133_v38 = vrot.slane %v6963_v29, %v6822_v63 }
 0x327   : > { %v4603_v24 = vrot.slane %v4589_v39, %v6212_v35  ;;  %v4325_v25 = vadd.f32 1.0, %v5711_v18  ;;  %v2129_v39 = vrot.slane %v6963_v29, %v6828_v1  ;;  %v2137_v18 = vrot.slane %v6963_v29, %v6831_v2 }
 0x328   : > { %5718 = vrcp.f32 %v4323_v20 }
 0x329   : > { %v4604_v45 = vcombine.low %v4596_v19, %v4603_v24  ;;  %5720 = vrcp.f32 %v4325_v25 }
 0x32a   : > { %5722 = vpow2.f32 %v5202_v22 }
 0x32b   : > { %4708 = vst [vmem:[%s6873_s14 + $0x30] sm:$0xff] %v4604_v45  ;;  %5724 = vpow2.f32 %v5201_v43 }
 0x32c   : > { %5726 = vpow2.f32 %v5203_v44  ;;  %v5713_v46 = vpop.eup %5712 }
 0x32d   : > { %v5715_v30 = vpop.eup %5714 }
 0x32f   : > { %v5717_v50 = vpop.eup %5716 }
 0x330   : > { %v4326_v53 = vadd.f32 1.0, %v5717_v50  ;;  %v3938_v54 = vpop.f32.mrb[52].mxu0  ;;  %v3979_v55 = vpop.f32.mrb[52].mxu1 }
 0x331   : > { %v3939_v59 = vadd.f32 %v3938_v54, %v2109_v47  ;;  %v3980_v60 = vadd.f32 %v3979_v55, %v2117_v48  ;;  %v3940_v61 = vpop.f32.mrb[53].mxu0  ;;  %v3981_v62 = vpop.f32.mrb[53].mxu1 }
 0x332   : > { %v5719_v52 = vpop.eup %5718  ;;  %v3941_v3 = vadd.f32 %v3940_v61, %v2113_v49  ;;  %v3942_v4 = vpop.f32.mrb[54].mxu0  ;;  %v3982_v0 = vadd.f32 %v3981_v62, %v2121_v51  ;;  %5728 = vrcp.f32 %v4326_v53  ;;  %v2141_v62 = vrot.slane %v6963_v29, %v6838_v31 }
 0x333   : > { %v5721_v56 = vpop.eup %5720  ;;  %v4605_v58 = vcombine.low %v5713_v46, %v5719_v52  ;;  %v3983_v5 = vpop.f32.mrb[54].mxu1  ;;  %v5204_v13 = vmul.f32 -1.442695, %v3939_v59  ;;  %v5206_v17 = vmul.f32 -1.442695, %v3980_v60 }
 0x334   : > { %v5723_v26 = vpop.eup %5722  ;;  %v4606_v57 = vcombine.low %v5715_v30, %v5721_v56  ;;  %v3943_v9 = vpop.f32.mrb[55].mxu0  ;;  %v5205_v27 = vmul.f32 -1.442695, %v3941_v3  ;;  %v5207_v28 = vmul.f32 -1.442695, %v3982_v0  ;;  %v2145_v3 = vrot.slane %v6963_v29, %v6844_v33 }
 0x335   : > { %v5725_v6 = vpop.eup %5724  ;;  %v4613_v7 = vrot.slane %v4605_v58, %v6212_v35  ;;  %v4328_v8 = vadd.f32 1.0, %v5723_v26  ;;  %v3984_v14 = vpop.f32.mrb[55].mxu1  ;;  %v2149_v26 = vrot.slane %v6963_v29, %v6841_v32 }
 0x336   : > { %v5727_v10 = vpop.eup %5726  ;;  %v4620_v11 = vrot.slane %v4606_v57, %v6212_v35  ;;  %v4327_v12 = vadd.f32 1.0, %v5725_v6 }
 0x337   : > { %5730 = vrcp.f32 %v4328_v8  ;;  %v4329_v16 = vadd.f32 1.0, %v5727_v10 }
 0x338   : > { %v4621_v23 = vcombine.low %v4613_v7, %v4620_v11  ;;  %5732 = vrcp.f32 %v4327_v12  ;;  %v2153_v7 = vrot.slane %v6963_v29, %v6847_v34 }
 0x339   : > { %5734 = vrcp.f32 %v4329_v16 }
 0x33a   : > { %4709 = vst [vmem:[%s6873_s14 + $0x38] sm:$0xff] %v4621_v23  ;;  %5736 = vpow2.f32 %v5204_v13 }
 0x33b   : > { %5738 = vpow2.f32 %v5206_v17 }
 0x33c   : > { %5740 = vpow2.f32 %v5205_v27  ;;  %v5729_v37 = vpop.eup %5728 }
 0x33d   : > { %5742 = vpow2.f32 %v5207_v28 }
 0x340   : > { %v4020_v41 = vpop.f32.mrb[56].mxu0  ;;  %v4061_v42 = vpop.f32.mrb[56].mxu1 }
 0x341   : > { %v5731_v15 = vpop.eup %5730  ;;  %v4021_v22 = vadd.f32 %v4020_v41, %v2125_v36  ;;  %v4022_v24 = vpop.f32.mrb[57].mxu0  ;;  %v4062_v44 = vadd.f32 %v4061_v42, %v2133_v38 }
 0x342   : > { %v5733_v40 = vpop.eup %5732  ;;  %v4063_v25 = vpop.f32.mrb[57].mxu1  ;;  %v4023_v48 = vadd.f32 %v4022_v24, %v2129_v39 }
 0x343   : > { %v5735_v19 = vpop.eup %5734  ;;  %v4622_v20 = vcombine.low %v5729_v37, %v5733_v40  ;;  %v4024_v45 = vpop.f32.mrb[58].mxu0  ;;  %v4064_v51 = vadd.f32 %v4063_v25, %v2137_v18  ;;  %v5208_v55 = vmul.f32 -1.442695, %v4021_v22  ;;  %v5210_v59 = vmul.f32 -1.442695, %v4062_v44 }
 0x344   : > { %v5737_v21 = vpop.eup %5736  ;;  %v4623_v43 = vcombine.low %v5731_v15, %v5735_v19  ;;  %v4065_v63 = vpop.f32.mrb[58].mxu1  ;;  %v5209_v60 = vmul.f32 -1.442695, %v4023_v48 }
 0x345   : > { %v5739_v46 = vpop.eup %5738  ;;  %v4630_v47 = vrot.slane %v4622_v20, %v6212_v35  ;;  %v4330_v1 = vadd.f32 1.0, %v5737_v21  ;;  %v4025_v30 = vpop.f32.mrb[59].mxu0  ;;  %v5211_v61 = vmul.f32 -1.442695, %v4064_v51 }
 0x346   : > { %v5741_v49 = vpop.eup %5740  ;;  %v4637_v2 = vrot.slane %v4623_v43, %v6212_v35  ;;  %v4332_v50 = vadd.f32 1.0, %v5739_v46  ;;  %v4066_v52 = vpop.f32.mrb[59].mxu1 }
 0x347   : > { %v5743_v53 = vpop.eup %5742  ;;  %5744 = vrcp.f32 %v4330_v1  ;;  %v4331_v54 = vadd.f32 1.0, %v5741_v49 }
 0x348   : > { %v4638_v56 = vcombine.low %v4630_v47, %v4637_v2  ;;  %5746 = vrcp.f32 %v4332_v50  ;;  %v4333_v58 = vadd.f32 1.0, %v5743_v53 }
 0x349   : > { %5748 = vrcp.f32 %v4331_v54 }
 0x34a   : > { %4710 = vst [vmem:[%s6873_s14 + $0x40] sm:$0xff] %v4638_v56  ;;  %5750 = vrcp.f32 %v4333_v58 }
 0x34b   : > { %5752 = vpow2.f32 %v5208_v55 }
 0x34c   : > { %5754 = vpow2.f32 %v5210_v59 }
 0x34d   : > { %5756 = vpow2.f32 %v5209_v60 }
 0x34e   : > { %5758 = vpow2.f32 %v5211_v61 }
 0x350   : > { %v4102_v5 = vpop.f32.mrb[60].mxu0  ;;  %v4143_v6 = vpop.f32.mrb[60].mxu1 }
 0x351   : > { %v5745_v57 = vpop.eup %5744  ;;  %v4103_v0 = vadd.f32 %v4102_v5, %v2141_v62  ;;  %v4104_v9 = vpop.f32.mrb[61].mxu0  ;;  %v4144_v31 = vadd.f32 %v4143_v6, %v2149_v26 }
 0x352   : > { %v5747_v4 = vpop.eup %5746  ;;  %v4145_v10 = vpop.f32.mrb[61].mxu1  ;;  %v4105_v23 = vadd.f32 %v4104_v9, %v2145_v3 }
 0x353   : > { %v5749_v8 = vpop.eup %5748  ;;  %v4106_v13 = vpop.f32.mrb[62].mxu0  ;;  %v5212_v17 = vmul.f32 -1.442695, %v4103_v0  ;;  %v4146_v34 = vadd.f32 %v4145_v10, %v2153_v7  ;;  %v5214_v41 = vmul.f32 -1.442695, %v4144_v31 }
 0x354   : > { %v5751_v11 = vpop.eup %5750  ;;  %v4639_v12 = vcombine.low %v5745_v57, %v5749_v8  ;;  %v4147_v14 = vpop.f32.mrb[62].mxu1  ;;  %v5213_v19 = vmul.f32 -1.442695, %v4105_v23 }
 0x355   : > { %v5753_v32 = vpop.eup %5752  ;;  %v4640_v16 = vcombine.low %v5747_v4, %v5751_v11  ;;  %v4107_v33 = vpop.f32.mrb[63].mxu0  ;;  %5760 = vpow2.f32 %v5212_v17  ;;  %v5215_v20 = vmul.f32 -1.442695, %v4146_v34 }
 0x356   : > { %v4148_v27 = vpop.f32.mrb[63].mxu1  ;;  %v5755_v28 = vpop.eup %5754  ;;  %v4647_v36 = vrot.slane %v4639_v12, %v6212_v35  ;;  %v4334_v37 = vadd.f32 1.0, %v5753_v32 }
 0x357   : > { %v5757_v29 = vpop.eup %5756  ;;  %v4654_v38 = vrot.slane %v4640_v16, %v6212_v35  ;;  %v4336_v15 = vadd.f32 1.0, %v5755_v28 }
 0x358   : > { %v5759_v39 = vpop.eup %5758  ;;  %5762 = vrcp.f32 %v4334_v37  ;;  %v4335_v40 = vadd.f32 1.0, %v5757_v29 }
 0x359   : > { %v4655_v42 = vcombine.low %v4647_v36, %v4654_v38  ;;  %5764 = vrcp.f32 %v4336_v15  ;;  %v4337_v18 = vadd.f32 1.0, %v5759_v39 }
 0x35a   : > { %5766 = vrcp.f32 %v4335_v40 }
 0x35b   : > { %4711 = vst [vmem:[%s6873_s14 + $0x48] sm:$0xff] %v4655_v42  ;;  %5768 = vrcp.f32 %v4337_v18 }
 0x35c   : > { %5770 = vpow2.f32 %v5214_v41 }
 0x35d   : > { %5772 = vpow2.f32 %v5213_v19 }
 0x35e   : > { %5774 = vpow2.f32 %v5215_v20 }
 0x35f   : > { %v5761_v22 = vpop.eup %5760 }
 0x360   : > { %v4338_v43 = vadd.f32 1.0, %v5761_v22 }
 0x362   : > { %v5763_v24 = vpop.eup %5762  ;;  %5776 = vrcp.f32 %v4338_v43 }
 0x363   : > { %v5765_v25 = vpop.eup %5764 }
 0x364   : > { %v5767_v21 = vpop.eup %5766 }
 0x365   : > { %v5769_v44 = vpop.eup %5768  ;;  %v4656_v45 = vcombine.low %v5763_v24, %v5767_v21 }
 0x366   : > { %v5771_v63 = vpop.eup %5770  ;;  %v4657_v46 = vcombine.low %v5765_v25, %v5769_v44 }
 0x367   : > { %v5773_v47 = vpop.eup %5772  ;;  %v4664_v1 = vrot.slane %v4656_v45, %v6212_v35  ;;  %v4340_v48 = vadd.f32 1.0, %v5771_v63 }
 0x368   : > { %v5775_v30 = vpop.eup %5774  ;;  %v4671_v49 = vrot.slane %v4657_v46, %v6212_v35  ;;  %v4339_v2 = vadd.f32 1.0, %v5773_v47 }
 0x369   : > { %5778 = vrcp.f32 %v4340_v48  ;;  %v4341_v50 = vadd.f32 1.0, %v5775_v30 }
 0x36a   : > { %v4672_v51 = vcombine.low %v4664_v1, %v4671_v49  ;;  %5780 = vrcp.f32 %v4339_v2 }
 0x36b   : > { %5782 = vrcp.f32 %v4341_v50 }
 0x36c   : > { %4712 = vst [vmem:[%s6873_s14 + $0x50] sm:$0xff] %v4672_v51  ;;  %v5777_v52 = vpop.eup %5776 }
 0x373   : > { %v5779_v53 = vpop.eup %5778 }
 0x374   : > { %v5781_v54 = vpop.eup %5780 }
 0x375   : > { %v5783_v55 = vpop.eup %5782  ;;  %v4673_v56 = vcombine.low %v5777_v52, %v5781_v54 }
 0x376   : > { %v4674_v58 = vcombine.low %v5779_v53, %v5783_v55 }
 0x377   : > { %v4681_v59 = vrot.slane %v4673_v56, %v6212_v35 }
 0x378   : > { %v4688_v60 = vrot.slane %v4674_v58, %v6212_v35 }
 0x37a   : > { %v4689_v61 = vcombine.low %v4681_v59, %v4688_v60 }
 0x37c   : > { %4713 = vst [vmem:[%s6873_s14 + $0x58] sm:$0xff] %v4689_v61 }
 0x37d PF: > { %p16_p13 = scmp.ge.s32.totalorder %s5971_s22, 4   ;;  %s7029_s18 = smov %s5902_s19 }
 0x37e   : > { %s7030_s19 = smov %s5906_s20  ;;  %s7031_s20 = smov %s5981_s25 }
 0x37f   : > { %s7032_s21 = smov %s5971_s22  ;;  %18 = sbr.rel (!%p16_p13) target bundleno = 4 (0x4), region = 96 }
 0x386   :  { %4736 = vsyncpa [#allocation3], 1 }
 0x387   :  { %4738 = vsyncpa [#allocation3 + $0x1], 1 }
 0x388   :  { %4739 = vsyncpa [#allocation5], 1 }
 0x389   :  { %4741 = vsyncpa [#allocation5 + $0x1], 1 }

</bundles_post_ra>
